<compile_context>
chip_gen: v6e
topology: v6e:2x2x1
jax: 0.10.0
libtpu: 0.0.40
codegen_flags: <defaults>
</compile_context>

<pallas_src>
import functools

import jax
import jax.numpy as jnp
from jax.experimental import pallas as pl
from jax.experimental.pallas import tpu as pltpu


def _lstm_predictor_kernel(x_ref, wih1_ref, whh1_ref, b1_ref,
                           wih2_ref, whh2_ref, b2_ref,
                           wlin_ref, blin_ref, wfb_ref, bfb_ref,
                           out_ref, *, seq_len, future):
    """One invocation runs the full sequence (teacher forcing + feedback).

    x_ref   : [B, seq_len]            observed inputs
    out_ref : [B, seq_len + future]   predictions
    """
    H = whh1_ref.shape[0]
    B = out_ref.shape[0]
    f32 = jnp.float32

    # Load weights / biases / input exactly once (all tiny, stay in vregs/VMEM).
    x_all = x_ref[...]      # [B, T]
    wih1 = wih1_ref[...]    # [1, 4H]  cell-1 input row (applied via VPU bcast)
    whh1 = whh1_ref[...]    # [H, 4H]
    b1 = b1_ref[...]        # [1, 4H]
    wih2 = wih2_ref[...]    # [H, 4H]
    whh2 = whh2_ref[...]    # [H, 4H]
    b2 = b2_ref[...]        # [1, 4H]
    wlin = wlin_ref[...]    # [1, H]   linear-head row (reduce-based head)
    blin = blin_ref[...]    # [1, 1]
    wfb = wfb_ref[...]      # [H, 4H]  = wlin^T @ wih1   (folded feedback)
    bfb = bfb_ref[...]      # [1, 4H]  = blin * wih1

    def cell(gates, c):
        # 2 full-width EUP pushes instead of 4 per-gate ones.
        sg = jax.nn.sigmoid(gates)              # [B, 4H]
        tg = jnp.tanh(gates)                    # [B, 4H]
        i = sg[:, 0:H]
        f = sg[:, H:2 * H]
        o = sg[:, 3 * H:4 * H]
        g = tg[:, 2 * H:3 * H]
        c_new = f * c + i * g
        h_new = o * jnp.tanh(c_new)
        return h_new, c_new

    def head(h2):
        # N=1 head as VPU multiply + lane reduce (off the recurrence chain).
        return jnp.sum(h2 * wlin, axis=-1, keepdims=True) + blin    # [B, 1]

    c1 = jnp.zeros((B, H), f32)
    c2 = jnp.zeros((B, H), f32)
    # Recurrent matmul results carried across steps with biases pre-added.
    # h0 == 0, so the initial carried values are just the (broadcast) biases.
    hhb1 = jnp.broadcast_to(b1, (B, 4 * H))
    hhb2 = jnp.broadcast_to(b2, (B, 4 * H))

    outs = []
    h2 = jnp.zeros((B, H), f32)

    # Phase 1: teacher forcing.  Input comes from x; head + store never feed
    # back into the recurrence.
    # TODO(synk): switch to lax.fori_loop(unroll=8) for very long sequences.
    for t in range(seq_len):
        x_t = x_all[:, t:t + 1]                                     # [B, 1]
        gates1 = x_t * wih1 + hhb1                                  # VPU bcast, no MXU
        h1, c1 = cell(gates1, c1)
        gates2 = jnp.dot(h1, wih2, preferred_element_type=f32) + hhb2
        h2, c2 = cell(gates2, c2)
        outs.append(head(h2))
        # End-of-step: next step's recurrent terms (hide MXU latency under the
        # next step's gate math).
        hhb1 = jnp.dot(h1, whh1, preferred_element_type=f32) + b1
        hhb2 = jnp.dot(h2, whh2, preferred_element_type=f32) + b2

    # Phase 2: feedback.  The fed-back prediction is folded into cell 1
    # (h2_prev @ W_fb + b_fb), so no 1-column head matmul sits on the chain.
    if future > 0:
        fb = jnp.dot(h2, wfb, preferred_element_type=f32) + bfb
        for _ in range(future):
            gates1 = fb + hhb1
            h1, c1 = cell(gates1, c1)
            gates2 = jnp.dot(h1, wih2, preferred_element_type=f32) + hhb2
            h2, c2 = cell(gates2, c2)
            outs.append(head(h2))
            hhb1 = jnp.dot(h1, whh1, preferred_element_type=f32) + b1
            hhb2 = jnp.dot(h2, whh2, preferred_element_type=f32) + b2
            fb = jnp.dot(h2, wfb, preferred_element_type=f32) + bfb

    # Single lane-dense store of the whole prediction matrix.
    out_ref[...] = jnp.concatenate(outs, axis=1)                    # [B, T_total]


def lstm_predictor(x, params, future=0):
    """x: [B, T] float32; returns [B, T + future] float32."""
    B, T = x.shape
    T_total = T + future
    (wih1_t, whh1_t, b1, wih2_t, whh2_t, b2, wlin_t, blin) = params

    # Host-side folds (exact in f32: outer products / elementwise only).
    wlin_row = wlin_t.T                 # [1, H]
    w_fb = wlin_t @ wih1_t              # [H, 1] @ [1, 4H] -> [H, 4H]
    b_fb = blin * wih1_t                # [1, 4H]

    def full_spec(shape):
        return pl.BlockSpec(shape, lambda i: (0,) * len(shape))

    kernel = functools.partial(_lstm_predictor_kernel, seq_len=T, future=future)

    inputs = (x, wih1_t, whh1_t, b1, wih2_t, whh2_t, b2, wlin_row, blin, w_fb, b_fb)

    out = pl.pallas_call(
        kernel,
        out_shape=jax.ShapeDtypeStruct((B, T_total), jnp.float32),
        grid=(1,),  # single invocation; the whole recurrence lives in-kernel
        in_specs=[full_spec(a.shape) for a in inputs],
        out_specs=full_spec((B, T_total)),
        compiler_params=pltpu.CompilerParams(
            dimension_semantics=("arbitrary",)),
    )(*inputs)

    return out


def init_params(key, n_hidden):
    """Deterministic init mirroring PyTorch's U(-1/sqrt(H), 1/sqrt(H))."""
    H = n_hidden
    k = 1.0 / jnp.sqrt(jnp.float32(H))
    keys = jax.random.split(key, 10)

    def u(k_, shape):
        return jax.random.uniform(k_, shape, jnp.float32, -k, k)

    w_ih1 = u(keys[0], (4 * H, 1))       # torch weight_ih (4H, in=1)
    w_hh1 = u(keys[1], (4 * H, H))
    b_ih1 = u(keys[2], (4 * H,))
    b_hh1 = u(keys[3], (4 * H,))
    w_ih2 = u(keys[4], (4 * H, H))
    w_hh2 = u(keys[5], (4 * H, H))
    b_ih2 = u(keys[6], (4 * H,))
    b_hh2 = u(keys[7], (4 * H,))
    w_lin = u(keys[8], (1, H))
    b_lin = u(keys[9], (1,))

    # Pre-transpose and fold the two bias vectors of each cell together.
    return (
        w_ih1.T,                       # [1, 4H]
        w_hh1.T,                       # [H, 4H]
        (b_ih1 + b_hh1)[None, :],      # [1, 4H]
        w_ih2.T,                       # [H, 4H]
        w_hh2.T,                       # [H, 4H]
        (b_ih2 + b_hh2)[None, :],      # [1, 4H]
        w_lin.T,                       # [H, 1]
        b_lin[None, :],                # [1, 1]
    )


def lstm_predictor_ref(x, params, future=0):
    """Pure-JAX reference for correctness check (same math as the module)."""
    (wih1_t, whh1_t, b1, wih2_t, whh2_t, b2, wlin_t, blin) = params
    B, T = x.shape
    H = whh1_t.shape[0]
    h1 = jnp.zeros((B, H), jnp.float32)
    c1 = jnp.zeros((B, H), jnp.float32)
    h2 = jnp.zeros((B, H), jnp.float32)
    c2 = jnp.zeros((B, H), jnp.float32)

    def cell(inp, h, c, wih_t, whh_t, b):
        g = inp @ wih_t + h @ whh_t + b
        i, f, gg, o = jnp.split(g, 4, axis=1)
        c_new = jax.nn.sigmoid(f) * c + jax.nn.sigmoid(i) * jnp.tanh(gg)
        h_new = jax.nn.sigmoid(o) * jnp.tanh(c_new)
        return h_new, c_new

    outs = []
    for t in range(T + future):
        inp = x[:, t:t + 1] if t < T else outs[-1]
        h1, c1 = cell(inp, h1, c1, wih1_t, whh1_t, b1)
        h2, c2 = cell(h1, h2, c2, wih2_t, whh2_t, b2)
        outs.append(h2 @ wlin_t + blin)
    return jnp.concatenate(outs, axis=1)


if __name__ == "__main__":
    B, T, H, FUTURE = 2, 8, 32, 4

    key = jax.random.PRNGKey(0)
    kx, kp = jax.random.split(key)
    x = jax.random.normal(kx, (B, T), jnp.float32)
    params = init_params(kp, H)

    out = lstm_predictor(x, params, future=FUTURE)
    out = jax.block_until_ready(out)

    ref = lstm_predictor_ref(x, params, future=FUTURE)
    assert out.shape == (B, T + FUTURE)
    assert jnp.allclose(out, ref, atol=1e-4, rtol=1e-4), "mismatch vs JAX reference"

    print("KERNEL_OK")
</pallas_src>

<mosaic_0001>
module attributes {stable_mosaic.version = 11 : i64} {
  func.func @_lstm_predictor_kernel(%arg0: i32, %arg1: memref<2x8xf32, #tpu.memory_space<vmem>>, %arg2: memref<1x128xf32, #tpu.memory_space<vmem>>, %arg3: memref<32x128xf32, #tpu.memory_space<vmem>>, %arg4: memref<1x128xf32, #tpu.memory_space<vmem>>, %arg5: memref<32x128xf32, #tpu.memory_space<vmem>>, %arg6: memref<32x128xf32, #tpu.memory_space<vmem>>, %arg7: memref<1x128xf32, #tpu.memory_space<vmem>>, %arg8: memref<1x32xf32, #tpu.memory_space<vmem>>, %arg9: memref<1x1xf32, #tpu.memory_space<vmem>>, %arg10: memref<32x128xf32, #tpu.memory_space<vmem>>, %arg11: memref<1x128xf32, #tpu.memory_space<vmem>>, %arg12: memref<2x12xf32, #tpu.memory_space<vmem>>) attributes {dimension_semantics = [#tpu.dimension_semantics<arbitrary>], iteration_bounds = array<i64: 1>, scalar_prefetch = 0 : i64, scratch_operands = 0 : i64, tpu.core_type = #tpu.core_type<tc>, window_params = [{pipeline_mode = #tpu.pipeline_mode<synchronous>, transform_indices = @transform_0, window_bounds = array<i64: 2, 8>}, {pipeline_mode = #tpu.pipeline_mode<synchronous>, transform_indices = @transform_1, window_bounds = array<i64: 1, 128>}, {pipeline_mode = #tpu.pipeline_mode<synchronous>, transform_indices = @transform_2, window_bounds = array<i64: 32, 128>}, {pipeline_mode = #tpu.pipeline_mode<synchronous>, transform_indices = @transform_3, window_bounds = array<i64: 1, 128>}, {pipeline_mode = #tpu.pipeline_mode<synchronous>, transform_indices = @transform_4, window_bounds = array<i64: 32, 128>}, {pipeline_mode = #tpu.pipeline_mode<synchronous>, transform_indices = @transform_5, window_bounds = array<i64: 32, 128>}, {pipeline_mode = #tpu.pipeline_mode<synchronous>, transform_indices = @transform_6, window_bounds = array<i64: 1, 128>}, {pipeline_mode = #tpu.pipeline_mode<synchronous>, transform_indices = @transform_7, window_bounds = array<i64: 1, 32>}, {pipeline_mode = #tpu.pipeline_mode<synchronous>, transform_indices = @transform_8, window_bounds = array<i64: 1, 1>}, {pipeline_mode = #tpu.pipeline_mode<synchronous>, transform_indices = @transform_9, window_bounds = array<i64: 32, 128>}, {pipeline_mode = #tpu.pipeline_mode<synchronous>, transform_indices = @transform_10, window_bounds = array<i64: 1, 128>}, {pipeline_mode = #tpu.pipeline_mode<synchronous>, transform_indices = @transform_11, window_bounds = array<i64: 2, 12>}]} {
    %c0 = arith.constant 0 : index
    %c0_0 = arith.constant 0 : index
    %0 = vector.load %arg1[%c0, %c0_0] : memref<2x8xf32, #tpu.memory_space<vmem>>, vector<2x8xf32>
    %c0_1 = arith.constant 0 : index
    %c0_2 = arith.constant 0 : index
    %1 = vector.load %arg2[%c0_1, %c0_2] : memref<1x128xf32, #tpu.memory_space<vmem>>, vector<1x128xf32>
    %c0_3 = arith.constant 0 : index
    %c0_4 = arith.constant 0 : index
    %2 = vector.load %arg3[%c0_3, %c0_4] : memref<32x128xf32, #tpu.memory_space<vmem>>, vector<32x128xf32>
    %c0_5 = arith.constant 0 : index
    %c0_6 = arith.constant 0 : index
    %3 = vector.load %arg4[%c0_5, %c0_6] : memref<1x128xf32, #tpu.memory_space<vmem>>, vector<1x128xf32>
    %c0_7 = arith.constant 0 : index
    %c0_8 = arith.constant 0 : index
    %4 = vector.load %arg5[%c0_7, %c0_8] : memref<32x128xf32, #tpu.memory_space<vmem>>, vector<32x128xf32>
    %c0_9 = arith.constant 0 : index
    %c0_10 = arith.constant 0 : index
    %5 = vector.load %arg6[%c0_9, %c0_10] : memref<32x128xf32, #tpu.memory_space<vmem>>, vector<32x128xf32>
    %c0_11 = arith.constant 0 : index
    %c0_12 = arith.constant 0 : index
    %6 = vector.load %arg7[%c0_11, %c0_12] : memref<1x128xf32, #tpu.memory_space<vmem>>, vector<1x128xf32>
    %c0_13 = arith.constant 0 : index
    %c0_14 = arith.constant 0 : index
    %7 = vector.load %arg8[%c0_13, %c0_14] : memref<1x32xf32, #tpu.memory_space<vmem>>, vector<1x32xf32>
    %c0_15 = arith.constant 0 : index
    %c0_16 = arith.constant 0 : index
    %8 = vector.load %arg9[%c0_15, %c0_16] : memref<1x1xf32, #tpu.memory_space<vmem>>, vector<1x1xf32>
    %c0_17 = arith.constant 0 : index
    %c0_18 = arith.constant 0 : index
    %9 = vector.load %arg10[%c0_17, %c0_18] : memref<32x128xf32, #tpu.memory_space<vmem>>, vector<32x128xf32>
    %c0_19 = arith.constant 0 : index
    %c0_20 = arith.constant 0 : index
    %10 = vector.load %arg11[%c0_19, %c0_20] : memref<1x128xf32, #tpu.memory_space<vmem>>, vector<1x128xf32>
    %cst = arith.constant 0.000000e+00 : f32
    %11 = vector.broadcast %cst : f32 to vector<2x32xf32>
    %cst_21 = arith.constant 0.000000e+00 : f32
    %12 = vector.broadcast %cst_21 : f32 to vector<2x32xf32>
    %13 = vector.shape_cast %3 : vector<1x128xf32> to vector<1x128xf32>
    %14 = vector.broadcast %13 : vector<1x128xf32> to vector<2x128xf32>
    %15 = vector.shape_cast %6 : vector<1x128xf32> to vector<1x128xf32>
    %16 = vector.broadcast %15 : vector<1x128xf32> to vector<2x128xf32>
    %17 = vector.extract_strided_slice %0 {offsets = [0, 0], sizes = [2, 1], strides = [1, 1]} : vector<2x8xf32> to vector<2x1xf32>
    %18 = vector.broadcast %17 : vector<2x1xf32> to vector<2x128xf32>
    %19 = vector.broadcast %1 : vector<1x128xf32> to vector<2x128xf32>
    %20 = arith.mulf %18, %19 : vector<2x128xf32>
    %21 = arith.addf %20, %14 : vector<2x128xf32>
    %22 = arith.negf %21 : vector<2x128xf32>
    %23 = math.exp %22 : vector<2x128xf32>
    %cst_22 = arith.constant 1.000000e+00 : f32
    %24 = vector.broadcast %cst_22 : f32 to vector<2x128xf32>
    %25 = arith.addf %24, %23 : vector<2x128xf32>
    %26 = arith.divf %24, %25 : vector<2x128xf32>
    %27 = math.tanh %21 : vector<2x128xf32>
    %28 = vector.extract_strided_slice %26 {offsets = [0, 0], sizes = [2, 32], strides = [1, 1]} : vector<2x128xf32> to vector<2x32xf32>
    %29 = vector.extract_strided_slice %26 {offsets = [0, 32], sizes = [2, 32], strides = [1, 1]} : vector<2x128xf32> to vector<2x32xf32>
    %30 = vector.extract_strided_slice %26 {offsets = [0, 96], sizes = [2, 32], strides = [1, 1]} : vector<2x128xf32> to vector<2x32xf32>
    %31 = vector.extract_strided_slice %27 {offsets = [0, 64], sizes = [2, 32], strides = [1, 1]} : vector<2x128xf32> to vector<2x32xf32>
    %32 = arith.mulf %29, %11 : vector<2x32xf32>
    %33 = arith.mulf %28, %31 : vector<2x32xf32>
    %34 = arith.addf %32, %33 : vector<2x32xf32>
    %35 = math.tanh %34 : vector<2x32xf32>
    %36 = arith.mulf %30, %35 : vector<2x32xf32>
    %cst_23 = arith.constant dense<0.000000e+00> : vector<2x128xf32>
    %37 = tpu.matmul %36, %4, %cst_23 {dimension_numbers = #tpu.dot_dimension_numbers<[1], [0], [0], [1], [0, 0, 1, 1], [], []>} : vector<2x32xf32>, vector<32x128xf32>, vector<2x128xf32> -> vector<2x128xf32>
    %38 = arith.addf %37, %16 : vector<2x128xf32>
    %39 = arith.negf %38 : vector<2x128xf32>
    %40 = math.exp %39 : vector<2x128xf32>
    %cst_24 = arith.constant 1.000000e+00 : f32
    %41 = vector.broadcast %cst_24 : f32 to vector<2x128xf32>
    %42 = arith.addf %41, %40 : vector<2x128xf32>
    %43 = arith.divf %41, %42 : vector<2x128xf32>
    %44 = math.tanh %38 : vector<2x128xf32>
    %45 = vector.extract_strided_slice %43 {offsets = [0, 0], sizes = [2, 32], strides = [1, 1]} : vector<2x128xf32> to vector<2x32xf32>
    %46 = vector.extract_strided_slice %43 {offsets = [0, 32], sizes = [2, 32], strides = [1, 1]} : vector<2x128xf32> to vector<2x32xf32>
    %47 = vector.extract_strided_slice %43 {offsets = [0, 96], sizes = [2, 32], strides = [1, 1]} : vector<2x128xf32> to vector<2x32xf32>
    %48 = vector.extract_strided_slice %44 {offsets = [0, 64], sizes = [2, 32], strides = [1, 1]} : vector<2x128xf32> to vector<2x32xf32>
    %49 = arith.mulf %46, %12 : vector<2x32xf32>
    %50 = arith.mulf %45, %48 : vector<2x32xf32>
    %51 = arith.addf %49, %50 : vector<2x32xf32>
    %52 = math.tanh %51 : vector<2x32xf32>
    %53 = arith.mulf %47, %52 : vector<2x32xf32>
    %54 = vector.broadcast %7 : vector<1x32xf32> to vector<2x32xf32>
    %55 = arith.mulf %53, %54 : vector<2x32xf32>
    %cst_25 = arith.constant dense<0.000000e+00> : vector<2xf32>
    %56 = vector.multi_reduction <add>, %55, %cst_25 [1] : vector<2x32xf32> to vector<2xf32>
    %57 = vector.shape_cast %56 : vector<2xf32> to vector<2x1xf32>
    %58 = vector.broadcast %8 : vector<1x1xf32> to vector<2x1xf32>
    %59 = arith.addf %57, %58 : vector<2x1xf32>
    %cst_26 = arith.constant dense<0.000000e+00> : vector<2x128xf32>
    %60 = tpu.matmul %36, %2, %cst_26 {dimension_numbers = #tpu.dot_dimension_numbers<[1], [0], [0], [1], [0, 0, 1, 1], [], []>} : vector<2x32xf32>, vector<32x128xf32>, vector<2x128xf32> -> vector<2x128xf32>
    %61 = vector.broadcast %3 : vector<1x128xf32> to vector<2x128xf32>
    %62 = arith.addf %60, %61 : vector<2x128xf32>
    %cst_27 = arith.constant dense<0.000000e+00> : vector<2x128xf32>
    %63 = tpu.matmul %53, %5, %cst_27 {dimension_numbers = #tpu.dot_dimension_numbers<[1], [0], [0], [1], [0, 0, 1, 1], [], []>} : vector<2x32xf32>, vector<32x128xf32>, vector<2x128xf32> -> vector<2x128xf32>
    %64 = vector.broadcast %6 : vector<1x128xf32> to vector<2x128xf32>
    %65 = arith.addf %63, %64 : vector<2x128xf32>
    %66 = vector.extract_strided_slice %0 {offsets = [0, 1], sizes = [2, 1], strides = [1, 1]} : vector<2x8xf32> to vector<2x1xf32>
    %67 = vector.broadcast %66 : vector<2x1xf32> to vector<2x128xf32>
    %68 = vector.broadcast %1 : vector<1x128xf32> to vector<2x128xf32>
    %69 = arith.mulf %67, %68 : vector<2x128xf32>
    %70 = arith.addf %69, %62 : vector<2x128xf32>
    %71 = arith.negf %70 : vector<2x128xf32>
    %72 = math.exp %71 : vector<2x128xf32>
    %cst_28 = arith.constant 1.000000e+00 : f32
    %73 = vector.broadcast %cst_28 : f32 to vector<2x128xf32>
    %74 = arith.addf %73, %72 : vector<2x128xf32>
    %75 = arith.divf %73, %74 : vector<2x128xf32>
    %76 = math.tanh %70 : vector<2x128xf32>
    %77 = vector.extract_strided_slice %75 {offsets = [0, 0], sizes = [2, 32], strides = [1, 1]} : vector<2x128xf32> to vector<2x32xf32>
    %78 = vector.extract_strided_slice %75 {offsets = [0, 32], sizes = [2, 32], strides = [1, 1]} : vector<2x128xf32> to vector<2x32xf32>
    %79 = vector.extract_strided_slice %75 {offsets = [0, 96], sizes = [2, 32], strides = [1, 1]} : vector<2x128xf32> to vector<2x32xf32>
    %80 = vector.extract_strided_slice %76 {offsets = [0, 64], sizes = [2, 32], strides = [1, 1]} : vector<2x128xf32> to vector<2x32xf32>
    %81 = arith.mulf %78, %34 : vector<2x32xf32>
    %82 = arith.mulf %77, %80 : vector<2x32xf32>
    %83 = arith.addf %81, %82 : vector<2x32xf32>
    %84 = math.tanh %83 : vector<2x32xf32>
    %85 = arith.mulf %79, %84 : vector<2x32xf32>
    %cst_29 = arith.constant dense<0.000000e+00> : vector<2x128xf32>
    %86 = tpu.matmul %85, %4, %cst_29 {dimension_numbers = #tpu.dot_dimension_numbers<[1], [0], [0], [1], [0, 0, 1, 1], [], []>} : vector<2x32xf32>, vector<32x128xf32>, vector<2x128xf32> -> vector<2x128xf32>
    %87 = arith.addf %86, %65 : vector<2x128xf32>
    %88 = arith.negf %87 : vector<2x128xf32>
    %89 = math.exp %88 : vector<2x128xf32>
    %cst_30 = arith.constant 1.000000e+00 : f32
    %90 = vector.broadcast %cst_30 : f32 to vector<2x128xf32>
    %91 = arith.addf %90, %89 : vector<2x128xf32>
    %92 = arith.divf %90, %91 : vector<2x128xf32>
    %93 = math.tanh %87 : vector<2x128xf32>
    %94 = vector.extract_strided_slice %92 {offsets = [0, 0], sizes = [2, 32], strides = [1, 1]} : vector<2x128xf32> to vector<2x32xf32>
    %95 = vector.extract_strided_slice %92 {offsets = [0, 32], sizes = [2, 32], strides = [1, 1]} : vector<2x128xf32> to vector<2x32xf32>
    %96 = vector.extract_strided_slice %92 {offsets = [0, 96], sizes = [2, 32], strides = [1, 1]} : vector<2x128xf32> to vector<2x32xf32>
    %97 = vector.extract_strided_slice %93 {offsets = [0, 64], sizes = [2, 32], strides = [1, 1]} : vector<2x128xf32> to vector<2x32xf32>
    %98 = arith.mulf %95, %51 : vector<2x32xf32>
    %99 = arith.mulf %94, %97 : vector<2x32xf32>
    %100 = arith.addf %98, %99 : vector<2x32xf32>
    %101 = math.tanh %100 : vector<2x32xf32>
    %102 = arith.mulf %96, %101 : vector<2x32xf32>
    %103 = vector.broadcast %7 : vector<1x32xf32> to vector<2x32xf32>
    %104 = arith.mulf %102, %103 : vector<2x32xf32>
    %cst_31 = arith.constant dense<0.000000e+00> : vector<2xf32>
    %105 = vector.multi_reduction <add>, %104, %cst_31 [1] : vector<2x32xf32> to vector<2xf32>
    %106 = vector.shape_cast %105 : vector<2xf32> to vector<2x1xf32>
    %107 = vector.broadcast %8 : vector<1x1xf32> to vector<2x1xf32>
    %108 = arith.addf %106, %107 : vector<2x1xf32>
    %cst_32 = arith.constant dense<0.000000e+00> : vector<2x128xf32>
    %109 = tpu.matmul %85, %2, %cst_32 {dimension_numbers = #tpu.dot_dimension_numbers<[1], [0], [0], [1], [0, 0, 1, 1], [], []>} : vector<2x32xf32>, vector<32x128xf32>, vector<2x128xf32> -> vector<2x128xf32>
    %110 = vector.broadcast %3 : vector<1x128xf32> to vector<2x128xf32>
    %111 = arith.addf %109, %110 : vector<2x128xf32>
    %cst_33 = arith.constant dense<0.000000e+00> : vector<2x128xf32>
    %112 = tpu.matmul %102, %5, %cst_33 {dimension_numbers = #tpu.dot_dimension_numbers<[1], [0], [0], [1], [0, 0, 1, 1], [], []>} : vector<2x32xf32>, vector<32x128xf32>, vector<2x128xf32> -> vector<2x128xf32>
    %113 = vector.broadcast %6 : vector<1x128xf32> to vector<2x128xf32>
    %114 = arith.addf %112, %113 : vector<2x128xf32>
    %115 = vector.extract_strided_slice %0 {offsets = [0, 2], sizes = [2, 1], strides = [1, 1]} : vector<2x8xf32> to vector<2x1xf32>
    %116 = vector.broadcast %115 : vector<2x1xf32> to vector<2x128xf32>
    %117 = vector.broadcast %1 : vector<1x128xf32> to vector<2x128xf32>
    %118 = arith.mulf %116, %117 : vector<2x128xf32>
    %119 = arith.addf %118, %111 : vector<2x128xf32>
    %120 = arith.negf %119 : vector<2x128xf32>
    %121 = math.exp %120 : vector<2x128xf32>
    %cst_34 = arith.constant 1.000000e+00 : f32
    %122 = vector.broadcast %cst_34 : f32 to vector<2x128xf32>
    %123 = arith.addf %122, %121 : vector<2x128xf32>
    %124 = arith.divf %122, %123 : vector<2x128xf32>
    %125 = math.tanh %119 : vector<2x128xf32>
    %126 = vector.extract_strided_slice %124 {offsets = [0, 0], sizes = [2, 32], strides = [1, 1]} : vector<2x128xf32> to vector<2x32xf32>
    %127 = vector.extract_strided_slice %124 {offsets = [0, 32], sizes = [2, 32], strides = [1, 1]} : vector<2x128xf32> to vector<2x32xf32>
    %128 = vector.extract_strided_slice %124 {offsets = [0, 96], sizes = [2, 32], strides = [1, 1]} : vector<2x128xf32> to vector<2x32xf32>
    %129 = vector.extract_strided_slice %125 {offsets = [0, 64], sizes = [2, 32], strides = [1, 1]} : vector<2x128xf32> to vector<2x32xf32>
    %130 = arith.mulf %127, %83 : vector<2x32xf32>
    %131 = arith.mulf %126, %129 : vector<2x32xf32>
    %132 = arith.addf %130, %131 : vector<2x32xf32>
    %133 = math.tanh %132 : vector<2x32xf32>
    %134 = arith.mulf %128, %133 : vector<2x32xf32>
    %cst_35 = arith.constant dense<0.000000e+00> : vector<2x128xf32>
    %135 = tpu.matmul %134, %4, %cst_35 {dimension_numbers = #tpu.dot_dimension_numbers<[1], [0], [0], [1], [0, 0, 1, 1], [], []>} : vector<2x32xf32>, vector<32x128xf32>, vector<2x128xf32> -> vector<2x128xf32>
    %136 = arith.addf %135, %114 : vector<2x128xf32>
    %137 = arith.negf %136 : vector<2x128xf32>
    %138 = math.exp %137 : vector<2x128xf32>
    %cst_36 = arith.constant 1.000000e+00 : f32
    %139 = vector.broadcast %cst_36 : f32 to vector<2x128xf32>
    %140 = arith.addf %139, %138 : vector<2x128xf32>
    %141 = arith.divf %139, %140 : vector<2x128xf32>
    %142 = math.tanh %136 : vector<2x128xf32>
    %143 = vector.extract_strided_slice %141 {offsets = [0, 0], sizes = [2, 32], strides = [1, 1]} : vector<2x128xf32> to vector<2x32xf32>
    %144 = vector.extract_strided_slice %141 {offsets = [0, 32], sizes = [2, 32], strides = [1, 1]} : vector<2x128xf32> to vector<2x32xf32>
    %145 = vector.extract_strided_slice %141 {offsets = [0, 96], sizes = [2, 32], strides = [1, 1]} : vector<2x128xf32> to vector<2x32xf32>
    %146 = vector.extract_strided_slice %142 {offsets = [0, 64], sizes = [2, 32], strides = [1, 1]} : vector<2x128xf32> to vector<2x32xf32>
    %147 = arith.mulf %144, %100 : vector<2x32xf32>
    %148 = arith.mulf %143, %146 : vector<2x32xf32>
    %149 = arith.addf %147, %148 : vector<2x32xf32>
    %150 = math.tanh %149 : vector<2x32xf32>
    %151 = arith.mulf %145, %150 : vector<2x32xf32>
    %152 = vector.broadcast %7 : vector<1x32xf32> to vector<2x32xf32>
    %153 = arith.mulf %151, %152 : vector<2x32xf32>
    %cst_37 = arith.constant dense<0.000000e+00> : vector<2xf32>
    %154 = vector.multi_reduction <add>, %153, %cst_37 [1] : vector<2x32xf32> to vector<2xf32>
    %155 = vector.shape_cast %154 : vector<2xf32> to vector<2x1xf32>
    %156 = vector.broadcast %8 : vector<1x1xf32> to vector<2x1xf32>
    %157 = arith.addf %155, %156 : vector<2x1xf32>
    %cst_38 = arith.constant dense<0.000000e+00> : vector<2x128xf32>
    %158 = tpu.matmul %134, %2, %cst_38 {dimension_numbers = #tpu.dot_dimension_numbers<[1], [0], [0], [1], [0, 0, 1, 1], [], []>} : vector<2x32xf32>, vector<32x128xf32>, vector<2x128xf32> -> vector<2x128xf32>
    %159 = vector.broadcast %3 : vector<1x128xf32> to vector<2x128xf32>
    %160 = arith.addf %158, %159 : vector<2x128xf32>
    %cst_39 = arith.constant dense<0.000000e+00> : vector<2x128xf32>
    %161 = tpu.matmul %151, %5, %cst_39 {dimension_numbers = #tpu.dot_dimension_numbers<[1], [0], [0], [1], [0, 0, 1, 1], [], []>} : vector<2x32xf32>, vector<32x128xf32>, vector<2x128xf32> -> vector<2x128xf32>
    %162 = vector.broadcast %6 : vector<1x128xf32> to vector<2x128xf32>
    %163 = arith.addf %161, %162 : vector<2x128xf32>
    %164 = vector.extract_strided_slice %0 {offsets = [0, 3], sizes = [2, 1], strides = [1, 1]} : vector<2x8xf32> to vector<2x1xf32>
    %165 = vector.broadcast %164 : vector<2x1xf32> to vector<2x128xf32>
    %166 = vector.broadcast %1 : vector<1x128xf32> to vector<2x128xf32>
    %167 = arith.mulf %165, %166 : vector<2x128xf32>
    %168 = arith.addf %167, %160 : vector<2x128xf32>
    %169 = arith.negf %168 : vector<2x128xf32>
    %170 = math.exp %169 : vector<2x128xf32>
    %cst_40 = arith.constant 1.000000e+00 : f32
    %171 = vector.broadcast %cst_40 : f32 to vector<2x128xf32>
    %172 = arith.addf %171, %170 : vector<2x128xf32>
    %173 = arith.divf %171, %172 : vector<2x128xf32>
    %174 = math.tanh %168 : vector<2x128xf32>
    %175 = vector.extract_strided_slice %173 {offsets = [0, 0], sizes = [2, 32], strides = [1, 1]} : vector<2x128xf32> to vector<2x32xf32>
    %176 = vector.extract_strided_slice %173 {offsets = [0, 32], sizes = [2, 32], strides = [1, 1]} : vector<2x128xf32> to vector<2x32xf32>
    %177 = vector.extract_strided_slice %173 {offsets = [0, 96], sizes = [2, 32], strides = [1, 1]} : vector<2x128xf32> to vector<2x32xf32>
    %178 = vector.extract_strided_slice %174 {offsets = [0, 64], sizes = [2, 32], strides = [1, 1]} : vector<2x128xf32> to vector<2x32xf32>
    %179 = arith.mulf %176, %132 : vector<2x32xf32>
    %180 = arith.mulf %175, %178 : vector<2x32xf32>
    %181 = arith.addf %179, %180 : vector<2x32xf32>
    %182 = math.tanh %181 : vector<2x32xf32>
    %183 = arith.mulf %177, %182 : vector<2x32xf32>
    %cst_41 = arith.constant dense<0.000000e+00> : vector<2x128xf32>
    %184 = tpu.matmul %183, %4, %cst_41 {dimension_numbers = #tpu.dot_dimension_numbers<[1], [0], [0], [1], [0, 0, 1, 1], [], []>} : vector<2x32xf32>, vector<32x128xf32>, vector<2x128xf32> -> vector<2x128xf32>
    %185 = arith.addf %184, %163 : vector<2x128xf32>
    %186 = arith.negf %185 : vector<2x128xf32>
    %187 = math.exp %186 : vector<2x128xf32>
    %cst_42 = arith.constant 1.000000e+00 : f32
    %188 = vector.broadcast %cst_42 : f32 to vector<2x128xf32>
    %189 = arith.addf %188, %187 : vector<2x128xf32>
    %190 = arith.divf %188, %189 : vector<2x128xf32>
    %191 = math.tanh %185 : vector<2x128xf32>
    %192 = vector.extract_strided_slice %190 {offsets = [0, 0], sizes = [2, 32], strides = [1, 1]} : vector<2x128xf32> to vector<2x32xf32>
    %193 = vector.extract_strided_slice %190 {offsets = [0, 32], sizes = [2, 32], strides = [1, 1]} : vector<2x128xf32> to vector<2x32xf32>
    %194 = vector.extract_strided_slice %190 {offsets = [0, 96], sizes = [2, 32], strides = [1, 1]} : vector<2x128xf32> to vector<2x32xf32>
    %195 = vector.extract_strided_slice %191 {offsets = [0, 64], sizes = [2, 32], strides = [1, 1]} : vector<2x128xf32> to vector<2x32xf32>
    %196 = arith.mulf %193, %149 : vector<2x32xf32>
    %197 = arith.mulf %192, %195 : vector<2x32xf32>
    %198 = arith.addf %196, %197 : vector<2x32xf32>
    %199 = math.tanh %198 : vector<2x32xf32>
    %200 = arith.mulf %194, %199 : vector<2x32xf32>
    %201 = vector.broadcast %7 : vector<1x32xf32> to vector<2x32xf32>
    %202 = arith.mulf %200, %201 : vector<2x32xf32>
    %cst_43 = arith.constant dense<0.000000e+00> : vector<2xf32>
    %203 = vector.multi_reduction <add>, %202, %cst_43 [1] : vector<2x32xf32> to vector<2xf32>
    %204 = vector.shape_cast %203 : vector<2xf32> to vector<2x1xf32>
    %205 = vector.broadcast %8 : vector<1x1xf32> to vector<2x1xf32>
    %206 = arith.addf %204, %205 : vector<2x1xf32>
    %cst_44 = arith.constant dense<0.000000e+00> : vector<2x128xf32>
    %207 = tpu.matmul %183, %2, %cst_44 {dimension_numbers = #tpu.dot_dimension_numbers<[1], [0], [0], [1], [0, 0, 1, 1], [], []>} : vector<2x32xf32>, vector<32x128xf32>, vector<2x128xf32> -> vector<2x128xf32>
    %208 = vector.broadcast %3 : vector<1x128xf32> to vector<2x128xf32>
    %209 = arith.addf %207, %208 : vector<2x128xf32>
    %cst_45 = arith.constant dense<0.000000e+00> : vector<2x128xf32>
    %210 = tpu.matmul %200, %5, %cst_45 {dimension_numbers = #tpu.dot_dimension_numbers<[1], [0], [0], [1], [0, 0, 1, 1], [], []>} : vector<2x32xf32>, vector<32x128xf32>, vector<2x128xf32> -> vector<2x128xf32>
    %211 = vector.broadcast %6 : vector<1x128xf32> to vector<2x128xf32>
    %212 = arith.addf %210, %211 : vector<2x128xf32>
    %213 = vector.extract_strided_slice %0 {offsets = [0, 4], sizes = [2, 1], strides = [1, 1]} : vector<2x8xf32> to vector<2x1xf32>
    %214 = vector.broadcast %213 : vector<2x1xf32> to vector<2x128xf32>
    %215 = vector.broadcast %1 : vector<1x128xf32> to vector<2x128xf32>
    %216 = arith.mulf %214, %215 : vector<2x128xf32>
    %217 = arith.addf %216, %209 : vector<2x128xf32>
    %218 = arith.negf %217 : vector<2x128xf32>
    %219 = math.exp %218 : vector<2x128xf32>
    %cst_46 = arith.constant 1.000000e+00 : f32
    %220 = vector.broadcast %cst_46 : f32 to vector<2x128xf32>
    %221 = arith.addf %220, %219 : vector<2x128xf32>
    %222 = arith.divf %220, %221 : vector<2x128xf32>
    %223 = math.tanh %217 : vector<2x128xf32>
    %224 = vector.extract_strided_slice %222 {offsets = [0, 0], sizes = [2, 32], strides = [1, 1]} : vector<2x128xf32> to vector<2x32xf32>
    %225 = vector.extract_strided_slice %222 {offsets = [0, 32], sizes = [2, 32], strides = [1, 1]} : vector<2x128xf32> to vector<2x32xf32>
    %226 = vector.extract_strided_slice %222 {offsets = [0, 96], sizes = [2, 32], strides = [1, 1]} : vector<2x128xf32> to vector<2x32xf32>
    %227 = vector.extract_strided_slice %223 {offsets = [0, 64], sizes = [2, 32], strides = [1, 1]} : vector<2x128xf32> to vector<2x32xf32>
    %228 = arith.mulf %225, %181 : vector<2x32xf32>
    %229 = arith.mulf %224, %227 : vector<2x32xf32>
    %230 = arith.addf %228, %229 : vector<2x32xf32>
    %231 = math.tanh %230 : vector<2x32xf32>
    %232 = arith.mulf %226, %231 : vector<2x32xf32>
    %cst_47 = arith.constant dense<0.000000e+00> : vector<2x128xf32>
    %233 = tpu.matmul %232, %4, %cst_47 {dimension_numbers = #tpu.dot_dimension_numbers<[1], [0], [0], [1], [0, 0, 1, 1], [], []>} : vector<2x32xf32>, vector<32x128xf32>, vector<2x128xf32> -> vector<2x128xf32>
    %234 = arith.addf %233, %212 : vector<2x128xf32>
    %235 = arith.negf %234 : vector<2x128xf32>
    %236 = math.exp %235 : vector<2x128xf32>
    %cst_48 = arith.constant 1.000000e+00 : f32
    %237 = vector.broadcast %cst_48 : f32 to vector<2x128xf32>
    %238 = arith.addf %237, %236 : vector<2x128xf32>
    %239 = arith.divf %237, %238 : vector<2x128xf32>
    %240 = math.tanh %234 : vector<2x128xf32>
    %241 = vector.extract_strided_slice %239 {offsets = [0, 0], sizes = [2, 32], strides = [1, 1]} : vector<2x128xf32> to vector<2x32xf32>
    %242 = vector.extract_strided_slice %239 {offsets = [0, 32], sizes = [2, 32], strides = [1, 1]} : vector<2x128xf32> to vector<2x32xf32>
    %243 = vector.extract_strided_slice %239 {offsets = [0, 96], sizes = [2, 32], strides = [1, 1]} : vector<2x128xf32> to vector<2x32xf32>
    %244 = vector.extract_strided_slice %240 {offsets = [0, 64], sizes = [2, 32], strides = [1, 1]} : vector<2x128xf32> to vector<2x32xf32>
    %245 = arith.mulf %242, %198 : vector<2x32xf32>
    %246 = arith.mulf %241, %244 : vector<2x32xf32>
    %247 = arith.addf %245, %246 : vector<2x32xf32>
    %248 = math.tanh %247 : vector<2x32xf32>
    %249 = arith.mulf %243, %248 : vector<2x32xf32>
    %250 = vector.broadcast %7 : vector<1x32xf32> to vector<2x32xf32>
    %251 = arith.mulf %249, %250 : vector<2x32xf32>
    %cst_49 = arith.constant dense<0.000000e+00> : vector<2xf32>
    %252 = vector.multi_reduction <add>, %251, %cst_49 [1] : vector<2x32xf32> to vector<2xf32>
    %253 = vector.shape_cast %252 : vector<2xf32> to vector<2x1xf32>
    %254 = vector.broadcast %8 : vector<1x1xf32> to vector<2x1xf32>
    %255 = arith.addf %253, %254 : vector<2x1xf32>
    %cst_50 = arith.constant dense<0.000000e+00> : vector<2x128xf32>
    %256 = tpu.matmul %232, %2, %cst_50 {dimension_numbers = #tpu.dot_dimension_numbers<[1], [0], [0], [1], [0, 0, 1, 1], [], []>} : vector<2x32xf32>, vector<32x128xf32>, vector<2x128xf32> -> vector<2x128xf32>
    %257 = vector.broadcast %3 : vector<1x128xf32> to vector<2x128xf32>
    %258 = arith.addf %256, %257 : vector<2x128xf32>
    %cst_51 = arith.constant dense<0.000000e+00> : vector<2x128xf32>
    %259 = tpu.matmul %249, %5, %cst_51 {dimension_numbers = #tpu.dot_dimension_numbers<[1], [0], [0], [1], [0, 0, 1, 1], [], []>} : vector<2x32xf32>, vector<32x128xf32>, vector<2x128xf32> -> vector<2x128xf32>
    %260 = vector.broadcast %6 : vector<1x128xf32> to vector<2x128xf32>
    %261 = arith.addf %259, %260 : vector<2x128xf32>
    %262 = vector.extract_strided_slice %0 {offsets = [0, 5], sizes = [2, 1], strides = [1, 1]} : vector<2x8xf32> to vector<2x1xf32>
    %263 = vector.broadcast %262 : vector<2x1xf32> to vector<2x128xf32>
    %264 = vector.broadcast %1 : vector<1x128xf32> to vector<2x128xf32>
    %265 = arith.mulf %263, %264 : vector<2x128xf32>
    %266 = arith.addf %265, %258 : vector<2x128xf32>
    %267 = arith.negf %266 : vector<2x128xf32>
    %268 = math.exp %267 : vector<2x128xf32>
    %cst_52 = arith.constant 1.000000e+00 : f32
    %269 = vector.broadcast %cst_52 : f32 to vector<2x128xf32>
    %270 = arith.addf %269, %268 : vector<2x128xf32>
    %271 = arith.divf %269, %270 : vector<2x128xf32>
    %272 = math.tanh %266 : vector<2x128xf32>
    %273 = vector.extract_strided_slice %271 {offsets = [0, 0], sizes = [2, 32], strides = [1, 1]} : vector<2x128xf32> to vector<2x32xf32>
    %274 = vector.extract_strided_slice %271 {offsets = [0, 32], sizes = [2, 32], strides = [1, 1]} : vector<2x128xf32> to vector<2x32xf32>
    %275 = vector.extract_strided_slice %271 {offsets = [0, 96], sizes = [2, 32], strides = [1, 1]} : vector<2x128xf32> to vector<2x32xf32>
    %276 = vector.extract_strided_slice %272 {offsets = [0, 64], sizes = [2, 32], strides = [1, 1]} : vector<2x128xf32> to vector<2x32xf32>
    %277 = arith.mulf %274, %230 : vector<2x32xf32>
    %278 = arith.mulf %273, %276 : vector<2x32xf32>
    %279 = arith.addf %277, %278 : vector<2x32xf32>
    %280 = math.tanh %279 : vector<2x32xf32>
    %281 = arith.mulf %275, %280 : vector<2x32xf32>
    %cst_53 = arith.constant dense<0.000000e+00> : vector<2x128xf32>
    %282 = tpu.matmul %281, %4, %cst_53 {dimension_numbers = #tpu.dot_dimension_numbers<[1], [0], [0], [1], [0, 0, 1, 1], [], []>} : vector<2x32xf32>, vector<32x128xf32>, vector<2x128xf32> -> vector<2x128xf32>
    %283 = arith.addf %282, %261 : vector<2x128xf32>
    %284 = arith.negf %283 : vector<2x128xf32>
    %285 = math.exp %284 : vector<2x128xf32>
    %cst_54 = arith.constant 1.000000e+00 : f32
    %286 = vector.broadcast %cst_54 : f32 to vector<2x128xf32>
    %287 = arith.addf %286, %285 : vector<2x128xf32>
    %288 = arith.divf %286, %287 : vector<2x128xf32>
    %289 = math.tanh %283 : vector<2x128xf32>
    %290 = vector.extract_strided_slice %288 {offsets = [0, 0], sizes = [2, 32], strides = [1, 1]} : vector<2x128xf32> to vector<2x32xf32>
    %291 = vector.extract_strided_slice %288 {offsets = [0, 32], sizes = [2, 32], strides = [1, 1]} : vector<2x128xf32> to vector<2x32xf32>
    %292 = vector.extract_strided_slice %288 {offsets = [0, 96], sizes = [2, 32], strides = [1, 1]} : vector<2x128xf32> to vector<2x32xf32>
    %293 = vector.extract_strided_slice %289 {offsets = [0, 64], sizes = [2, 32], strides = [1, 1]} : vector<2x128xf32> to vector<2x32xf32>
    %294 = arith.mulf %291, %247 : vector<2x32xf32>
    %295 = arith.mulf %290, %293 : vector<2x32xf32>
    %296 = arith.addf %294, %295 : vector<2x32xf32>
    %297 = math.tanh %296 : vector<2x32xf32>
    %298 = arith.mulf %292, %297 : vector<2x32xf32>
    %299 = vector.broadcast %7 : vector<1x32xf32> to vector<2x32xf32>
    %300 = arith.mulf %298, %299 : vector<2x32xf32>
    %cst_55 = arith.constant dense<0.000000e+00> : vector<2xf32>
    %301 = vector.multi_reduction <add>, %300, %cst_55 [1] : vector<2x32xf32> to vector<2xf32>
    %302 = vector.shape_cast %301 : vector<2xf32> to vector<2x1xf32>
    %303 = vector.broadcast %8 : vector<1x1xf32> to vector<2x1xf32>
    %304 = arith.addf %302, %303 : vector<2x1xf32>
    %cst_56 = arith.constant dense<0.000000e+00> : vector<2x128xf32>
    %305 = tpu.matmul %281, %2, %cst_56 {dimension_numbers = #tpu.dot_dimension_numbers<[1], [0], [0], [1], [0, 0, 1, 1], [], []>} : vector<2x32xf32>, vector<32x128xf32>, vector<2x128xf32> -> vector<2x128xf32>
    %306 = vector.broadcast %3 : vector<1x128xf32> to vector<2x128xf32>
    %307 = arith.addf %305, %306 : vector<2x128xf32>
    %cst_57 = arith.constant dense<0.000000e+00> : vector<2x128xf32>
    %308 = tpu.matmul %298, %5, %cst_57 {dimension_numbers = #tpu.dot_dimension_numbers<[1], [0], [0], [1], [0, 0, 1, 1], [], []>} : vector<2x32xf32>, vector<32x128xf32>, vector<2x128xf32> -> vector<2x128xf32>
    %309 = vector.broadcast %6 : vector<1x128xf32> to vector<2x128xf32>
    %310 = arith.addf %308, %309 : vector<2x128xf32>
    %311 = vector.extract_strided_slice %0 {offsets = [0, 6], sizes = [2, 1], strides = [1, 1]} : vector<2x8xf32> to vector<2x1xf32>
    %312 = vector.broadcast %311 : vector<2x1xf32> to vector<2x128xf32>
    %313 = vector.broadcast %1 : vector<1x128xf32> to vector<2x128xf32>
    %314 = arith.mulf %312, %313 : vector<2x128xf32>
    %315 = arith.addf %314, %307 : vector<2x128xf32>
    %316 = arith.negf %315 : vector<2x128xf32>
    %317 = math.exp %316 : vector<2x128xf32>
    %cst_58 = arith.constant 1.000000e+00 : f32
    %318 = vector.broadcast %cst_58 : f32 to vector<2x128xf32>
    %319 = arith.addf %318, %317 : vector<2x128xf32>
    %320 = arith.divf %318, %319 : vector<2x128xf32>
    %321 = math.tanh %315 : vector<2x128xf32>
    %322 = vector.extract_strided_slice %320 {offsets = [0, 0], sizes = [2, 32], strides = [1, 1]} : vector<2x128xf32> to vector<2x32xf32>
    %323 = vector.extract_strided_slice %320 {offsets = [0, 32], sizes = [2, 32], strides = [1, 1]} : vector<2x128xf32> to vector<2x32xf32>
    %324 = vector.extract_strided_slice %320 {offsets = [0, 96], sizes = [2, 32], strides = [1, 1]} : vector<2x128xf32> to vector<2x32xf32>
    %325 = vector.extract_strided_slice %321 {offsets = [0, 64], sizes = [2, 32], strides = [1, 1]} : vector<2x128xf32> to vector<2x32xf32>
    %326 = arith.mulf %323, %279 : vector<2x32xf32>
    %327 = arith.mulf %322, %325 : vector<2x32xf32>
    %328 = arith.addf %326, %327 : vector<2x32xf32>
    %329 = math.tanh %328 : vector<2x32xf32>
    %330 = arith.mulf %324, %329 : vector<2x32xf32>
    %cst_59 = arith.constant dense<0.000000e+00> : vector<2x128xf32>
    %331 = tpu.matmul %330, %4, %cst_59 {dimension_numbers = #tpu.dot_dimension_numbers<[1], [0], [0], [1], [0, 0, 1, 1], [], []>} : vector<2x32xf32>, vector<32x128xf32>, vector<2x128xf32> -> vector<2x128xf32>
    %332 = arith.addf %331, %310 : vector<2x128xf32>
    %333 = arith.negf %332 : vector<2x128xf32>
    %334 = math.exp %333 : vector<2x128xf32>
    %cst_60 = arith.constant 1.000000e+00 : f32
    %335 = vector.broadcast %cst_60 : f32 to vector<2x128xf32>
    %336 = arith.addf %335, %334 : vector<2x128xf32>
    %337 = arith.divf %335, %336 : vector<2x128xf32>
    %338 = math.tanh %332 : vector<2x128xf32>
    %339 = vector.extract_strided_slice %337 {offsets = [0, 0], sizes = [2, 32], strides = [1, 1]} : vector<2x128xf32> to vector<2x32xf32>
    %340 = vector.extract_strided_slice %337 {offsets = [0, 32], sizes = [2, 32], strides = [1, 1]} : vector<2x128xf32> to vector<2x32xf32>
    %341 = vector.extract_strided_slice %337 {offsets = [0, 96], sizes = [2, 32], strides = [1, 1]} : vector<2x128xf32> to vector<2x32xf32>
    %342 = vector.extract_strided_slice %338 {offsets = [0, 64], sizes = [2, 32], strides = [1, 1]} : vector<2x128xf32> to vector<2x32xf32>
    %343 = arith.mulf %340, %296 : vector<2x32xf32>
    %344 = arith.mulf %339, %342 : vector<2x32xf32>
    %345 = arith.addf %343, %344 : vector<2x32xf32>
    %346 = math.tanh %345 : vector<2x32xf32>
    %347 = arith.mulf %341, %346 : vector<2x32xf32>
    %348 = vector.broadcast %7 : vector<1x32xf32> to vector<2x32xf32>
    %349 = arith.mulf %347, %348 : vector<2x32xf32>
    %cst_61 = arith.constant dense<0.000000e+00> : vector<2xf32>
    %350 = vector.multi_reduction <add>, %349, %cst_61 [1] : vector<2x32xf32> to vector<2xf32>
    %351 = vector.shape_cast %350 : vector<2xf32> to vector<2x1xf32>
    %352 = vector.broadcast %8 : vector<1x1xf32> to vector<2x1xf32>
    %353 = arith.addf %351, %352 : vector<2x1xf32>
    %cst_62 = arith.constant dense<0.000000e+00> : vector<2x128xf32>
    %354 = tpu.matmul %330, %2, %cst_62 {dimension_numbers = #tpu.dot_dimension_numbers<[1], [0], [0], [1], [0, 0, 1, 1], [], []>} : vector<2x32xf32>, vector<32x128xf32>, vector<2x128xf32> -> vector<2x128xf32>
    %355 = vector.broadcast %3 : vector<1x128xf32> to vector<2x128xf32>
    %356 = arith.addf %354, %355 : vector<2x128xf32>
    %cst_63 = arith.constant dense<0.000000e+00> : vector<2x128xf32>
    %357 = tpu.matmul %347, %5, %cst_63 {dimension_numbers = #tpu.dot_dimension_numbers<[1], [0], [0], [1], [0, 0, 1, 1], [], []>} : vector<2x32xf32>, vector<32x128xf32>, vector<2x128xf32> -> vector<2x128xf32>
    %358 = vector.broadcast %6 : vector<1x128xf32> to vector<2x128xf32>
    %359 = arith.addf %357, %358 : vector<2x128xf32>
    %360 = vector.extract_strided_slice %0 {offsets = [0, 7], sizes = [2, 1], strides = [1, 1]} : vector<2x8xf32> to vector<2x1xf32>
    %361 = vector.broadcast %360 : vector<2x1xf32> to vector<2x128xf32>
    %362 = vector.broadcast %1 : vector<1x128xf32> to vector<2x128xf32>
    %363 = arith.mulf %361, %362 : vector<2x128xf32>
    %364 = arith.addf %363, %356 : vector<2x128xf32>
    %365 = arith.negf %364 : vector<2x128xf32>
    %366 = math.exp %365 : vector<2x128xf32>
    %cst_64 = arith.constant 1.000000e+00 : f32
    %367 = vector.broadcast %cst_64 : f32 to vector<2x128xf32>
    %368 = arith.addf %367, %366 : vector<2x128xf32>
    %369 = arith.divf %367, %368 : vector<2x128xf32>
    %370 = math.tanh %364 : vector<2x128xf32>
    %371 = vector.extract_strided_slice %369 {offsets = [0, 0], sizes = [2, 32], strides = [1, 1]} : vector<2x128xf32> to vector<2x32xf32>
    %372 = vector.extract_strided_slice %369 {offsets = [0, 32], sizes = [2, 32], strides = [1, 1]} : vector<2x128xf32> to vector<2x32xf32>
    %373 = vector.extract_strided_slice %369 {offsets = [0, 96], sizes = [2, 32], strides = [1, 1]} : vector<2x128xf32> to vector<2x32xf32>
    %374 = vector.extract_strided_slice %370 {offsets = [0, 64], sizes = [2, 32], strides = [1, 1]} : vector<2x128xf32> to vector<2x32xf32>
    %375 = arith.mulf %372, %328 : vector<2x32xf32>
    %376 = arith.mulf %371, %374 : vector<2x32xf32>
    %377 = arith.addf %375, %376 : vector<2x32xf32>
    %378 = math.tanh %377 : vector<2x32xf32>
    %379 = arith.mulf %373, %378 : vector<2x32xf32>
    %cst_65 = arith.constant dense<0.000000e+00> : vector<2x128xf32>
    %380 = tpu.matmul %379, %4, %cst_65 {dimension_numbers = #tpu.dot_dimension_numbers<[1], [0], [0], [1], [0, 0, 1, 1], [], []>} : vector<2x32xf32>, vector<32x128xf32>, vector<2x128xf32> -> vector<2x128xf32>
    %381 = arith.addf %380, %359 : vector<2x128xf32>
    %382 = arith.negf %381 : vector<2x128xf32>
    %383 = math.exp %382 : vector<2x128xf32>
    %cst_66 = arith.constant 1.000000e+00 : f32
    %384 = vector.broadcast %cst_66 : f32 to vector<2x128xf32>
    %385 = arith.addf %384, %383 : vector<2x128xf32>
    %386 = arith.divf %384, %385 : vector<2x128xf32>
    %387 = math.tanh %381 : vector<2x128xf32>
    %388 = vector.extract_strided_slice %386 {offsets = [0, 0], sizes = [2, 32], strides = [1, 1]} : vector<2x128xf32> to vector<2x32xf32>
    %389 = vector.extract_strided_slice %386 {offsets = [0, 32], sizes = [2, 32], strides = [1, 1]} : vector<2x128xf32> to vector<2x32xf32>
    %390 = vector.extract_strided_slice %386 {offsets = [0, 96], sizes = [2, 32], strides = [1, 1]} : vector<2x128xf32> to vector<2x32xf32>
    %391 = vector.extract_strided_slice %387 {offsets = [0, 64], sizes = [2, 32], strides = [1, 1]} : vector<2x128xf32> to vector<2x32xf32>
    %392 = arith.mulf %389, %345 : vector<2x32xf32>
    %393 = arith.mulf %388, %391 : vector<2x32xf32>
    %394 = arith.addf %392, %393 : vector<2x32xf32>
    %395 = math.tanh %394 : vector<2x32xf32>
    %396 = arith.mulf %390, %395 : vector<2x32xf32>
    %397 = vector.broadcast %7 : vector<1x32xf32> to vector<2x32xf32>
    %398 = arith.mulf %396, %397 : vector<2x32xf32>
    %cst_67 = arith.constant dense<0.000000e+00> : vector<2xf32>
    %399 = vector.multi_reduction <add>, %398, %cst_67 [1] : vector<2x32xf32> to vector<2xf32>
    %400 = vector.shape_cast %399 : vector<2xf32> to vector<2x1xf32>
    %401 = vector.broadcast %8 : vector<1x1xf32> to vector<2x1xf32>
    %402 = arith.addf %400, %401 : vector<2x1xf32>
    %cst_68 = arith.constant dense<0.000000e+00> : vector<2x128xf32>
    %403 = tpu.matmul %379, %2, %cst_68 {dimension_numbers = #tpu.dot_dimension_numbers<[1], [0], [0], [1], [0, 0, 1, 1], [], []>} : vector<2x32xf32>, vector<32x128xf32>, vector<2x128xf32> -> vector<2x128xf32>
    %404 = vector.broadcast %3 : vector<1x128xf32> to vector<2x128xf32>
    %405 = arith.addf %403, %404 : vector<2x128xf32>
    %cst_69 = arith.constant dense<0.000000e+00> : vector<2x128xf32>
    %406 = tpu.matmul %396, %5, %cst_69 {dimension_numbers = #tpu.dot_dimension_numbers<[1], [0], [0], [1], [0, 0, 1, 1], [], []>} : vector<2x32xf32>, vector<32x128xf32>, vector<2x128xf32> -> vector<2x128xf32>
    %407 = vector.broadcast %6 : vector<1x128xf32> to vector<2x128xf32>
    %408 = arith.addf %406, %407 : vector<2x128xf32>
    %cst_70 = arith.constant dense<0.000000e+00> : vector<2x128xf32>
    %409 = tpu.matmul %396, %9, %cst_70 {dimension_numbers = #tpu.dot_dimension_numbers<[1], [0], [0], [1], [0, 0, 1, 1], [], []>} : vector<2x32xf32>, vector<32x128xf32>, vector<2x128xf32> -> vector<2x128xf32>
    %410 = vector.broadcast %10 : vector<1x128xf32> to vector<2x128xf32>
    %411 = arith.addf %409, %410 : vector<2x128xf32>
    %412 = arith.addf %411, %405 : vector<2x128xf32>
    %413 = arith.negf %412 : vector<2x128xf32>
    %414 = math.exp %413 : vector<2x128xf32>
    %cst_71 = arith.constant 1.000000e+00 : f32
    %415 = vector.broadcast %cst_71 : f32 to vector<2x128xf32>
    %416 = arith.addf %415, %414 : vector<2x128xf32>
    %417 = arith.divf %415, %416 : vector<2x128xf32>
    %418 = math.tanh %412 : vector<2x128xf32>
    %419 = vector.extract_strided_slice %417 {offsets = [0, 0], sizes = [2, 32], strides = [1, 1]} : vector<2x128xf32> to vector<2x32xf32>
    %420 = vector.extract_strided_slice %417 {offsets = [0, 32], sizes = [2, 32], strides = [1, 1]} : vector<2x128xf32> to vector<2x32xf32>
    %421 = vector.extract_strided_slice %417 {offsets = [0, 96], sizes = [2, 32], strides = [1, 1]} : vector<2x128xf32> to vector<2x32xf32>
    %422 = vector.extract_strided_slice %418 {offsets = [0, 64], sizes = [2, 32], strides = [1, 1]} : vector<2x128xf32> to vector<2x32xf32>
    %423 = arith.mulf %420, %377 : vector<2x32xf32>
    %424 = arith.mulf %419, %422 : vector<2x32xf32>
    %425 = arith.addf %423, %424 : vector<2x32xf32>
    %426 = math.tanh %425 : vector<2x32xf32>
    %427 = arith.mulf %421, %426 : vector<2x32xf32>
    %cst_72 = arith.constant dense<0.000000e+00> : vector<2x128xf32>
    %428 = tpu.matmul %427, %4, %cst_72 {dimension_numbers = #tpu.dot_dimension_numbers<[1], [0], [0], [1], [0, 0, 1, 1], [], []>} : vector<2x32xf32>, vector<32x128xf32>, vector<2x128xf32> -> vector<2x128xf32>
    %429 = arith.addf %428, %408 : vector<2x128xf32>
    %430 = arith.negf %429 : vector<2x128xf32>
    %431 = math.exp %430 : vector<2x128xf32>
    %cst_73 = arith.constant 1.000000e+00 : f32
    %432 = vector.broadcast %cst_73 : f32 to vector<2x128xf32>
    %433 = arith.addf %432, %431 : vector<2x128xf32>
    %434 = arith.divf %432, %433 : vector<2x128xf32>
    %435 = math.tanh %429 : vector<2x128xf32>
    %436 = vector.extract_strided_slice %434 {offsets = [0, 0], sizes = [2, 32], strides = [1, 1]} : vector<2x128xf32> to vector<2x32xf32>
    %437 = vector.extract_strided_slice %434 {offsets = [0, 32], sizes = [2, 32], strides = [1, 1]} : vector<2x128xf32> to vector<2x32xf32>
    %438 = vector.extract_strided_slice %434 {offsets = [0, 96], sizes = [2, 32], strides = [1, 1]} : vector<2x128xf32> to vector<2x32xf32>
    %439 = vector.extract_strided_slice %435 {offsets = [0, 64], sizes = [2, 32], strides = [1, 1]} : vector<2x128xf32> to vector<2x32xf32>
    %440 = arith.mulf %437, %394 : vector<2x32xf32>
    %441 = arith.mulf %436, %439 : vector<2x32xf32>
    %442 = arith.addf %440, %441 : vector<2x32xf32>
    %443 = math.tanh %442 : vector<2x32xf32>
    %444 = arith.mulf %438, %443 : vector<2x32xf32>
    %445 = vector.broadcast %7 : vector<1x32xf32> to vector<2x32xf32>
    %446 = arith.mulf %444, %445 : vector<2x32xf32>
    %cst_74 = arith.constant dense<0.000000e+00> : vector<2xf32>
    %447 = vector.multi_reduction <add>, %446, %cst_74 [1] : vector<2x32xf32> to vector<2xf32>
    %448 = vector.shape_cast %447 : vector<2xf32> to vector<2x1xf32>
    %449 = vector.broadcast %8 : vector<1x1xf32> to vector<2x1xf32>
    %450 = arith.addf %448, %449 : vector<2x1xf32>
    %cst_75 = arith.constant dense<0.000000e+00> : vector<2x128xf32>
    %451 = tpu.matmul %427, %2, %cst_75 {dimension_numbers = #tpu.dot_dimension_numbers<[1], [0], [0], [1], [0, 0, 1, 1], [], []>} : vector<2x32xf32>, vector<32x128xf32>, vector<2x128xf32> -> vector<2x128xf32>
    %452 = vector.broadcast %3 : vector<1x128xf32> to vector<2x128xf32>
    %453 = arith.addf %451, %452 : vector<2x128xf32>
    %cst_76 = arith.constant dense<0.000000e+00> : vector<2x128xf32>
    %454 = tpu.matmul %444, %5, %cst_76 {dimension_numbers = #tpu.dot_dimension_numbers<[1], [0], [0], [1], [0, 0, 1, 1], [], []>} : vector<2x32xf32>, vector<32x128xf32>, vector<2x128xf32> -> vector<2x128xf32>
    %455 = vector.broadcast %6 : vector<1x128xf32> to vector<2x128xf32>
    %456 = arith.addf %454, %455 : vector<2x128xf32>
    %cst_77 = arith.constant dense<0.000000e+00> : vector<2x128xf32>
    %457 = tpu.matmul %444, %9, %cst_77 {dimension_numbers = #tpu.dot_dimension_numbers<[1], [0], [0], [1], [0, 0, 1, 1], [], []>} : vector<2x32xf32>, vector<32x128xf32>, vector<2x128xf32> -> vector<2x128xf32>
    %458 = vector.broadcast %10 : vector<1x128xf32> to vector<2x128xf32>
    %459 = arith.addf %457, %458 : vector<2x128xf32>
    %460 = arith.addf %459, %453 : vector<2x128xf32>
    %461 = arith.negf %460 : vector<2x128xf32>
    %462 = math.exp %461 : vector<2x128xf32>
    %cst_78 = arith.constant 1.000000e+00 : f32
    %463 = vector.broadcast %cst_78 : f32 to vector<2x128xf32>
    %464 = arith.addf %463, %462 : vector<2x128xf32>
    %465 = arith.divf %463, %464 : vector<2x128xf32>
    %466 = math.tanh %460 : vector<2x128xf32>
    %467 = vector.extract_strided_slice %465 {offsets = [0, 0], sizes = [2, 32], strides = [1, 1]} : vector<2x128xf32> to vector<2x32xf32>
    %468 = vector.extract_strided_slice %465 {offsets = [0, 32], sizes = [2, 32], strides = [1, 1]} : vector<2x128xf32> to vector<2x32xf32>
    %469 = vector.extract_strided_slice %465 {offsets = [0, 96], sizes = [2, 32], strides = [1, 1]} : vector<2x128xf32> to vector<2x32xf32>
    %470 = vector.extract_strided_slice %466 {offsets = [0, 64], sizes = [2, 32], strides = [1, 1]} : vector<2x128xf32> to vector<2x32xf32>
    %471 = arith.mulf %468, %425 : vector<2x32xf32>
    %472 = arith.mulf %467, %470 : vector<2x32xf32>
    %473 = arith.addf %471, %472 : vector<2x32xf32>
    %474 = math.tanh %473 : vector<2x32xf32>
    %475 = arith.mulf %469, %474 : vector<2x32xf32>
    %cst_79 = arith.constant dense<0.000000e+00> : vector<2x128xf32>
    %476 = tpu.matmul %475, %4, %cst_79 {dimension_numbers = #tpu.dot_dimension_numbers<[1], [0], [0], [1], [0, 0, 1, 1], [], []>} : vector<2x32xf32>, vector<32x128xf32>, vector<2x128xf32> -> vector<2x128xf32>
    %477 = arith.addf %476, %456 : vector<2x128xf32>
    %478 = arith.negf %477 : vector<2x128xf32>
    %479 = math.exp %478 : vector<2x128xf32>
    %cst_80 = arith.constant 1.000000e+00 : f32
    %480 = vector.broadcast %cst_80 : f32 to vector<2x128xf32>
    %481 = arith.addf %480, %479 : vector<2x128xf32>
    %482 = arith.divf %480, %481 : vector<2x128xf32>
    %483 = math.tanh %477 : vector<2x128xf32>
    %484 = vector.extract_strided_slice %482 {offsets = [0, 0], sizes = [2, 32], strides = [1, 1]} : vector<2x128xf32> to vector<2x32xf32>
    %485 = vector.extract_strided_slice %482 {offsets = [0, 32], sizes = [2, 32], strides = [1, 1]} : vector<2x128xf32> to vector<2x32xf32>
    %486 = vector.extract_strided_slice %482 {offsets = [0, 96], sizes = [2, 32], strides = [1, 1]} : vector<2x128xf32> to vector<2x32xf32>
    %487 = vector.extract_strided_slice %483 {offsets = [0, 64], sizes = [2, 32], strides = [1, 1]} : vector<2x128xf32> to vector<2x32xf32>
    %488 = arith.mulf %485, %442 : vector<2x32xf32>
    %489 = arith.mulf %484, %487 : vector<2x32xf32>
    %490 = arith.addf %488, %489 : vector<2x32xf32>
    %491 = math.tanh %490 : vector<2x32xf32>
    %492 = arith.mulf %486, %491 : vector<2x32xf32>
    %493 = vector.broadcast %7 : vector<1x32xf32> to vector<2x32xf32>
    %494 = arith.mulf %492, %493 : vector<2x32xf32>
    %cst_81 = arith.constant dense<0.000000e+00> : vector<2xf32>
    %495 = vector.multi_reduction <add>, %494, %cst_81 [1] : vector<2x32xf32> to vector<2xf32>
    %496 = vector.shape_cast %495 : vector<2xf32> to vector<2x1xf32>
    %497 = vector.broadcast %8 : vector<1x1xf32> to vector<2x1xf32>
    %498 = arith.addf %496, %497 : vector<2x1xf32>
    %cst_82 = arith.constant dense<0.000000e+00> : vector<2x128xf32>
    %499 = tpu.matmul %475, %2, %cst_82 {dimension_numbers = #tpu.dot_dimension_numbers<[1], [0], [0], [1], [0, 0, 1, 1], [], []>} : vector<2x32xf32>, vector<32x128xf32>, vector<2x128xf32> -> vector<2x128xf32>
    %500 = vector.broadcast %3 : vector<1x128xf32> to vector<2x128xf32>
    %501 = arith.addf %499, %500 : vector<2x128xf32>
    %cst_83 = arith.constant dense<0.000000e+00> : vector<2x128xf32>
    %502 = tpu.matmul %492, %5, %cst_83 {dimension_numbers = #tpu.dot_dimension_numbers<[1], [0], [0], [1], [0, 0, 1, 1], [], []>} : vector<2x32xf32>, vector<32x128xf32>, vector<2x128xf32> -> vector<2x128xf32>
    %503 = vector.broadcast %6 : vector<1x128xf32> to vector<2x128xf32>
    %504 = arith.addf %502, %503 : vector<2x128xf32>
    %cst_84 = arith.constant dense<0.000000e+00> : vector<2x128xf32>
    %505 = tpu.matmul %492, %9, %cst_84 {dimension_numbers = #tpu.dot_dimension_numbers<[1], [0], [0], [1], [0, 0, 1, 1], [], []>} : vector<2x32xf32>, vector<32x128xf32>, vector<2x128xf32> -> vector<2x128xf32>
    %506 = vector.broadcast %10 : vector<1x128xf32> to vector<2x128xf32>
    %507 = arith.addf %505, %506 : vector<2x128xf32>
    %508 = arith.addf %507, %501 : vector<2x128xf32>
    %509 = arith.negf %508 : vector<2x128xf32>
    %510 = math.exp %509 : vector<2x128xf32>
    %cst_85 = arith.constant 1.000000e+00 : f32
    %511 = vector.broadcast %cst_85 : f32 to vector<2x128xf32>
    %512 = arith.addf %511, %510 : vector<2x128xf32>
    %513 = arith.divf %511, %512 : vector<2x128xf32>
    %514 = math.tanh %508 : vector<2x128xf32>
    %515 = vector.extract_strided_slice %513 {offsets = [0, 0], sizes = [2, 32], strides = [1, 1]} : vector<2x128xf32> to vector<2x32xf32>
    %516 = vector.extract_strided_slice %513 {offsets = [0, 32], sizes = [2, 32], strides = [1, 1]} : vector<2x128xf32> to vector<2x32xf32>
    %517 = vector.extract_strided_slice %513 {offsets = [0, 96], sizes = [2, 32], strides = [1, 1]} : vector<2x128xf32> to vector<2x32xf32>
    %518 = vector.extract_strided_slice %514 {offsets = [0, 64], sizes = [2, 32], strides = [1, 1]} : vector<2x128xf32> to vector<2x32xf32>
    %519 = arith.mulf %516, %473 : vector<2x32xf32>
    %520 = arith.mulf %515, %518 : vector<2x32xf32>
    %521 = arith.addf %519, %520 : vector<2x32xf32>
    %522 = math.tanh %521 : vector<2x32xf32>
    %523 = arith.mulf %517, %522 : vector<2x32xf32>
    %cst_86 = arith.constant dense<0.000000e+00> : vector<2x128xf32>
    %524 = tpu.matmul %523, %4, %cst_86 {dimension_numbers = #tpu.dot_dimension_numbers<[1], [0], [0], [1], [0, 0, 1, 1], [], []>} : vector<2x32xf32>, vector<32x128xf32>, vector<2x128xf32> -> vector<2x128xf32>
    %525 = arith.addf %524, %504 : vector<2x128xf32>
    %526 = arith.negf %525 : vector<2x128xf32>
    %527 = math.exp %526 : vector<2x128xf32>
    %cst_87 = arith.constant 1.000000e+00 : f32
    %528 = vector.broadcast %cst_87 : f32 to vector<2x128xf32>
    %529 = arith.addf %528, %527 : vector<2x128xf32>
    %530 = arith.divf %528, %529 : vector<2x128xf32>
    %531 = math.tanh %525 : vector<2x128xf32>
    %532 = vector.extract_strided_slice %530 {offsets = [0, 0], sizes = [2, 32], strides = [1, 1]} : vector<2x128xf32> to vector<2x32xf32>
    %533 = vector.extract_strided_slice %530 {offsets = [0, 32], sizes = [2, 32], strides = [1, 1]} : vector<2x128xf32> to vector<2x32xf32>
    %534 = vector.extract_strided_slice %530 {offsets = [0, 96], sizes = [2, 32], strides = [1, 1]} : vector<2x128xf32> to vector<2x32xf32>
    %535 = vector.extract_strided_slice %531 {offsets = [0, 64], sizes = [2, 32], strides = [1, 1]} : vector<2x128xf32> to vector<2x32xf32>
    %536 = arith.mulf %533, %490 : vector<2x32xf32>
    %537 = arith.mulf %532, %535 : vector<2x32xf32>
    %538 = arith.addf %536, %537 : vector<2x32xf32>
    %539 = math.tanh %538 : vector<2x32xf32>
    %540 = arith.mulf %534, %539 : vector<2x32xf32>
    %541 = vector.broadcast %7 : vector<1x32xf32> to vector<2x32xf32>
    %542 = arith.mulf %540, %541 : vector<2x32xf32>
    %cst_88 = arith.constant dense<0.000000e+00> : vector<2xf32>
    %543 = vector.multi_reduction <add>, %542, %cst_88 [1] : vector<2x32xf32> to vector<2xf32>
    %544 = vector.shape_cast %543 : vector<2xf32> to vector<2x1xf32>
    %545 = vector.broadcast %8 : vector<1x1xf32> to vector<2x1xf32>
    %546 = arith.addf %544, %545 : vector<2x1xf32>
    %cst_89 = arith.constant dense<0.000000e+00> : vector<2x128xf32>
    %547 = tpu.matmul %523, %2, %cst_89 {dimension_numbers = #tpu.dot_dimension_numbers<[1], [0], [0], [1], [0, 0, 1, 1], [], []>} : vector<2x32xf32>, vector<32x128xf32>, vector<2x128xf32> -> vector<2x128xf32>
    %548 = vector.broadcast %3 : vector<1x128xf32> to vector<2x128xf32>
    %549 = arith.addf %547, %548 : vector<2x128xf32>
    %cst_90 = arith.constant dense<0.000000e+00> : vector<2x128xf32>
    %550 = tpu.matmul %540, %5, %cst_90 {dimension_numbers = #tpu.dot_dimension_numbers<[1], [0], [0], [1], [0, 0, 1, 1], [], []>} : vector<2x32xf32>, vector<32x128xf32>, vector<2x128xf32> -> vector<2x128xf32>
    %551 = vector.broadcast %6 : vector<1x128xf32> to vector<2x128xf32>
    %552 = arith.addf %550, %551 : vector<2x128xf32>
    %cst_91 = arith.constant dense<0.000000e+00> : vector<2x128xf32>
    %553 = tpu.matmul %540, %9, %cst_91 {dimension_numbers = #tpu.dot_dimension_numbers<[1], [0], [0], [1], [0, 0, 1, 1], [], []>} : vector<2x32xf32>, vector<32x128xf32>, vector<2x128xf32> -> vector<2x128xf32>
    %554 = vector.broadcast %10 : vector<1x128xf32> to vector<2x128xf32>
    %555 = arith.addf %553, %554 : vector<2x128xf32>
    %556 = arith.addf %555, %549 : vector<2x128xf32>
    %557 = arith.negf %556 : vector<2x128xf32>
    %558 = math.exp %557 : vector<2x128xf32>
    %cst_92 = arith.constant 1.000000e+00 : f32
    %559 = vector.broadcast %cst_92 : f32 to vector<2x128xf32>
    %560 = arith.addf %559, %558 : vector<2x128xf32>
    %561 = arith.divf %559, %560 : vector<2x128xf32>
    %562 = math.tanh %556 : vector<2x128xf32>
    %563 = vector.extract_strided_slice %561 {offsets = [0, 0], sizes = [2, 32], strides = [1, 1]} : vector<2x128xf32> to vector<2x32xf32>
    %564 = vector.extract_strided_slice %561 {offsets = [0, 32], sizes = [2, 32], strides = [1, 1]} : vector<2x128xf32> to vector<2x32xf32>
    %565 = vector.extract_strided_slice %561 {offsets = [0, 96], sizes = [2, 32], strides = [1, 1]} : vector<2x128xf32> to vector<2x32xf32>
    %566 = vector.extract_strided_slice %562 {offsets = [0, 64], sizes = [2, 32], strides = [1, 1]} : vector<2x128xf32> to vector<2x32xf32>
    %567 = arith.mulf %564, %521 : vector<2x32xf32>
    %568 = arith.mulf %563, %566 : vector<2x32xf32>
    %569 = arith.addf %567, %568 : vector<2x32xf32>
    %570 = math.tanh %569 : vector<2x32xf32>
    %571 = arith.mulf %565, %570 : vector<2x32xf32>
    %cst_93 = arith.constant dense<0.000000e+00> : vector<2x128xf32>
    %572 = tpu.matmul %571, %4, %cst_93 {dimension_numbers = #tpu.dot_dimension_numbers<[1], [0], [0], [1], [0, 0, 1, 1], [], []>} : vector<2x32xf32>, vector<32x128xf32>, vector<2x128xf32> -> vector<2x128xf32>
    %573 = arith.addf %572, %552 : vector<2x128xf32>
    %574 = arith.negf %573 : vector<2x128xf32>
    %575 = math.exp %574 : vector<2x128xf32>
    %cst_94 = arith.constant 1.000000e+00 : f32
    %576 = vector.broadcast %cst_94 : f32 to vector<2x128xf32>
    %577 = arith.addf %576, %575 : vector<2x128xf32>
    %578 = arith.divf %576, %577 : vector<2x128xf32>
    %579 = math.tanh %573 : vector<2x128xf32>
    %580 = vector.extract_strided_slice %578 {offsets = [0, 0], sizes = [2, 32], strides = [1, 1]} : vector<2x128xf32> to vector<2x32xf32>
    %581 = vector.extract_strided_slice %578 {offsets = [0, 32], sizes = [2, 32], strides = [1, 1]} : vector<2x128xf32> to vector<2x32xf32>
    %582 = vector.extract_strided_slice %578 {offsets = [0, 96], sizes = [2, 32], strides = [1, 1]} : vector<2x128xf32> to vector<2x32xf32>
    %583 = vector.extract_strided_slice %579 {offsets = [0, 64], sizes = [2, 32], strides = [1, 1]} : vector<2x128xf32> to vector<2x32xf32>
    %584 = arith.mulf %581, %538 : vector<2x32xf32>
    %585 = arith.mulf %580, %583 : vector<2x32xf32>
    %586 = arith.addf %584, %585 : vector<2x32xf32>
    %587 = math.tanh %586 : vector<2x32xf32>
    %588 = arith.mulf %582, %587 : vector<2x32xf32>
    %589 = vector.broadcast %7 : vector<1x32xf32> to vector<2x32xf32>
    %590 = arith.mulf %588, %589 : vector<2x32xf32>
    %cst_95 = arith.constant dense<0.000000e+00> : vector<2xf32>
    %591 = vector.multi_reduction <add>, %590, %cst_95 [1] : vector<2x32xf32> to vector<2xf32>
    %592 = vector.shape_cast %591 : vector<2xf32> to vector<2x1xf32>
    %593 = vector.broadcast %8 : vector<1x1xf32> to vector<2x1xf32>
    %594 = arith.addf %592, %593 : vector<2x1xf32>
    %595 = tpu.concatenate %59, %108, %157, %206, %255, %304, %353, %402, %450, %498, %546, %594 in 1 : vector<2x1xf32>, vector<2x1xf32>, vector<2x1xf32>, vector<2x1xf32>, vector<2x1xf32>, vector<2x1xf32>, vector<2x1xf32>, vector<2x1xf32>, vector<2x1xf32>, vector<2x1xf32>, vector<2x1xf32>, vector<2x1xf32> -> vector<2x12xf32>
    %c0_96 = arith.constant 0 : index
    %c0_97 = arith.constant 0 : index
    %596 = vector.load %arg12[%c0_96, %c0_97] : memref<2x12xf32, #tpu.memory_space<vmem>>, vector<2x12xf32>
    tpu.vector_store %arg12[%c0_96, %c0_97], %595 {strides = array<i32>} : memref<2x12xf32, #tpu.memory_space<vmem>>, vector<2x12xf32>,
    return
  }
  func.func @transform_0(%arg0: i32) -> (i32, i32) {
    %c0_i32 = arith.constant 0 : i32
    %c0_i32_0 = arith.constant 0 : i32
    %c0_i32_1 = arith.constant 0 : i32
    return %c0_i32, %c0_i32_0 : i32, i32
  }
  func.func @transform_1(%arg0: i32) -> (i32, i32) {
    %c0_i32 = arith.constant 0 : i32
    %c0_i32_0 = arith.constant 0 : i32
    %c0_i32_1 = arith.constant 0 : i32
    return %c0_i32, %c0_i32_0 : i32, i32
  }
  func.func @transform_2(%arg0: i32) -> (i32, i32) {
    %c0_i32 = arith.constant 0 : i32
    %c0_i32_0 = arith.constant 0 : i32
    %c0_i32_1 = arith.constant 0 : i32
    return %c0_i32, %c0_i32_0 : i32, i32
  }
  func.func @transform_3(%arg0: i32) -> (i32, i32) {
    %c0_i32 = arith.constant 0 : i32
    %c0_i32_0 = arith.constant 0 : i32
    %c0_i32_1 = arith.constant 0 : i32
    return %c0_i32, %c0_i32_0 : i32, i32
  }
  func.func @transform_4(%arg0: i32) -> (i32, i32) {
    %c0_i32 = arith.constant 0 : i32
    %c0_i32_0 = arith.constant 0 : i32
    %c0_i32_1 = arith.constant 0 : i32
    return %c0_i32, %c0_i32_0 : i32, i32
  }
  func.func @transform_5(%arg0: i32) -> (i32, i32) {
    %c0_i32 = arith.constant 0 : i32
    %c0_i32_0 = arith.constant 0 : i32
    %c0_i32_1 = arith.constant 0 : i32
    return %c0_i32, %c0_i32_0 : i32, i32
  }
  func.func @transform_6(%arg0: i32) -> (i32, i32) {
    %c0_i32 = arith.constant 0 : i32
    %c0_i32_0 = arith.constant 0 : i32
    %c0_i32_1 = arith.constant 0 : i32
    return %c0_i32, %c0_i32_0 : i32, i32
  }
  func.func @transform_7(%arg0: i32) -> (i32, i32) {
    %c0_i32 = arith.constant 0 : i32
    %c0_i32_0 = arith.constant 0 : i32
    %c0_i32_1 = arith.constant 0 : i32
    return %c0_i32, %c0_i32_0 : i32, i32
  }
  func.func @transform_8(%arg0: i32) -> (i32, i32) {
    %c0_i32 = arith.constant 0 : i32
    %c0_i32_0 = arith.constant 0 : i32
    %c0_i32_1 = arith.constant 0 : i32
    return %c0_i32, %c0_i32_0 : i32, i32
  }
  func.func @transform_9(%arg0: i32) -> (i32, i32) {
    %c0_i32 = arith.constant 0 : i32
    %c0_i32_0 = arith.constant 0 : i32
    %c0_i32_1 = arith.constant 0 : i32
    return %c0_i32, %c0_i32_0 : i32, i32
  }
  func.func @transform_10(%arg0: i32) -> (i32, i32) {
    %c0_i32 = arith.constant 0 : i32
    %c0_i32_0 = arith.constant 0 : i32
    %c0_i32_1 = arith.constant 0 : i32
    return %c0_i32, %c0_i32_0 : i32, i32
  }
  func.func @transform_11(%arg0: i32) -> (i32, i32) {
    %c0_i32 = arith.constant 0 : i32
    %c0_i32_0 = arith.constant 0 : i32
    %c0_i32_1 = arith.constant 0 : i32
    return %c0_i32, %c0_i32_0 : i32, i32
  }
}

</mosaic_0001>

<bundles_post_ra>
// kernel: tpu_custom_call.1
= control target key start
LH: loop header
LB: loop body
LE: loop exit
PB: predicated region body
PF: predicated region fallthrough
CT: control target
= control target key end

     0   :  { %s5738_s0 = inlined_call_operand.vmem [shape: f32[2,8], index: 0, kind: input, shape index: {}]   ;;  %s5739_s1 = inlined_call_operand.vmem [shape: f32[1,128], index: 1, kind: input, shape index: {}]   ;;  %s5740_s2 = inlined_call_operand.hbm [shape: f32[32,128], index: 2, kind: input, shape index: {}]   ;;  %s5741_s3 = inlined_call_operand.vmem [shape: f32[1,128], index: 3, kind: input, shape index: {}]   ;;  %s5742_s4 = inlined_call_operand.hbm [shape: f32[32,128], index: 4, kind: input, shape index: {}]   ;;  %s5743_s5 = inlined_call_operand.hbm [shape: f32[32,128], index: 5, kind: input, shape index: {}]   ;;  %s5744_s6 = inlined_call_operand.vmem [shape: f32[1,128], index: 6, kind: input, shape index: {}]   ;;  %s5745_s7 = inlined_call_operand.vmem [shape: f32[1,32], index: 7, kind: input, shape index: {}]   ;;  %s5746_s8 = inlined_call_operand.<no memory space> [shape: f32[1,1], index: 8, kind: input, shape index: {}]   ;;  %s5747_s9 = inlined_call_operand.hbm [shape: f32[32,128], index: 9, kind: input, shape index: {}]   ;;  %s5748_s10 = inlined_call_operand.vmem [shape: f32[1,128], index: 10, kind: input, shape index: {}]   ;;  %s5749_s11 = inlined_call_operand.hbm [shape: f32[2,12], index: 11, kind: output, shape index: {}]  }
   0x1   :  { %v16_v0 = vstv %s5746_s8 }
   0x2   :  { %17 = vst [vmem:[#allocation2] sm:$0x1] %v16_v0 }
   0x3   :  { %18 = vsyncpa [#allocation4], 0 }
   0x4   :  { %19 = vsyncpa [#allocation7], 0 }
   0x5   :  { %20 = vsyncpa [#allocation10], 0 }
   0x6   :  { %21 = vsyncpa [#allocation5], 0  ;;  %s4786_s19 = smov [#allocation6]   ;;  %s4787_s21 = smov [#allocation3]  }
   0x7   :  { %s45_s20 = sshll.u32 %s4786_s19, 4  ;;  %s31_s22 = sshll.u32 %s4787_s21, 4  ;;  %s46_s20 = int_to_ptr.vmem [resolvable:$true] %s45_s20  ;;  %s32_s22 = int_to_ptr.vmem [resolvable:$true] %s31_s22 }
   0x8   :  { %s4686_s23 = scalar_lea.vmem %s46_s20, 512  ;;  %p4691_p1 = scmp.lt.s32.totalorder %s46_s20, %s46_s20 }
   0x9   :  { %p4687_p0 = scmp.ne.s32.totalorder %s46_s20, %s4686_s23  ;;  %p4692_p2 = scmp.lt.s32.totalorder %s4686_s23, %s4686_s23 }
   0xb   :  { %p4693_p3 = por %p4692_p2, %p4691_p1 }
   0xd   :  { %p4694_p4 = pnand %p4693_p3, %p4687_p0 }
   0xf   :  { %4697 = shalt.err (!%p4694_p4)
}
  0x10   :  { %s4788_s24 = smov 128   ;;  %s4789_s8 = smov 8  }
  0x11   :  { %51 = dma.hbm_to_vmem [thread:$0]  %s5742_s4, 512, %s46_s20, [#allocation7], %s4788_s24, %s4788_s24, %s4789_s8  }
  0x12   :  { %s4706_s27 = scalar_lea.vmem %s32_s22, 512  ;;  %p4711_p6 = scmp.lt.s32.totalorder %s32_s22, %s32_s22 }
  0x13   :  { %p4707_p5 = scmp.ne.s32.totalorder %s32_s22, %s4706_s27  ;;  %p4712_p7 = scmp.lt.s32.totalorder %s4706_s27, %s4706_s27 }
  0x15   :  { %p4713_p8 = por %p4712_p7, %p4711_p6 }
  0x17   :  { %p4714_p9 = pnand %p4713_p8, %p4707_p5 }
  0x19   :  { %4717 = shalt.err (!%p4714_p9)
}
  0x1a   :  { %37 = dma.hbm_to_vmem [thread:$0]  %s5740_s2, 512, %s32_s22, [#allocation4], %s4788_s24, %s4788_s24, %s4789_s8  }
  0x1b   :  { %s4790_s30 = smov [#allocation8]   ;;  %s4791_s13 = smov [#allocation9]  }
  0x1c   :  { %s57_s12 = sshll.u32 %s4790_s30, 4  ;;  %s75_s14 = sshll.u32 %s4791_s13, 4  ;;  %s58_s12 = int_to_ptr.vmem [resolvable:$true] %s57_s12  ;;  %s76_s14 = int_to_ptr.vmem [resolvable:$true] %s75_s14 }
  0x1d   :  { %s4726_s4 = scalar_lea.vmem %s58_s12, 512  ;;  %p4731_p11 = scmp.lt.s32.totalorder %s58_s12, %s58_s12 }
  0x1e   :  { %p4727_p10 = scmp.ne.s32.totalorder %s58_s12, %s4726_s4  ;;  %p4732_p12 = scmp.lt.s32.totalorder %s4726_s4, %s4726_s4 }
  0x20   :  { %p4733_p13 = por %p4732_p12, %p4731_p11 }
  0x22   :  { %p4734_p0 = pnand %p4733_p13, %p4727_p10 }
  0x24   :  { %4737 = shalt.err (!%p4734_p0)
}
  0x25   :  { %63 = dma.hbm_to_vmem [thread:$0]  %s5743_s5, 512, %s58_s12, [#allocation7], %s4788_s24, %s4788_s24, %s4789_s8  }
  0x26   :  { %s4746_s2 = scalar_lea.vmem %s76_s14, 512  ;;  %p4751_p2 = scmp.lt.s32.totalorder %s76_s14, %s76_s14 }
  0x27   :  { %p4747_p1 = scmp.ne.s32.totalorder %s76_s14, %s4746_s2  ;;  %p4752_p3 = scmp.lt.s32.totalorder %s4746_s2, %s4746_s2 }
  0x29   :  { %p4753_p4 = por %p4752_p3, %p4751_p2 }
  0x2b   :  { %p4754_p5 = pnand %p4753_p4, %p4747_p1 }
  0x2d   :  { %4757 = shalt.err (!%p4754_p5)
}
  0x2e   :  { %81 = dma.hbm_to_vmem [thread:$0]  %s5747_s9, 512, %s76_s14, [#allocation10], %s4788_s24, %s4788_s24, %s4789_s8  }
  0x2f   :  { %4778 = dma.done.wait [#allocation4], 512  }
  0x30   :  { %4779 = vsyncadd [#allocation4], 4294966784 }
  0x31   :  { %4780 = dma.done.wait [#allocation7], 1024  }
  0x32   :  { %4781 = vsyncadd [#allocation7], 4294966272 }
  0x33   :  { %4782 = dma.done.wait [#allocation10], 512  }
  0x34   :  { %4783 = vsyncadd [#allocation10], 4294966784  ;;  %v4792_v1 = vmov 0   ;;  %v4906_v2 = vld [vmem:[%s5738_s0] sm:$0x3]  ;;  %s4793_s23 = smov 64  }
  0x35   :  { %4462 = vset.pattern.permute.xlu0 %v4792_v1  ;;  %v4912_v3 = vld [vmem:[%s5739_s1] ss:$0 sm:$0xff]  ;;  %s4794_s24 = smov 32   ;;  %v4795_v20 = vmov 0.0   ;;  %v4932_v21 = vld [vmem:[#allocation6 + $0x10] sm:$0xff]  ;;  %v4940_v23 = vld [vmem:[#allocation6 + $0x8] sm:$0xff] }
  0x36   :  { %133 = vperm.xlu0 %4462, %v4906_v2   ;;  %v4917_v4 = vld [vmem:[%s5741_s3] ss:$0 sm:$0xff]  ;;  %4014 = vmatprep.subr.mxu0 %v4795_v20  ;;  %v4934_v22 = vld [vmem:[#allocation3 + $0x10] sm:$0xff]  ;;  %v4942_v24 = vld [vmem:[#allocation3 + $0x8] sm:$0xff]  ;;  %vm4796_vm0 = vmmov 0   ;;  %v4797_v28 = vmov 1  }
  0x37   :  { %v4926_v18 = vld [vmem:[#allocation6 + $0x18] sm:$0xff]  ;;  %4025 = vmatprep.subr.mxu1 %v4795_v20  ;;  %v4948_v25 = vld [vmem:[#allocation6] sm:$0xff]  ;;  %4022 = vmatprep.mubr.msk.f32.mxu0 %vm4796_vm0, %v4795_v20  ;;  %vm171_vm1 = vcmask 261120   ;;  %v5002_v63 = vld [vmem:[#allocation8 + $0x10] sm:$0xff]  ;;  %s4804_s4 = smov 96   ;;  %vm281_vm2 = vcmask 254976  }
  0x38   :  { %v4928_v19 = vld [vmem:[#allocation3 + $0x18] sm:$0xff]  ;;  %4015 = vmatpush3.msra.mxu0 %v4926_v18  ;;  %v4952_v26 = vld [vmem:[#allocation3] sm:$0xff]  ;;  %4033 = vmatprep.mubr.msk.f32.mxu1 %vm4796_vm0, %v4795_v20  ;;  %v5006_v0 = vld [vmem:[#allocation8 + $0x8] sm:$0xff]  ;;  %s4806_s15 = smov 3   ;;  %s4807_s16 = smov 5   ;;  %vm3715_vm3 = vcmask 7168  }
  0x39   :  { %4026 = vmatpush3.msra.mxu1 %v4928_v19  ;;  %4016 = vmatprep.subr.mxu0 %v4795_v20  ;;  %v4984_v33 = vld [vmem:[%s5744_s6] ss:$0 sm:$0xff]  ;;  %v5010_v1 = vld [vmem:[#allocation8] sm:$0xff]  ;;  %s4808_s2 = smov 1   ;;  %s4809_s17 = smov 4   ;;  %vm3717_vm4 = vcmask 15360  }
  0x3a   :  { %4027 = vmatprep.subr.mxu1 %v4795_v20  ;;  %4017 = vmatpush3.msra.mxu0 %v4932_v21  ;;  %v5000_v62 = vld [vmem:[#allocation8 + $0x18] sm:$0xff]  ;;  %s4810_s18 = smov 6   ;;  %s4811_s5 = smov 10   ;;  %vm3719_vm5 = vcmask 23552   ;;  %vm3721_vm6 = vcmask 31744   ;;  %vm3723_vm7 = vcmask 39936  }
  0x3b   :  { %4028 = vmatpush3.msra.mxu1 %v4934_v22  ;;  %4018 = vmatprep.subr.mxu0 %v4795_v20  ;;  %s4812_s19 = smov 7   ;;  %s4813_s20 = smov 9   ;;  %vm3725_vm8 = vcmask 48128   ;;  %vm3727_vm9 = vcmask 56320   ;;  %vm3729_vm10 = vcmask 64512   ;;  %vm3731_vm11 = vcmask 72704  }
  0x3c   :  { %4029 = vmatprep.subr.mxu1 %v4795_v20  ;;  %4019 = vmatpush3.msra.mxu0 %v4940_v23  ;;  %s4814_s21 = smov 11   ;;  %vm3733_vm12 = vcmask 80896   ;;  %vm3735_vm13 = vcmask 89088   ;;  %vm3737_vm14 = vcmask 91136  }
  0x3d   :  { %4030 = vmatpush3.msra.mxu1 %v4942_v24  ;;  %4020 = vmatprep.subr.mxu0 %v4795_v20 }
  0x3e   :  { %4031 = vmatprep.subr.mxu1 %v4795_v20  ;;  %4021 = vmatpush3.msra.mxu0 %v4948_v25 }
  0x3f   :  { %4032 = vmatpush3.msra.mxu1 %v4952_v26  ;;  %4036 = vmatprep.subr.mxu0 %v4795_v20 }
  0x40   :  { %4047 = vmatprep.subr.mxu1 %v4795_v20  ;;  %4463 = vset.pattern.permute.xlu1 %v4797_v28 }
  0xb1   :  { %v134_v5 = vpop.permute.xlu0 %133 }
  0xb2   :  { %v142_v6 = vmul.f32 %v4912_v3, %v134_v5 }
  0xb4   :  { %v143_v7 = vadd.f32 %v4917_v4, %v142_v6 }
  0xb6   :  { %4470 = vtanh.f32 %v143_v7  ;;  %v3759_v9 = vmul.f32 -1.442695, %v143_v7  ;;  %v4798_v7 = vmov 2  }
  0xb7   :  { %4464 = vset.pattern.permute.xlu0 %v4798_v7 }
  0xb8   :  { %4472 = vpow2.f32 %v3759_v9 }
  0xc3   :  { %v4471_v8 = vpop.eup %4470 }
  0xc4   :  { %153 = vrot.lane.b32.xlu0 %v4471_v8, %s4793_s23 }
  0xc5   :  { %v4473_v10 = vpop.eup %4472 }
  0xc6   :  { %v147_v11 = vadd.f32 1.0, %v4473_v10 }
  0xc8   :  { %4474 = vrcp.f32 %v147_v11 }
  0xd5   :  { %v4475_v12 = vpop.eup %4474 }
  0xd6   :  { %v151_v15 = vmul.f32 0.0, %v4475_v12 }
 0x136   :  { %v154_v13 = vpop.permute.xlu0 %153 }
 0x137   :  { %v156_v14 = vmul.f32 %v4475_v12, %v154_v13 }
 0x139   :  { %158 = vrot.lane.b32.xlu1 %v156_v14, %s4794_s24 }
 0x1ab   :  { %v159_v16 = vpop.permute.xlu1 %158 }
 0x1ac   :  { %v4923_v17 = vadd.f32 %v159_v16, %v151_v15 }
 0x1ae   :  { %4476 = vtanh.f32 %v4923_v17 }
 0x1bb   :  { %v4477_v27 = vpop.eup %4476 }
 0x1bc   :  { %164 = vrot.lane.b32.xlu1 %v4477_v27, %s4793_s23 }
 0x1c0   :  { %438 = vperm.xlu1 %4463, %v4906_v2  }
 0x22e   :  { %v165_v29 = vpop.permute.xlu1 %164 }
 0x22f   :  { %v167_v30 = vmul.f32 %v4475_v12, %v165_v29 }
 0x231   :  { %169 = vrot.lane.b32.xlu0 %v167_v30, %s4794_s24 }
 0x23b   :  { %v439_v32 = vpop.permute.xlu1 %438 }
 0x23c   :  { %v441_v34 = vmul.f32 %v4912_v3, %v439_v32 }
 0x2a3   :  { %v170_v31 = vpop.permute.xlu0 %169 }
 0x2a4   :  { %4023 = vmatmul.mubr.msk.f32.vlgmr.msra.gmra.mxu0 %vm171_vm1, %v170_v31  ;;  %4034 = vmatmul.mubr.msk.f32.vlgmr.msra.gmra.mxu1 %vm171_vm1, %v170_v31 }
 0x2a5   :  { %4048 = vmatpush3.msra.mxu1 %v4926_v18  ;;  %4044 = vmatprep.mubr.msk.f32.mxu0 %vm4796_vm0, %v4795_v20 }
 0x2a6   :  { %4049 = vmatprep.subr.mxu1 %v4795_v20  ;;  %4055 = vmatprep.mubr.msk.f32.mxu1 %vm4796_vm0, %v4795_v20 }
 0x2a7   :  { %4050 = vmatpush3.msra.mxu1 %v4932_v21  ;;  %4037 = vmatpush3.msra.mxu0 %v5000_v62 }
 0x2a8   :  { %4051 = vmatprep.subr.mxu1 %v4795_v20  ;;  %4038 = vmatprep.subr.mxu0 %v4795_v20 }
 0x2a9   :  { %4052 = vmatpush3.msra.mxu1 %v4940_v23  ;;  %4039 = vmatpush3.msra.mxu0 %v5002_v63 }
 0x2aa   :  { %4053 = vmatprep.subr.mxu1 %v4795_v20  ;;  %4040 = vmatprep.subr.mxu0 %v4795_v20 }
 0x2ab   :  { %4054 = vmatpush3.msra.mxu1 %v4948_v25  ;;  %4041 = vmatpush3.msra.mxu0 %v5006_v0 }
 0x2ac   :  { %4069 = vmatprep.subr.mxu1 %v4795_v20  ;;  %4042 = vmatprep.subr.mxu0 %v4795_v20 }
 0x2ad   :  { %4043 = vmatpush3.msra.mxu0 %v5010_v1 }
 0x2ae   :  { %4058 = vmatprep.subr.mxu0 %v4795_v20 }
 0x364   :  { %v240_v35 = vpop.f32.mrf.mxu0  ;;  %v358_v36 = vpop.f32.mrf.mxu1 }
 0x365   :  { %v241_v37 = vadd.f32 %v4984_v33, %v240_v35  ;;  %v359_v38 = vadd.f32 %v4917_v4, %v358_v36 }
 0x366   :  { %v4024_v39 = vpop.f32.mrf.mxu0  ;;  %v4035_v40 = vpop.f32.mrf.mxu1 }
 0x367   :  { %4478 = vtanh.f32 %v241_v37  ;;  %v442_v41 = vadd.f32 %v441_v34, %v359_v38  ;;  %v3761_v44 = vmul.f32 -1.442695, %v241_v37 }
 0x369   :  { %4480 = vtanh.f32 %v442_v41  ;;  %v3766_v45 = vmul.f32 -1.442695, %v442_v41 }
 0x36a   :  { %4482 = vpow2.f32 %v3761_v44 }
 0x36b   :  { %4484 = vpow2.f32 %v3766_v45 }
 0x374   :  { %v4479_v42 = vpop.eup %4478 }
 0x375   :  { %253 = vrot.lane.b32.xlu0 %v4479_v42, %s4793_s23 }
 0x376   :  { %v4481_v43 = vpop.eup %4480 }
 0x377   :  { %452 = vrot.lane.b32.xlu1 %v4481_v43, %s4793_s23  ;;  %v4483_v46 = vpop.eup %4482 }
 0x378   :  { %v4485_v47 = vpop.eup %4484  ;;  %v247_v48 = vadd.f32 1.0, %v4483_v46 }
 0x379   :  { %v446_v49 = vadd.f32 1.0, %v4485_v47 }
 0x37a   :  { %4486 = vrcp.f32 %v247_v48 }
 0x37b   :  { %4488 = vrcp.f32 %v446_v49 }
 0x387   :  { %v4487_v50 = vpop.eup %4486 }
 0x388   :  { %v4489_v53 = vpop.eup %4488  ;;  %v251_v56 = vmul.f32 0.0, %v4487_v50 }
 0x389   :  { %v450_v59 = vmul.f32 %v4489_v53, %v4923_v17 }
 0x3e7   :  { %v254_v51 = vpop.permute.xlu0 %253 }
 0x3e8   :  { %v256_v52 = vmul.f32 %v4487_v50, %v254_v51 }
 0x3e9   :  { %v453_v54 = vpop.permute.xlu1 %452 }
 0x3ea   :  { %258 = vrot.lane.b32.xlu0 %v256_v52, %s4794_s24  ;;  %v455_v55 = vmul.f32 %v4489_v53, %v453_v54 }
 0x3ec   :  { %457 = vrot.lane.b32.xlu1 %v455_v55, %s4794_s24 }
 0x45c   :  { %v259_v57 = vpop.permute.xlu0 %258 }
 0x45d   :  { %v4993_v58 = vadd.f32 %v259_v57, %v251_v56 }
 0x45e   :  { %v458_v60 = vpop.permute.xlu1 %457 }
 0x45f   :  { %4490 = vtanh.f32 %v4993_v58  ;;  %v4997_v61 = vadd.f32 %v458_v60, %v450_v59  ;;  %v4799_v59 = vmov 3  }
 0x461   :  { %4492 = vtanh.f32 %v4997_v61 }
 0x46c   :  { %v4491_v5 = vpop.eup %4490 }
 0x46d   :  { %264 = vrot.lane.b32.xlu0 %v4491_v5, %s4793_s23 }
 0x46e   :  { %v4493_v6 = vpop.eup %4492 }
 0x46f   :  { %463 = vrot.lane.b32.xlu1 %v4493_v6, %s4793_s23 }
 0x4df   :  { %v265_v8 = vpop.permute.xlu0 %264 }
 0x4e0   :  { %v5018_v9 = vmul.f32 %v4487_v50, %v265_v8 }
 0x4e1   :  { %v464_v10 = vpop.permute.xlu1 %463 }
 0x4e2   :  { %363 = vrot.lane.b32.xlu0 %v5018_v9, %s4794_s24  ;;  %v466_v11 = vmul.f32 %v4489_v53, %v464_v10 }
 0x4e4   :  { %468 = vrot.lane.b32.xlu1 %v466_v11, %s4794_s24 }
 0x4e6   :  { %721 = vperm.xlu0 %4464, %v4906_v2  }
 0x4ea   :  { %4465 = vset.pattern.permute.xlu0 %v4799_v59 }
 0x554   :  { %v364_v12 = vpop.permute.xlu0 %363 }
 0x555   :  { %4045 = vmatmul.mubr.msk.f32.vlgmr.msra.gmra.mxu0 %vm171_vm1, %v364_v12 }
 0x556   :  { %4059 = vmatpush3.msra.mxu0 %v4928_v19  ;;  %4066 = vmatprep.mubr.msk.f32.mxu0 %vm4796_vm0, %v4795_v20  ;;  %v469_v13 = vpop.permute.xlu1 %468 }
 0x557   :  { %4060 = vmatprep.subr.mxu0 %v4795_v20  ;;  %4056 = vmatmul.mubr.msk.f32.vlgmr.msra.gmra.mxu1 %vm171_vm1, %v469_v13 }
 0x558   :  { %4061 = vmatpush3.msra.mxu0 %v4934_v22  ;;  %4070 = vmatpush3.msra.mxu1 %v5000_v62 }
 0x559   :  { %4062 = vmatprep.subr.mxu0 %v4795_v20  ;;  %4071 = vmatprep.subr.mxu1 %v4795_v20 }
 0x55a   :  { %4063 = vmatpush3.msra.mxu0 %v4942_v24  ;;  %4072 = vmatpush3.msra.mxu1 %v5002_v63 }
 0x55b   :  { %4064 = vmatprep.subr.mxu0 %v4795_v20  ;;  %4073 = vmatprep.subr.mxu1 %v4795_v20 }
 0x55c   :  { %4065 = vmatpush3.msra.mxu0 %v4952_v26  ;;  %4074 = vmatpush3.msra.mxu1 %v5006_v0 }
 0x55d   :  { %4067 = vmatmul.mubr.msk.f32.vlgmr.msra.gmra.mxu0 %vm171_vm1, %v469_v13  ;;  %4075 = vmatprep.subr.mxu1 %v4795_v20 }
 0x55e   :  { %4077 = vmatprep.mubr.msk.f32.mxu1 %vm4796_vm0, %v4795_v20  ;;  %4076 = vmatpush3.msra.mxu1 %v5010_v1 }
 0x55f   :  { %4080 = vmatprep.subr.mxu0 %v4795_v20  ;;  %4091 = vmatprep.subr.mxu1 %v4795_v20 }
 0x560   :  { %4081 = vmatpush3.msra.mxu0 %v4926_v18  ;;  %4088 = vmatprep.mubr.msk.f32.mxu0 %vm4796_vm0, %v4795_v20 }
 0x561   :  { %4082 = vmatprep.subr.mxu0 %v4795_v20  ;;  %v722_v28 = vpop.permute.xlu0 %721 }
 0x562   :  { %4083 = vmatpush3.msra.mxu0 %v4932_v21  ;;  %v724_v30 = vmul.f32 %v4912_v3, %v722_v28 }
 0x563   :  { %4084 = vmatprep.subr.mxu0 %v4795_v20 }
 0x564   :  { %4085 = vmatpush3.msra.mxu0 %v4940_v23 }
 0x565   :  { %4086 = vmatprep.subr.mxu0 %v4795_v20 }
 0x566   :  { %4087 = vmatpush3.msra.mxu0 %v4948_v25 }
 0x567   :  { %4102 = vmatprep.subr.mxu0 %v4795_v20 }
 0x615   :  { %v433_v14 = vpop.f32.mrf.mxu0 }
 0x616   :  { %v434_v15 = vadd.f32 %v4984_v33, %v433_v14 }
 0x617   :  { %v4046_v16 = vpop.f32.mrf.mxu0  ;;  %v538_v17 = vpop.f32.mrf.mxu1 }
 0x618   :  { %v539_v27 = vadd.f32 %v538_v17, %v434_v15 }
 0x619   :  { %v4057_v29 = vpop.f32.mrf.mxu1 }
 0x61a   :  { %4494 = vtanh.f32 %v539_v27  ;;  %v3768_v38 = vmul.f32 -1.442695, %v539_v27 }
 0x61d   :  { %v641_v31 = vpop.f32.mrf.mxu0 }
 0x61e   :  { %v642_v32 = vadd.f32 %v4917_v4, %v641_v31 }
 0x61f   :  { %v4068_v34 = vpop.f32.mrf.mxu0 }
 0x620   :  { %v725_v35 = vadd.f32 %v724_v30, %v642_v32 }
 0x622   :  { %4496 = vtanh.f32 %v725_v35  ;;  %v3771_v39 = vmul.f32 -1.442695, %v725_v35 }
 0x623   :  { %4498 = vpow2.f32 %v3768_v38 }
 0x624   :  { %4500 = vpow2.f32 %v3771_v39 }
 0x627   :  { %v4495_v36 = vpop.eup %4494 }
 0x628   :  { %551 = vrot.lane.b32.xlu1 %v4495_v36, %s4793_s23 }
 0x62f   :  { %v4497_v37 = vpop.eup %4496 }
 0x630   :  { %735 = vrot.lane.b32.xlu1 %v4497_v37, %s4793_s23  ;;  %v4499_v40 = vpop.eup %4498 }
 0x631   :  { %v545_v41 = vadd.f32 1.0, %v4499_v40  ;;  %v4501_v42 = vpop.eup %4500 }
 0x632   :  { %v729_v43 = vadd.f32 1.0, %v4501_v42 }
 0x633   :  { %4502 = vrcp.f32 %v545_v41 }
 0x634   :  { %4504 = vrcp.f32 %v729_v43 }
 0x640   :  { %v4503_v44 = vpop.eup %4502 }
 0x641   :  { %v4505_v47 = vpop.eup %4504  ;;  %v549_v50 = vmul.f32 %v4503_v44, %v4993_v58 }
 0x642   :  { %v733_v53 = vmul.f32 %v4505_v47, %v4997_v61 }
 0x69a   :  { %v552_v45 = vpop.permute.xlu1 %551 }
 0x69b   :  { %v554_v46 = vmul.f32 %v4503_v44, %v552_v45 }
 0x69d   :  { %556 = vrot.lane.b32.xlu0 %v554_v46, %s4794_s24 }
 0x6a2   :  { %v736_v48 = vpop.permute.xlu1 %735 }
 0x6a3   :  { %v738_v49 = vmul.f32 %v4505_v47, %v736_v48 }
 0x6a5   :  { %740 = vrot.lane.b32.xlu1 %v738_v49, %s4794_s24 }
 0x70f   :  { %v557_v51 = vpop.permute.xlu0 %556 }
 0x710   :  { %v5065_v52 = vadd.f32 %v557_v51, %v549_v50 }
 0x712   :  { %4506 = vtanh.f32 %v5065_v52 }
 0x717   :  { %v741_v54 = vpop.permute.xlu1 %740 }
 0x718   :  { %v5069_v55 = vadd.f32 %v741_v54, %v733_v53  ;;  %v4800_v54 = vmov 4  }
 0x71a   :  { %4508 = vtanh.f32 %v5069_v55 }
 0x71f   :  { %v4507_v56 = vpop.eup %4506 }
 0x720   :  { %562 = vrot.lane.b32.xlu0 %v4507_v56, %s4793_s23 }
 0x727   :  { %v4509_v57 = vpop.eup %4508 }
 0x728   :  { %746 = vrot.lane.b32.xlu1 %v4509_v57, %s4793_s23 }
 0x792   :  { %v563_v58 = vpop.permute.xlu0 %562 }
 0x793   :  { %v5074_v60 = vmul.f32 %v4503_v44, %v563_v58 }
 0x795   :  { %646 = vrot.lane.b32.xlu0 %v5074_v60, %s4794_s24 }
 0x799   :  { %1004 = vperm.xlu0 %4465, %v4906_v2  }
 0x79a   :  { %v747_v61 = vpop.permute.xlu1 %746 }
 0x79b   :  { %v749_v5 = vmul.f32 %v4505_v47, %v747_v61 }
 0x79d   :  { %751 = vrot.lane.b32.xlu1 %v749_v5, %s4794_s24  ;;  %4466 = vset.pattern.permute.xlu0 %v4800_v54 }
 0x807   :  { %v647_v6 = vpop.permute.xlu0 %646 }
 0x808   :  { %4078 = vmatmul.mubr.msk.f32.vlgmr.msra.gmra.mxu1 %vm171_vm1, %v647_v6 }
 0x809   :  { %4092 = vmatpush3.msra.mxu1 %v4928_v19  ;;  %4099 = vmatprep.mubr.msk.f32.mxu1 %vm4796_vm0, %v4795_v20 }
 0x80a   :  { %4093 = vmatprep.subr.mxu1 %v4795_v20 }
 0x80b   :  { %4094 = vmatpush3.msra.mxu1 %v4934_v22 }
 0x80c   :  { %4095 = vmatprep.subr.mxu1 %v4795_v20 }
 0x80d   :  { %4096 = vmatpush3.msra.mxu1 %v4942_v24 }
 0x80e   :  { %4097 = vmatprep.subr.mxu1 %v4795_v20 }
 0x80f   :  { %v752_v7 = vpop.permute.xlu1 %751  ;;  %4098 = vmatpush3.msra.mxu1 %v4952_v26 }
 0x810   :  { %4089 = vmatmul.mubr.msk.f32.vlgmr.msra.gmra.mxu0 %vm171_vm1, %v752_v7  ;;  %4100 = vmatmul.mubr.msk.f32.vlgmr.msra.gmra.mxu1 %vm171_vm1, %v752_v7 }
 0x811   :  { %4103 = vmatpush3.msra.mxu0 %v5000_v62  ;;  %4113 = vmatprep.subr.mxu1 %v4795_v20 }
 0x812   :  { %4104 = vmatprep.subr.mxu0 %v4795_v20  ;;  %4114 = vmatpush3.msra.mxu1 %v4926_v18 }
 0x813   :  { %4105 = vmatpush3.msra.mxu0 %v5002_v63  ;;  %4115 = vmatprep.subr.mxu1 %v4795_v20 }
 0x814   :  { %4106 = vmatprep.subr.mxu0 %v4795_v20  ;;  %4110 = vmatprep.mubr.msk.f32.mxu0 %vm4796_vm0, %v4795_v20  ;;  %v1005_v11 = vpop.permute.xlu0 %1004 }
 0x815   :  { %4107 = vmatpush3.msra.mxu0 %v5006_v0  ;;  %4116 = vmatpush3.msra.mxu1 %v4932_v21  ;;  %v1007_v14 = vmul.f32 %v4912_v3, %v1005_v11 }
 0x816   :  { %4108 = vmatprep.subr.mxu0 %v4795_v20  ;;  %4117 = vmatprep.subr.mxu1 %v4795_v20 }
 0x817   :  { %4109 = vmatpush3.msra.mxu0 %v5010_v1  ;;  %4118 = vmatpush3.msra.mxu1 %v4940_v23 }
 0x818   :  { %4124 = vmatprep.subr.mxu0 %v4795_v20  ;;  %4119 = vmatprep.subr.mxu1 %v4795_v20 }
 0x819   :  { %4121 = vmatprep.mubr.msk.f32.mxu1 %vm4796_vm0, %v4795_v20  ;;  %4120 = vmatpush3.msra.mxu1 %v4948_v25 }
 0x81a   :  { %4135 = vmatprep.subr.mxu1 %v4795_v20 }
 0x8c8   :  { %v716_v8 = vpop.f32.mrf.mxu1 }
 0x8c9   :  { %v717_v12 = vadd.f32 %v4984_v33, %v716_v8 }
 0x8ca   :  { %v4079_v10 = vpop.f32.mrf.mxu1 }
 0x8d0   :  { %v821_v13 = vpop.f32.mrf.mxu0  ;;  %v924_v16 = vpop.f32.mrf.mxu1 }
 0x8d1   :  { %v822_v15 = vadd.f32 %v821_v13, %v717_v12  ;;  %v925_v17 = vadd.f32 %v4917_v4, %v924_v16 }
 0x8d2   :  { %v4090_v27 = vpop.f32.mrf.mxu0  ;;  %v4101_v28 = vpop.f32.mrf.mxu1 }
 0x8d3   :  { %4510 = vtanh.f32 %v822_v15  ;;  %v1008_v29 = vadd.f32 %v1007_v14, %v925_v17  ;;  %v3773_v32 = vmul.f32 -1.442695, %v822_v15 }
 0x8d5   :  { %4512 = vtanh.f32 %v1008_v29  ;;  %v3776_v34 = vmul.f32 -1.442695, %v1008_v29 }
 0x8d6   :  { %4514 = vpow2.f32 %v3773_v32 }
 0x8d7   :  { %4516 = vpow2.f32 %v3776_v34 }
 0x8e0   :  { %v4511_v30 = vpop.eup %4510 }
 0x8e1   :  { %834 = vrot.lane.b32.xlu1 %v4511_v30, %s4793_s23 }
 0x8e2   :  { %v4513_v31 = vpop.eup %4512 }
 0x8e3   :  { %v4515_v35 = vpop.eup %4514 }
 0x8e4   :  { %v828_v36 = vadd.f32 1.0, %v4515_v35  ;;  %v4517_v37 = vpop.eup %4516 }
 0x8e5   :  { %1018 = vrot.lane.b32.xlu1 %v4513_v31, %s4793_s23  ;;  %v1012_v38 = vadd.f32 1.0, %v4517_v37 }
 0x8e6   :  { %4518 = vrcp.f32 %v828_v36 }
 0x8e7   :  { %4520 = vrcp.f32 %v1012_v38 }
 0x8f3   :  { %v4519_v39 = vpop.eup %4518 }
 0x8f4   :  { %v4521_v42 = vpop.eup %4520  ;;  %v832_v45 = vmul.f32 %v4519_v39, %v5065_v52 }
 0x8f5   :  { %v1016_v48 = vmul.f32 %v4521_v42, %v5069_v55 }
 0x953   :  { %v835_v40 = vpop.permute.xlu1 %834 }
 0x954   :  { %v837_v41 = vmul.f32 %v4519_v39, %v835_v40 }
 0x956   :  { %839 = vrot.lane.b32.xlu0 %v837_v41, %s4794_s24 }
 0x957   :  { %v1019_v43 = vpop.permute.xlu1 %1018 }
 0x958   :  { %v1021_v44 = vmul.f32 %v4521_v42, %v1019_v43 }
 0x95a   :  { %1023 = vrot.lane.b32.xlu1 %v1021_v44, %s4794_s24 }
 0x9c8   :  { %v840_v46 = vpop.permute.xlu0 %839 }
 0x9c9   :  { %v5121_v47 = vadd.f32 %v840_v46, %v832_v45 }
 0x9cb   :  { %4522 = vtanh.f32 %v5121_v47 }
 0x9cc   :  { %v1024_v49 = vpop.permute.xlu1 %1023 }
 0x9cd   :  { %v5125_v50 = vadd.f32 %v1024_v49, %v1016_v48 }
 0x9cf   :  { %4524 = vtanh.f32 %v5125_v50 }
 0x9d8   :  { %v4523_v51 = vpop.eup %4522 }
 0x9d9   :  { %845 = vrot.lane.b32.xlu0 %v4523_v51, %s4793_s23  ;;  %v4801_v51 = vmov 5  }
 0x9dc   :  { %v4525_v53 = vpop.eup %4524 }
 0x9dd   :  { %1029 = vrot.lane.b32.xlu1 %v4525_v53, %s4793_s23 }
 0xa4b   :  { %v846_v52 = vpop.permute.xlu0 %845 }
 0xa4c   :  { %v5130_v56 = vmul.f32 %v4519_v39, %v846_v52 }
 0xa4e   :  { %929 = vrot.lane.b32.xlu0 %v5130_v56, %s4794_s24 }
 0xa4f   :  { %v1030_v55 = vpop.permute.xlu1 %1029 }
 0xa50   :  { %v1032_v57 = vmul.f32 %v4521_v42, %v1030_v55 }
 0xa52   :  { %1034 = vrot.lane.b32.xlu1 %v1032_v57, %s4794_s24  ;;  %1287 = vperm.xlu0 %4466, %v4906_v2  }
 0xa56   :  { %4467 = vset.pattern.permute.xlu0 %v4801_v51 }
 0xac0   :  { %v930_v59 = vpop.permute.xlu0 %929 }
 0xac1   :  { %4111 = vmatmul.mubr.msk.f32.vlgmr.msra.gmra.mxu0 %vm171_vm1, %v930_v59 }
 0xac2   :  { %4125 = vmatpush3.msra.mxu0 %v4928_v19  ;;  %4132 = vmatprep.mubr.msk.f32.mxu0 %vm4796_vm0, %v4795_v20 }
 0xac3   :  { %4126 = vmatprep.subr.mxu0 %v4795_v20 }
 0xac4   :  { %4127 = vmatpush3.msra.mxu0 %v4934_v22  ;;  %v1035_v58 = vpop.permute.xlu1 %1034 }
 0xac5   :  { %4128 = vmatprep.subr.mxu0 %v4795_v20  ;;  %4122 = vmatmul.mubr.msk.f32.vlgmr.msra.gmra.mxu1 %vm171_vm1, %v1035_v58 }
 0xac6   :  { %4129 = vmatpush3.msra.mxu0 %v4942_v24  ;;  %4136 = vmatpush3.msra.mxu1 %v5000_v62 }
 0xac7   :  { %4130 = vmatprep.subr.mxu0 %v4795_v20  ;;  %4137 = vmatprep.subr.mxu1 %v4795_v20 }
 0xac8   :  { %4131 = vmatpush3.msra.mxu0 %v4952_v26  ;;  %4138 = vmatpush3.msra.mxu1 %v5002_v63 }
 0xac9   :  { %4133 = vmatmul.mubr.msk.f32.vlgmr.msra.gmra.mxu0 %vm171_vm1, %v1035_v58  ;;  %4139 = vmatprep.subr.mxu1 %v4795_v20 }
 0xaca   :  { %4140 = vmatpush3.msra.mxu1 %v5006_v0  ;;  %4146 = vmatprep.subr.mxu0 %v4795_v20 }
 0xacb   :  { %4141 = vmatprep.subr.mxu1 %v4795_v20  ;;  %4147 = vmatpush3.msra.mxu0 %v4926_v18 }
 0xacc   :  { %4142 = vmatpush3.msra.mxu1 %v5010_v1  ;;  %4143 = vmatprep.mubr.msk.f32.mxu1 %vm4796_vm0, %v4795_v20 }
 0xacd   :  { %4148 = vmatprep.subr.mxu0 %v4795_v20  ;;  %4157 = vmatprep.subr.mxu1 %v4795_v20  ;;  %v1288_v8 = vpop.permute.xlu0 %1287 }
 0xace   :  { %4149 = vmatpush3.msra.mxu0 %v4932_v21  ;;  %4154 = vmatprep.mubr.msk.f32.mxu0 %vm4796_vm0, %v4795_v20  ;;  %v1290_v12 = vmul.f32 %v4912_v3, %v1288_v8 }
 0xacf   :  { %4150 = vmatprep.subr.mxu0 %v4795_v20 }
 0xad0   :  { %4151 = vmatpush3.msra.mxu0 %v4940_v23 }
 0xad1   :  { %4152 = vmatprep.subr.mxu0 %v4795_v20 }
 0xad2   :  { %4153 = vmatpush3.msra.mxu0 %v4948_v25 }
 0xad3   :  { %4168 = vmatprep.subr.mxu0 %v4795_v20 }
 0xb81   :  { %v999_v61 = vpop.f32.mrf.mxu0 }
 0xb82   :  { %v1000_v6 = vadd.f32 %v4984_v33, %v999_v61 }
 0xb83   :  { %v4112_v5 = vpop.f32.mrf.mxu0 }
 0xb85   :  { %v1104_v7 = vpop.f32.mrf.mxu1 }
 0xb86   :  { %v1105_v10 = vadd.f32 %v1104_v7, %v1000_v6 }
 0xb87   :  { %v4123_v11 = vpop.f32.mrf.mxu1 }
 0xb88   :  { %4526 = vtanh.f32 %v1105_v10  ;;  %v3778_v28 = vmul.f32 -1.442695, %v1105_v10 }
 0xb89   :  { %v1207_v13 = vpop.f32.mrf.mxu0 }
 0xb8a   :  { %v1208_v14 = vadd.f32 %v4917_v4, %v1207_v13 }
 0xb8b   :  { %v4134_v15 = vpop.f32.mrf.mxu0 }
 0xb8c   :  { %v1291_v16 = vadd.f32 %v1290_v12, %v1208_v14 }
 0xb8e   :  { %4528 = vtanh.f32 %v1291_v16  ;;  %v3781_v29 = vmul.f32 -1.442695, %v1291_v16 }
 0xb8f   :  { %4530 = vpow2.f32 %v3778_v28 }
 0xb90   :  { %4532 = vpow2.f32 %v3781_v29 }
 0xb95   :  { %v4527_v17 = vpop.eup %4526 }
 0xb96   :  { %1117 = vrot.lane.b32.xlu1 %v4527_v17, %s4793_s23 }
 0xb9b   :  { %v4529_v27 = vpop.eup %4528 }
 0xb9c   :  { %1301 = vrot.lane.b32.xlu1 %v4529_v27, %s4793_s23  ;;  %v4531_v30 = vpop.eup %4530 }
 0xb9d   :  { %v1111_v31 = vadd.f32 1.0, %v4531_v30  ;;  %v4533_v32 = vpop.eup %4532 }
 0xb9e   :  { %v1295_v34 = vadd.f32 1.0, %v4533_v32 }
 0xb9f   :  { %4534 = vrcp.f32 %v1111_v31 }
 0xba0   :  { %4536 = vrcp.f32 %v1295_v34 }
 0xbac   :  { %v4535_v35 = vpop.eup %4534 }
 0xbad   :  { %v4537_v38 = vpop.eup %4536  ;;  %v1115_v41 = vmul.f32 %v4535_v35, %v5121_v47 }
 0xbae   :  { %v1299_v44 = vmul.f32 %v4537_v38, %v5125_v50 }
 0xc08   :  { %v1118_v36 = vpop.permute.xlu1 %1117 }
 0xc09   :  { %v1120_v37 = vmul.f32 %v4535_v35, %v1118_v36 }
 0xc0b   :  { %1122 = vrot.lane.b32.xlu0 %v1120_v37, %s4794_s24 }
 0xc0e   :  { %v1302_v39 = vpop.permute.xlu1 %1301 }
 0xc0f   :  { %v1304_v40 = vmul.f32 %v4537_v38, %v1302_v39 }
 0xc11   :  { %1306 = vrot.lane.b32.xlu1 %v1304_v40, %s4794_s24 }
 0xc7d   :  { %v1123_v42 = vpop.permute.xlu0 %1122 }
 0xc7e   :  { %v5177_v43 = vadd.f32 %v1123_v42, %v1115_v41 }
 0xc80   :  { %4538 = vtanh.f32 %v5177_v43 }
 0xc83   :  { %v1307_v45 = vpop.permute.xlu1 %1306 }
 0xc84   :  { %v5181_v46 = vadd.f32 %v1307_v45, %v1299_v44  ;;  %v4802_v45 = vmov 6  }
 0xc86   :  { %4540 = vtanh.f32 %v5181_v46 }
 0xc8d   :  { %v4539_v48 = vpop.eup %4538 }
 0xc8e   :  { %1128 = vrot.lane.b32.xlu0 %v4539_v48, %s4793_s23 }
 0xc93   :  { %v4541_v49 = vpop.eup %4540 }
 0xc94   :  { %1312 = vrot.lane.b32.xlu1 %v4541_v49, %s4793_s23 }
 0xd00   :  { %v1129_v47 = vpop.permute.xlu0 %1128 }
 0xd01   :  { %v5186_v53 = vmul.f32 %v4535_v35, %v1129_v47 }
 0xd03   :  { %1212 = vrot.lane.b32.xlu0 %v5186_v53, %s4794_s24 }
 0xd06   :  { %v1313_v50 = vpop.permute.xlu1 %1312 }
 0xd07   :  { %v1315_v54 = vmul.f32 %v4537_v38, %v1313_v50  ;;  %1570 = vperm.xlu0 %4467, %v4906_v2   ;;  %v5285_v50 = vld [vmem:[%s5739_s1] ss:$0 sm:$0xff] }
 0xd09   :  { %1317 = vrot.lane.b32.xlu1 %v1315_v54, %s4794_s24 }
 0xd0b   :  { %4468 = vset.pattern.permute.xlu0 %v4802_v45  ;;  %v5341_v45 = vld [vmem:[#allocation6 + $0x18] sm:$0xff] }
 0xd75   :  { %v1213_v52 = vpop.permute.xlu0 %1212 }
 0xd76   :  { %4144 = vmatmul.mubr.msk.f32.vlgmr.msra.gmra.mxu1 %vm171_vm1, %v1213_v52 }
 0xd77   :  { %4158 = vmatpush3.msra.mxu1 %v4928_v19  ;;  %4165 = vmatprep.mubr.msk.f32.mxu1 %vm4796_vm0, %v4795_v20 }
 0xd78   :  { %4159 = vmatprep.subr.mxu1 %v4795_v20 }
 0xd79   :  { %4160 = vmatpush3.msra.mxu1 %v4934_v22 }
 0xd7a   :  { %4161 = vmatprep.subr.mxu1 %v4795_v20 }
 0xd7b   :  { %v1318_v55 = vpop.permute.xlu1 %1317  ;;  %4162 = vmatpush3.msra.mxu1 %v4942_v24 }
 0xd7c   :  { %4155 = vmatmul.mubr.msk.f32.vlgmr.msra.gmra.mxu0 %vm171_vm1, %v1318_v55  ;;  %4163 = vmatprep.subr.mxu1 %v4795_v20 }
 0xd7d   :  { %4164 = vmatpush3.msra.mxu1 %v4952_v26  ;;  %4169 = vmatpush3.msra.mxu0 %v5000_v62 }
 0xd7e   :  { %4166 = vmatmul.mubr.msk.f32.vlgmr.msra.gmra.mxu1 %vm171_vm1, %v1318_v55  ;;  %4170 = vmatprep.subr.mxu0 %v4795_v20 }
 0xd7f   :  { %4171 = vmatpush3.msra.mxu0 %v5002_v63  ;;  %4179 = vmatprep.subr.mxu1 %v4795_v20 }
 0xd80   :  { %4172 = vmatprep.subr.mxu0 %v4795_v20  ;;  %4180 = vmatpush3.msra.mxu1 %v4926_v18 }
 0xd81   :  { %4173 = vmatpush3.msra.mxu0 %v5006_v0  ;;  %4181 = vmatprep.subr.mxu1 %v4795_v20 }
 0xd82   :  { %4174 = vmatprep.subr.mxu0 %v4795_v20  ;;  %4176 = vmatprep.mubr.msk.f32.mxu0 %vm4796_vm0, %v4795_v20  ;;  %v1571_v58 = vpop.permute.xlu0 %1570 }
 0xd83   :  { %4175 = vmatpush3.msra.mxu0 %v5010_v1  ;;  %4182 = vmatpush3.msra.mxu1 %v4932_v21  ;;  %v1573_v7 = vmul.f32 %v4912_v3, %v1571_v58 }
 0xd84   :  { %4190 = vmatprep.subr.mxu0 %v4795_v20  ;;  %4183 = vmatprep.subr.mxu1 %v4795_v20 }
 0xd85   :  { %4184 = vmatpush3.msra.mxu1 %v4940_v23  ;;  %4187 = vmatprep.mubr.msk.f32.mxu1 %vm4796_vm0, %v4795_v20 }
 0xd86   :  { %4185 = vmatprep.subr.mxu1 %v4795_v20 }
 0xd87   :  { %4186 = vmatpush3.msra.mxu1 %v4948_v25 }
 0xd88   :  { %4201 = vmatprep.subr.mxu1 %v4795_v20 }
 0xe36   :  { %v1282_v57 = vpop.f32.mrf.mxu1 }
 0xe37   :  { %v1283_v61 = vadd.f32 %v4984_v33, %v1282_v57 }
 0xe38   :  { %v4145_v59 = vpop.f32.mrf.mxu1 }
 0xe3c   :  { %v1387_v5 = vpop.f32.mrf.mxu0 }
 0xe3d   :  { %v1388_v6 = vadd.f32 %v1387_v5, %v1283_v61 }
 0xe3e   :  { %v4156_v8 = vpop.f32.mrf.mxu0  ;;  %v1490_v10 = vpop.f32.mrf.mxu1 }
 0xe3f   :  { %4542 = vtanh.f32 %v1388_v6  ;;  %v1491_v11 = vadd.f32 %v4917_v4, %v1490_v10  ;;  %v3783_v16 = vmul.f32 -1.442695, %v1388_v6 }
 0xe40   :  { %v4167_v12 = vpop.f32.mrf.mxu1 }
 0xe41   :  { %v1574_v13 = vadd.f32 %v1573_v7, %v1491_v11 }
 0xe43   :  { %4544 = vtanh.f32 %v1574_v13  ;;  %v3786_v17 = vmul.f32 -1.442695, %v1574_v13 }
 0xe44   :  { %4546 = vpow2.f32 %v3783_v16 }
 0xe45   :  { %4548 = vpow2.f32 %v3786_v17 }
 0xe4c   :  { %v4543_v14 = vpop.eup %4542 }
 0xe4d   :  { %1400 = vrot.lane.b32.xlu1 %v4543_v14, %s4793_s23 }
 0xe50   :  { %v4545_v15 = vpop.eup %4544 }
 0xe51   :  { %1584 = vrot.lane.b32.xlu1 %v4545_v15, %s4793_s23  ;;  %v4547_v27 = vpop.eup %4546 }
 0xe52   :  { %v1394_v3 = vadd.f32 1.0, %v4547_v27  ;;  %v4549_v28 = vpop.eup %4548 }
 0xe53   :  { %v1578_v29 = vadd.f32 1.0, %v4549_v28 }
 0xe54   :  { %4550 = vrcp.f32 %v1394_v3 }
 0xe55   :  { %4552 = vrcp.f32 %v1578_v29 }
 0xe61   :  { %v4551_v4 = vpop.eup %4550 }
 0xe62   :  { %v4553_v32 = vpop.eup %4552  ;;  %v1398_v36 = vmul.f32 %v4551_v4, %v5177_v43 }
 0xe63   :  { %v1582_v39 = vmul.f32 %v4553_v32, %v5181_v46 }
 0xebf   :  { %v1401_v30 = vpop.permute.xlu1 %1400 }
 0xec0   :  { %v1403_v31 = vmul.f32 %v4551_v4, %v1401_v30 }
 0xec2   :  { %1405 = vrot.lane.b32.xlu0 %v1403_v31, %s4794_s24  ;;  %v4803_v31 = vmov 7  }
 0xec3   :  { %v1585_v34 = vpop.permute.xlu1 %1584 }
 0xec4   :  { %v1587_v35 = vmul.f32 %v4553_v32, %v1585_v34 }
 0xec6   :  { %1589 = vrot.lane.b32.xlu1 %v1587_v35, %s4794_s24 }
 0xf34   :  { %v1406_v37 = vpop.permute.xlu0 %1405 }
 0xf35   :  { %v5233_v38 = vadd.f32 %v1406_v37, %v1398_v36  ;;  %v4664_v37 = vld [vmem:[%s5738_s0] sm:$0x3] }
 0xf37   :  { %4554 = vtanh.f32 %v5233_v38 }
 0xf38   :  { %v1590_v40 = vpop.permute.xlu1 %1589 }
 0xf39   :  { %v5237_v41 = vadd.f32 %v1590_v40, %v1582_v39  ;;  %v5317_v39 = vld [vmem:[#allocation3 + $0x18] sm:$0xff]  ;;  %v5323_v40 = vld [vmem:[#allocation3 + $0x10] sm:$0xff] }
 0xf3b   :  { %4556 = vtanh.f32 %v5237_v41 }
 0xf44   :  { %v4555_v42 = vpop.eup %4554 }
 0xf45   :  { %1411 = vrot.lane.b32.xlu0 %v4555_v42, %s4793_s23  ;;  %v5327_v42 = vld [vmem:[#allocation3 + $0x8] sm:$0xff] }
 0xf48   :  { %v4557_v44 = vpop.eup %4556 }
 0xf49   :  { %1595 = vrot.lane.b32.xlu1 %v4557_v44, %s4793_s23  ;;  %v5332_v44 = vld [vmem:[#allocation3] sm:$0xff] }
 0xfb7   :  { %v1412_v43 = vpop.permute.xlu0 %1411 }
 0xfb8   :  { %v5242_v48 = vmul.f32 %v4551_v4, %v1412_v43 }
 0xfba   :  { %1495 = vrot.lane.b32.xlu0 %v5242_v48, %s4794_s24 }
 0xfbb   :  { %v1596_v46 = vpop.permute.xlu1 %1595 }
 0xfbc   :  { %v1598_v49 = vmul.f32 %v4553_v32, %v1596_v46 }
 0xfbe   :  { %1600 = vrot.lane.b32.xlu1 %v1598_v49, %s4794_s24  ;;  %1853 = vperm.xlu0 %4468, %v4906_v2   ;;  %v5368_v49 = vld [vmem:[%s5744_s6] ss:$0 sm:$0xff] }
 0xfc2   :  { %4469 = vset.pattern.permute.xlu0 %v4803_v31  ;;  %v5401_v31 = vld [vmem:[#allocation8 + $0x18] sm:$0xff] }
0x102c   :  { %v1496_v51 = vpop.permute.xlu0 %1495 }
0x102d   :  { %4177 = vmatmul.mubr.msk.f32.vlgmr.msra.gmra.mxu0 %vm171_vm1, %v1496_v51 }
0x102e   :  { %4191 = vmatpush3.msra.mxu0 %v4928_v19  ;;  %4198 = vmatprep.mubr.msk.f32.mxu0 %vm4796_vm0, %v4795_v20 }
0x102f   :  { %4192 = vmatprep.subr.mxu0 %v4795_v20 }
0x1030   :  { %4193 = vmatpush3.msra.mxu0 %v4934_v22  ;;  %v1601_v47 = vpop.permute.xlu1 %1600 }
0x1031   :  { %4194 = vmatprep.subr.mxu0 %v4795_v20  ;;  %4188 = vmatmul.mubr.msk.f32.vlgmr.msra.gmra.mxu1 %vm171_vm1, %v1601_v47 }
0x1032   :  { %4195 = vmatpush3.msra.mxu0 %v4942_v24  ;;  %4202 = vmatpush3.msra.mxu1 %v5000_v62 }
0x1033   :  { %4196 = vmatprep.subr.mxu0 %v4795_v20  ;;  %4203 = vmatprep.subr.mxu1 %v4795_v20 }
0x1034   :  { %4197 = vmatpush3.msra.mxu0 %v4952_v26  ;;  %4204 = vmatpush3.msra.mxu1 %v5002_v63 }
0x1035   :  { %4199 = vmatmul.mubr.msk.f32.vlgmr.msra.gmra.mxu0 %vm171_vm1, %v1601_v47  ;;  %4205 = vmatprep.subr.mxu1 %v4795_v20 }
0x1036   :  { %4206 = vmatpush3.msra.mxu1 %v5006_v0  ;;  %4212 = vmatprep.subr.mxu0 %v4795_v20 }
0x1037   :  { %4207 = vmatprep.subr.mxu1 %v4795_v20  ;;  %4213 = vmatpush3.msra.mxu0 %v4926_v18 }
0x1038   :  { %4208 = vmatpush3.msra.mxu1 %v5010_v1  ;;  %4209 = vmatprep.mubr.msk.f32.mxu1 %vm4796_vm0, %v4795_v20 }
0x1039   :  { %4214 = vmatprep.subr.mxu0 %v4795_v20  ;;  %4223 = vmatprep.subr.mxu1 %v4795_v20  ;;  %v1854_v24 = vpop.permute.xlu0 %1853 }
0x103a   :  { %4215 = vmatpush3.msra.mxu0 %v4932_v21  ;;  %4220 = vmatprep.mubr.msk.f32.mxu0 %vm4796_vm0, %v4795_v20 }
0x103b   :  { %4216 = vmatprep.subr.mxu0 %v4795_v20 }
0x103c   :  { %4217 = vmatpush3.msra.mxu0 %v4940_v23  ;;  %v1856_v23 = vmul.f32 %v5285_v50, %v1854_v24 }
0x103d   :  { %4218 = vmatprep.subr.mxu0 %v4795_v20 }
0x103e   :  { %4219 = vmatpush3.msra.mxu0 %v4948_v25  ;;  %v5291_v25 = vld [vmem:[%s5741_s3] ss:$0 sm:$0xff] }
0x103f   :  { %4234 = vmatprep.subr.mxu0 %v4795_v20 }
0x10ed   :  { %v1565_v2 = vpop.f32.mrf.mxu0 }
0x10ee   :  { %v1566_v19 = vadd.f32 %v4984_v33, %v1565_v2 }
0x10ef   :  { %v4178_v18 = vpop.f32.mrf.mxu0 }
0x10f1   :  { %v1670_v22 = vpop.f32.mrf.mxu1 }
0x10f2   :  { %v1671_v21 = vadd.f32 %v1670_v22, %v1566_v19 }
0x10f3   :  { %v4189_v26 = vpop.f32.mrf.mxu1 }
0x10f4   :  { %4558 = vtanh.f32 %v1671_v21  ;;  %v3788_v58 = vmul.f32 -1.442695, %v1671_v21 }
0x10f5   :  { %v1773_v54 = vpop.f32.mrf.mxu0 }
0x10f6   :  { %v1774_v33 = vadd.f32 %v5291_v25, %v1773_v54 }
0x10f7   :  { %v4200_v52 = vpop.f32.mrf.mxu0 }
0x10f8   :  { %v1857_v55 = vadd.f32 %v1856_v23, %v1774_v33 }
0x10fa   :  { %4560 = vtanh.f32 %v1857_v55  ;;  %v3791_v61 = vmul.f32 -1.442695, %v1857_v55 }
0x10fb   :  { %4562 = vpow2.f32 %v3788_v58 }
0x10fc   :  { %4564 = vpow2.f32 %v3791_v61 }
0x1101   :  { %v4559_v57 = vpop.eup %4558 }
0x1102   :  { %1683 = vrot.lane.b32.xlu1 %v4559_v57, %s4793_s23 }
0x1107   :  { %v4561_v59 = vpop.eup %4560 }
0x1108   :  { %1867 = vrot.lane.b32.xlu1 %v4561_v59, %s4793_s23  ;;  %v4563_v5 = vpop.eup %4562 }
0x1109   :  { %v1677_v6 = vadd.f32 1.0, %v4563_v5  ;;  %v4565_v7 = vpop.eup %4564 }
0x110a   :  { %v1861_v8 = vadd.f32 1.0, %v4565_v7 }
0x110b   :  { %4566 = vrcp.f32 %v1677_v6 }
0x110c   :  { %4568 = vrcp.f32 %v1861_v8 }
0x1118   :  { %v4567_v10 = vpop.eup %4566 }
0x1119   :  { %v4569_v13 = vpop.eup %4568  ;;  %v1681_v16 = vmul.f32 %v4567_v10, %v5233_v38 }
0x111a   :  { %v1865_v3 = vmul.f32 %v4569_v13, %v5237_v41 }
0x1174   :  { %v1684_v11 = vpop.permute.xlu1 %1683 }
0x1175   :  { %v1686_v12 = vmul.f32 %v4567_v10, %v1684_v11 }
0x1177   :  { %1688 = vrot.lane.b32.xlu0 %v1686_v12, %s4794_s24 }
0x117a   :  { %v1868_v14 = vpop.permute.xlu1 %1867 }
0x117b   :  { %v1870_v15 = vmul.f32 %v4569_v13, %v1868_v14 }
0x117d   :  { %1872 = vrot.lane.b32.xlu1 %v1870_v15, %s4794_s24 }
0x11e9   :  { %v1689_v17 = vpop.permute.xlu0 %1688 }
0x11ea   :  { %v5299_v27 = vadd.f32 %v1689_v17, %v1681_v16 }
0x11ec   :  { %4570 = vtanh.f32 %v5299_v27 }
0x11ef   :  { %v1873_v28 = vpop.permute.xlu1 %1872 }
0x11f0   :  { %v5303_v29 = vadd.f32 %v1873_v28, %v1865_v3 }
0x11f2   :  { %4572 = vtanh.f32 %v5303_v29 }
0x11f9   :  { %v4571_v4 = vpop.eup %4570 }
0x11fa   :  { %1694 = vrot.lane.b32.xlu0 %v4571_v4, %s4793_s23 }
0x11ff   :  { %v4573_v30 = vpop.eup %4572 }
0x1200   :  { %1878 = vrot.lane.b32.xlu1 %v4573_v30, %s4793_s23 }
0x126c   :  { %v1695_v32 = vpop.permute.xlu0 %1694 }
0x126d   :  { %v5308_v34 = vmul.f32 %v4567_v10, %v1695_v32  ;;  %v5407_v32 = vld [vmem:[#allocation8 + $0x10] sm:$0xff] }
0x126f   :  { %1778 = vrot.lane.b32.xlu0 %v5308_v34, %s4794_s24 }
0x1272   :  { %v1879_v35 = vpop.permute.xlu1 %1878 }
0x1273   :  { %v1881_v36 = vmul.f32 %v4569_v13, %v1879_v35  ;;  %2136 = vperm.xlu0 %4469, %v4664_v37   ;;  %v5415_v35 = vld [vmem:[#allocation8 + $0x8] sm:$0xff] }
0x1275   :  { %1883 = vrot.lane.b32.xlu1 %v1881_v36, %s4794_s24  ;;  %v5421_v36 = vld [vmem:[#allocation8] sm:$0xff] }
0x12e1   :  { %v1779_v38 = vpop.permute.xlu0 %1778 }
0x12e2   :  { %4210 = vmatmul.mubr.msk.f32.vlgmr.msra.gmra.mxu1 %vm171_vm1, %v1779_v38 }
0x12e3   :  { %4224 = vmatpush3.msra.mxu1 %v5317_v39  ;;  %4231 = vmatprep.mubr.msk.f32.mxu1 %vm4796_vm0, %v4795_v20 }
0x12e4   :  { %4225 = vmatprep.subr.mxu1 %v4795_v20 }
0x12e5   :  { %4226 = vmatpush3.msra.mxu1 %v5323_v40 }
0x12e6   :  { %4227 = vmatprep.subr.mxu1 %v4795_v20 }
0x12e7   :  { %v1884_v41 = vpop.permute.xlu1 %1883  ;;  %4228 = vmatpush3.msra.mxu1 %v5327_v42 }
0x12e8   :  { %4221 = vmatmul.mubr.msk.f32.vlgmr.msra.gmra.mxu0 %vm171_vm1, %v1884_v41  ;;  %4229 = vmatprep.subr.mxu1 %v4795_v20 }
0x12e9   :  { %4230 = vmatpush3.msra.mxu1 %v5332_v44  ;;  %4235 = vmatpush3.msra.mxu0 %v5000_v62  ;;  %v5350_v62 = vld [vmem:[#allocation6 + $0x10] sm:$0xff] }
0x12ea   :  { %4232 = vmatmul.mubr.msk.f32.vlgmr.msra.gmra.mxu1 %vm171_vm1, %v1884_v41  ;;  %4236 = vmatprep.subr.mxu0 %v4795_v20 }
0x12eb   :  { %4237 = vmatpush3.msra.mxu0 %v5002_v63  ;;  %4245 = vmatprep.subr.mxu1 %v4795_v20  ;;  %v5355_v63 = vld [vmem:[#allocation6 + $0x8] sm:$0xff] }
0x12ec   :  { %4238 = vmatprep.subr.mxu0 %v4795_v20  ;;  %4246 = vmatpush3.msra.mxu1 %v5341_v45 }
0x12ed   :  { %4239 = vmatpush3.msra.mxu0 %v5006_v0  ;;  %4247 = vmatprep.subr.mxu1 %v4795_v20  ;;  %v5361_v0 = vld [vmem:[#allocation6] sm:$0xff] }
0x12ee   :  { %4240 = vmatprep.subr.mxu0 %v4795_v20  ;;  %4242 = vmatprep.mubr.msk.f32.mxu0 %vm4796_vm0, %v4795_v20  ;;  %v2137_v46 = vpop.permute.xlu0 %2136 }
0x12ef   :  { %4241 = vmatpush3.msra.mxu0 %v5010_v1  ;;  %4248 = vmatpush3.msra.mxu1 %v5350_v62  ;;  %v2139_v18 = vmul.f32 %v5285_v50, %v2137_v46 }
0x12f0   :  { %4256 = vmatprep.subr.mxu0 %v4795_v20  ;;  %4249 = vmatprep.subr.mxu1 %v4795_v20 }
0x12f1   :  { %4250 = vmatpush3.msra.mxu1 %v5355_v63  ;;  %4253 = vmatprep.mubr.msk.f32.mxu1 %vm4796_vm0, %v4795_v20 }
0x12f2   :  { %4251 = vmatprep.subr.mxu1 %v4795_v20 }
0x12f3   :  { %4252 = vmatpush3.msra.mxu1 %v5361_v0 }
0x12f4   :  { %4267 = vmatprep.subr.mxu1 %v4795_v20 }
0x13a2   :  { %v1848_v1 = vpop.f32.mrf.mxu1 }
0x13a3   :  { %v1849_v51 = vadd.f32 %v5368_v49, %v1848_v1 }
0x13a4   :  { %v4211_v43 = vpop.f32.mrf.mxu1 }
0x13a8   :  { %v1953_v47 = vpop.f32.mrf.mxu0 }
0x13a9   :  { %v1954_v2 = vadd.f32 %v1953_v47, %v1849_v51 }
0x13aa   :  { %v4222_v19 = vpop.f32.mrf.mxu0  ;;  %v2056_v22 = vpop.f32.mrf.mxu1 }
0x13ab   :  { %4574 = vtanh.f32 %v1954_v2  ;;  %v2057_v24 = vadd.f32 %v5291_v25, %v2056_v22  ;;  %v3793_v33 = vmul.f32 -1.442695, %v1954_v2 }
0x13ac   :  { %v4233_v21 = vpop.f32.mrf.mxu1 }
0x13ad   :  { %v2140_v26 = vadd.f32 %v2139_v18, %v2057_v24 }
0x13af   :  { %4576 = vtanh.f32 %v2140_v26  ;;  %v3796_v52 = vmul.f32 -1.442695, %v2140_v26 }
0x13b0   :  { %4578 = vpow2.f32 %v3793_v33 }
0x13b1   :  { %4580 = vpow2.f32 %v3796_v52  ;;  %v5432_v52 = vld [vmem:[#allocation9 + $0x18] sm:$0xff] }
0x13b8   :  { %v4575_v23 = vpop.eup %4574 }
0x13b9   :  { %1966 = vrot.lane.b32.xlu1 %v4575_v23, %s4793_s23 }
0x13bc   :  { %v4577_v54 = vpop.eup %4576 }
0x13bd   :  { %2150 = vrot.lane.b32.xlu1 %v4577_v54, %s4793_s23  ;;  %v4579_v55 = vpop.eup %4578 }
0x13be   :  { %v1960_v50 = vadd.f32 1.0, %v4579_v55  ;;  %v4581_v57 = vpop.eup %4580  ;;  %v5434_v55 = vld [vmem:[#allocation9 + $0x10] sm:$0xff] }
0x13bf   :  { %v2144_v59 = vadd.f32 1.0, %v4581_v57  ;;  %v5442_v57 = vld [vmem:[#allocation9] sm:$0xff] }
0x13c0   :  { %4582 = vrcp.f32 %v1960_v50  ;;  %v5438_v50 = vld [vmem:[#allocation9 + $0x8] sm:$0xff] }
0x13c1   :  { %4584 = vrcp.f32 %v2144_v59 }
0x13cd   :  { %v4583_v58 = vpop.eup %4582 }
0x13ce   :  { %v4585_v6 = vpop.eup %4584  ;;  %v1964_v10 = vmul.f32 %v4583_v58, %v5299_v27 }
0x13cf   :  { %v2148_v13 = vmul.f32 %v4585_v6, %v5303_v29 }
0x142b   :  { %v1967_v61 = vpop.permute.xlu1 %1966 }
0x142c   :  { %v1969_v5 = vmul.f32 %v4583_v58, %v1967_v61 }
0x142e   :  { %1971 = vrot.lane.b32.xlu0 %v1969_v5, %s4794_s24 }
0x142f   :  { %v2151_v7 = vpop.permute.xlu1 %2150 }
0x1430   :  { %v2153_v8 = vmul.f32 %v4585_v6, %v2151_v7 }
0x1432   :  { %2155 = vrot.lane.b32.xlu1 %v2153_v8, %s4794_s24 }
0x14a0   :  { %v1972_v11 = vpop.permute.xlu0 %1971 }
0x14a1   :  { %v5378_v12 = vadd.f32 %v1972_v11, %v1964_v10 }
0x14a3   :  { %4586 = vtanh.f32 %v5378_v12 }
0x14a4   :  { %v2156_v14 = vpop.permute.xlu1 %2155 }
0x14a5   :  { %v5382_v15 = vadd.f32 %v2156_v14, %v2148_v13 }
0x14a7   :  { %4588 = vtanh.f32 %v5382_v15 }
0x14b0   :  { %v4587_v16 = vpop.eup %4586 }
0x14b1   :  { %1977 = vrot.lane.b32.xlu0 %v4587_v16, %s4793_s23 }
0x14b4   :  { %v4589_v17 = vpop.eup %4588 }
0x14b5   :  { %2161 = vrot.lane.b32.xlu1 %v4589_v17, %s4793_s23 }
0x1523   :  { %v1978_v3 = vpop.permute.xlu0 %1977 }
0x1524   :  { %v5387_v27 = vmul.f32 %v4583_v58, %v1978_v3 }
0x1526   :  { %2061 = vrot.lane.b32.xlu0 %v5387_v27, %s4794_s24 }
0x1527   :  { %v2162_v28 = vpop.permute.xlu1 %2161 }
0x1528   :  { %v2164_v4 = vmul.f32 %v4585_v6, %v2162_v28  ;;  %v5478_v6 = vld [vmem:[%s5748_s10] ss:$0 sm:$0xff] }
0x152a   :  { %2166 = vrot.lane.b32.xlu1 %v2164_v4, %s4794_s24 }
0x1598   :  { %v2062_v29 = vpop.permute.xlu0 %2061 }
0x1599   :  { %4243 = vmatmul.mubr.msk.f32.vlgmr.msra.gmra.mxu0 %vm171_vm1, %v2062_v29 }
0x159a   :  { %4257 = vmatpush3.msra.mxu0 %v5317_v39  ;;  %4264 = vmatprep.mubr.msk.f32.mxu0 %vm4796_vm0, %v4795_v20 }
0x159b   :  { %4258 = vmatprep.subr.mxu0 %v4795_v20 }
0x159c   :  { %4259 = vmatpush3.msra.mxu0 %v5323_v40  ;;  %v2167_v30 = vpop.permute.xlu1 %2166 }
0x159d   :  { %4260 = vmatprep.subr.mxu0 %v4795_v20  ;;  %4254 = vmatmul.mubr.msk.f32.vlgmr.msra.gmra.mxu1 %vm171_vm1, %v2167_v30 }
0x159e   :  { %4261 = vmatpush3.msra.mxu0 %v5327_v42  ;;  %4268 = vmatpush3.msra.mxu1 %v5401_v31 }
0x159f   :  { %4262 = vmatprep.subr.mxu0 %v4795_v20  ;;  %4269 = vmatprep.subr.mxu1 %v4795_v20 }
0x15a0   :  { %4263 = vmatpush3.msra.mxu0 %v5332_v44  ;;  %4270 = vmatpush3.msra.mxu1 %v5407_v32 }
0x15a1   :  { %4265 = vmatmul.mubr.msk.f32.vlgmr.msra.gmra.mxu0 %vm171_vm1, %v2167_v30  ;;  %4278 = vmatprep.subr.mxu0 %v4795_v20 }
0x15a2   :  { %4271 = vmatprep.subr.mxu1 %v4795_v20  ;;  %4275 = vmatprep.mubr.msk.f32.mxu1 %vm4796_vm0, %v4795_v20 }
0x15a3   :  { %4272 = vmatpush3.msra.mxu1 %v5415_v35  ;;  %4286 = vmatprep.mubr.msk.f32.mxu0 %vm4796_vm0, %v4795_v20 }
0x15a4   :  { %4273 = vmatprep.subr.mxu1 %v4795_v20  ;;  %4279 = vmatpush3.msra.mxu0 %v5432_v52 }
0x15a5   :  { %4274 = vmatpush3.msra.mxu1 %v5421_v36  ;;  %4280 = vmatprep.subr.mxu0 %v4795_v20 }
0x15a6   :  { %4289 = vmatprep.subr.mxu1 %v4795_v20  ;;  %4281 = vmatpush3.msra.mxu0 %v5434_v55 }
0x15a7   :  { %4282 = vmatprep.subr.mxu0 %v4795_v20 }
0x15a8   :  { %4283 = vmatpush3.msra.mxu0 %v5438_v50 }
0x15a9   :  { %4284 = vmatprep.subr.mxu0 %v4795_v20 }
0x15aa   :  { %4285 = vmatpush3.msra.mxu0 %v5442_v57 }
0x15ab   :  { %4300 = vmatprep.subr.mxu0 %v4795_v20 }
0x1659   :  { %v2131_v37 = vpop.f32.mrf.mxu0 }
0x165a   :  { %v2132_v41 = vadd.f32 %v5368_v49, %v2131_v37 }
0x165b   :  { %v4244_v38 = vpop.f32.mrf.mxu0 }
0x165d   :  { %v2236_v1 = vpop.f32.mrf.mxu1 }
0x165e   :  { %v2237_v43 = vadd.f32 %v2236_v1, %v2132_v41 }
0x165f   :  { %v4255_v46 = vpop.f32.mrf.mxu1 }
0x1660   :  { %4590 = vtanh.f32 %v2237_v43  ;;  %v3798_v18 = vmul.f32 -1.442695, %v2237_v43 }
0x1661   :  { %v2339_v51 = vpop.f32.mrf.mxu0 }
0x1662   :  { %4592 = vpow2.f32 %v3798_v18  ;;  %v2340_v10 = vadd.f32 %v5291_v25, %v2339_v51 }
0x1663   :  { %v4266_v47 = vpop.f32.mrf.mxu0 }
0x166d   :  { %v4591_v2 = vpop.eup %4590 }
0x166e   :  { %2249 = vrot.lane.b32.xlu0 %v4591_v2, %s4793_s23 }
0x166f   :  { %v4593_v19 = vpop.eup %4592 }
0x1670   :  { %v2243_v22 = vadd.f32 1.0, %v4593_v19 }
0x1672   :  { %4594 = vrcp.f32 %v2243_v22 }
0x167f   :  { %v4595_v24 = vpop.eup %4594 }
0x1680   :  { %v2247_v23 = vmul.f32 %v4595_v24, %v5378_v12 }
0x16e0   :  { %v2250_v21 = vpop.permute.xlu0 %2249 }
0x16e1   :  { %v2252_v26 = vmul.f32 %v4595_v24, %v2250_v21 }
0x16e3   :  { %2254 = vrot.lane.b32.xlu1 %v2252_v26, %s4794_s24 }
0x1755   :  { %v2255_v54 = vpop.permute.xlu1 %2254 }
0x1756   :  { %v5429_v33 = vadd.f32 %v2255_v54, %v2247_v23 }
0x1758   :  { %4596 = vtanh.f32 %v5429_v33 }
0x1765   :  { %v4597_v59 = vpop.eup %4596 }
0x1766   :  { %2260 = vrot.lane.b32.xlu0 %v4597_v59, %s4793_s23 }
0x17d8   :  { %v2261_v58 = vpop.permute.xlu0 %2260 }
0x17d9   :  { %v5449_v61 = vmul.f32 %v4595_v24, %v2261_v58 }
0x17db   :  { %2344 = vrot.lane.b32.xlu1 %v5449_v61, %s4794_s24 }
0x184d   :  { %v2345_v5 = vpop.permute.xlu1 %2344 }
0x184e   :  { %4276 = vmatmul.mubr.msk.f32.vlgmr.msra.gmra.mxu1 %vm171_vm1, %v2345_v5  ;;  %4287 = vmatmul.mubr.msk.f32.vlgmr.msra.gmra.mxu0 %vm171_vm1, %v2345_v5 }
0x184f   :  { %4290 = vmatpush3.msra.mxu1 %v5341_v45  ;;  %4301 = vmatpush3.msra.mxu0 %v5317_v39 }
0x1850   :  { %4291 = vmatprep.subr.mxu1 %v4795_v20  ;;  %4302 = vmatprep.subr.mxu0 %v4795_v20 }
0x1851   :  { %4292 = vmatpush3.msra.mxu1 %v5350_v62  ;;  %4303 = vmatpush3.msra.mxu0 %v5323_v40 }
0x1852   :  { %4293 = vmatprep.subr.mxu1 %v4795_v20  ;;  %4304 = vmatprep.subr.mxu0 %v4795_v20 }
0x1853   :  { %4294 = vmatpush3.msra.mxu1 %v5355_v63  ;;  %4305 = vmatpush3.msra.mxu0 %v5327_v42 }
0x1854   :  { %4295 = vmatprep.subr.mxu1 %v4795_v20  ;;  %4306 = vmatprep.subr.mxu0 %v4795_v20 }
0x1855   :  { %4307 = vmatpush3.msra.mxu0 %v5332_v44  ;;  %4308 = vmatprep.mubr.msk.f32.mxu0 %vm4796_vm0, %v4795_v20 }
0x1856   :  { %4296 = vmatpush3.msra.mxu1 %v5361_v0  ;;  %4297 = vmatprep.mubr.msk.f32.mxu1 %vm4796_vm0, %v4795_v20 }
0x1857   :  { %4311 = vmatprep.subr.mxu1 %v4795_v20  ;;  %4322 = vmatprep.subr.mxu0 %v4795_v20 }
0x190e   :  { %v2414_v7 = vpop.f32.mrf.mxu1  ;;  %v2490_v8 = vpop.f32.mrf.mxu0 }
0x190f   :  { %v2491_v11 = vadd.f32 %v5478_v6, %v2490_v8 }
0x1910   :  { %v4277_v12 = vpop.f32.mrf.mxu1  ;;  %v4288_v13 = vpop.f32.mrf.mxu0 }
0x1911   :  { %v2494_v14 = vadd.f32 %v2491_v11, %v2340_v10 }
0x1913   :  { %4598 = vtanh.f32 %v2494_v14  ;;  %v3803_v17 = vmul.f32 -1.442695, %v2494_v14 }
0x1915   :  { %4600 = vpow2.f32 %v3803_v17 }
0x1920   :  { %v4599_v16 = vpop.eup %4598 }
0x1921   :  { %2504 = vrot.lane.b32.xlu0 %v4599_v16, %s4793_s23 }
0x1922   :  { %v4601_v3 = vpop.eup %4600 }
0x1923   :  { %v2498_v28 = vadd.f32 1.0, %v4601_v3 }
0x1925   :  { %4602 = vrcp.f32 %v2498_v28 }
0x1932   :  { %v4603_v4 = vpop.eup %4602 }
0x1933   :  { %v2502_v37 = vmul.f32 %v4603_v4, %v5382_v15  ;;  %v2415_v15 = vadd.f32 %v5368_v49, %v2414_v7 }
0x1993   :  { %v2505_v29 = vpop.permute.xlu0 %2504 }
0x1994   :  { %v2507_v30 = vmul.f32 %v4603_v4, %v2505_v29 }
0x1996   :  { %2509 = vrot.lane.b32.xlu1 %v2507_v30, %s4794_s24 }
0x1a08   :  { %v2510_v38 = vpop.permute.xlu1 %2509 }
0x1a09   :  { %v5485_v41 = vadd.f32 %v2510_v38, %v2502_v37 }
0x1a0b   :  { %4604 = vtanh.f32 %v5485_v41 }
0x1a18   :  { %v4605_v1 = vpop.eup %4604 }
0x1a19   :  { %2515 = vrot.lane.b32.xlu0 %v4605_v1, %s4793_s23 }
0x1a8b   :  { %v2516_v43 = vpop.permute.xlu0 %2515 }
0x1a8c   :  { %v2518_v46 = vmul.f32 %v4603_v4, %v2516_v43 }
0x1a8e   :  { %2520 = vrot.lane.b32.xlu1 %v2518_v46, %s4794_s24 }
0x1b00   :  { %v2521_v51 = vpop.permute.xlu1 %2520 }
0x1b01   :  { %4298 = vmatmul.mubr.msk.f32.vlgmr.msra.gmra.mxu1 %vm171_vm1, %v2521_v51  ;;  %4309 = vmatmul.mubr.msk.f32.vlgmr.msra.gmra.mxu0 %vm171_vm1, %v2521_v51 }
0x1b02   :  { %4312 = vmatpush3.msra.mxu1 %v5401_v31  ;;  %4323 = vmatpush3.msra.mxu0 %v5432_v52 }
0x1b03   :  { %4313 = vmatprep.subr.mxu1 %v4795_v20  ;;  %4324 = vmatprep.subr.mxu0 %v4795_v20 }
0x1b04   :  { %4314 = vmatpush3.msra.mxu1 %v5407_v32  ;;  %4325 = vmatpush3.msra.mxu0 %v5434_v55 }
0x1b05   :  { %4315 = vmatprep.subr.mxu1 %v4795_v20  ;;  %4326 = vmatprep.subr.mxu0 %v4795_v20 }
0x1b06   :  { %4316 = vmatpush3.msra.mxu1 %v5415_v35  ;;  %4327 = vmatpush3.msra.mxu0 %v5438_v50 }
0x1b07   :  { %4317 = vmatprep.subr.mxu1 %v4795_v20  ;;  %4328 = vmatprep.subr.mxu0 %v4795_v20 }
0x1b08   :  { %4318 = vmatpush3.msra.mxu1 %v5421_v36  ;;  %4319 = vmatprep.mubr.msk.f32.mxu1 %vm4796_vm0, %v4795_v20 }
0x1b09   :  { %4329 = vmatpush3.msra.mxu0 %v5442_v57  ;;  %4330 = vmatprep.mubr.msk.f32.mxu0 %vm4796_vm0, %v4795_v20 }
0x1b0a   :  { %4333 = vmatprep.subr.mxu1 %v4795_v20  ;;  %4344 = vmatprep.subr.mxu0 %v4795_v20 }
0x1bc1   :  { %v2590_v47 = vpop.f32.mrf.mxu1  ;;  %v2693_v2 = vpop.f32.mrf.mxu0 }
0x1bc2   :  { %v2591_v18 = vadd.f32 %v2590_v47, %v2415_v15  ;;  %v2694_v16 = vadd.f32 %v5291_v25, %v2693_v2 }
0x1bc3   :  { %v4299_v19 = vpop.f32.mrf.mxu1  ;;  %v4310_v22 = vpop.f32.mrf.mxu0 }
0x1bc4   :  { %4606 = vtanh.f32 %v2591_v18  ;;  %v3805_v21 = vmul.f32 -1.442695, %v2591_v18 }
0x1bc6   :  { %4608 = vpow2.f32 %v3805_v21 }
0x1bd1   :  { %v4607_v24 = vpop.eup %4606 }
0x1bd2   :  { %2603 = vrot.lane.b32.xlu0 %v4607_v24, %s4793_s23 }
0x1bd3   :  { %v4609_v26 = vpop.eup %4608 }
0x1bd4   :  { %v2597_v23 = vadd.f32 1.0, %v4609_v26 }
0x1bd6   :  { %4610 = vrcp.f32 %v2597_v23 }
0x1be3   :  { %v4611_v54 = vpop.eup %4610 }
0x1be4   :  { %v2601_v5 = vmul.f32 %v4611_v54, %v5429_v33 }
0x1c44   :  { %v2604_v59 = vpop.permute.xlu0 %2603 }
0x1c45   :  { %v2606_v58 = vmul.f32 %v4611_v54, %v2604_v59 }
0x1c47   :  { %2608 = vrot.lane.b32.xlu1 %v2606_v58, %s4794_s24 }
0x1cb9   :  { %v2609_v7 = vpop.permute.xlu1 %2608 }
0x1cba   :  { %v5516_v8 = vadd.f32 %v2609_v7, %v2601_v5 }
0x1cbc   :  { %4612 = vtanh.f32 %v5516_v8 }
0x1cc9   :  { %v4613_v10 = vpop.eup %4612 }
0x1cca   :  { %2614 = vrot.lane.b32.xlu0 %v4613_v10, %s4793_s23 }
0x1d3c   :  { %v2615_v11 = vpop.permute.xlu0 %2614 }
0x1d3d   :  { %v5520_v12 = vmul.f32 %v4611_v54, %v2615_v11 }
0x1d3f   :  { %2698 = vrot.lane.b32.xlu1 %v5520_v12, %s4794_s24 }
0x1db1   :  { %v2699_v13 = vpop.permute.xlu1 %2698 }
0x1db2   :  { %4320 = vmatmul.mubr.msk.f32.vlgmr.msra.gmra.mxu1 %vm171_vm1, %v2699_v13  ;;  %4331 = vmatmul.mubr.msk.f32.vlgmr.msra.gmra.mxu0 %vm171_vm1, %v2699_v13 }
0x1db3   :  { %4334 = vmatpush3.msra.mxu1 %v5341_v45  ;;  %4345 = vmatpush3.msra.mxu0 %v5317_v39 }
0x1db4   :  { %4335 = vmatprep.subr.mxu1 %v4795_v20  ;;  %4346 = vmatprep.subr.mxu0 %v4795_v20 }
0x1db5   :  { %4336 = vmatpush3.msra.mxu1 %v5350_v62  ;;  %4347 = vmatpush3.msra.mxu0 %v5323_v40 }
0x1db6   :  { %4337 = vmatprep.subr.mxu1 %v4795_v20  ;;  %4348 = vmatprep.subr.mxu0 %v4795_v20 }
0x1db7   :  { %4338 = vmatpush3.msra.mxu1 %v5355_v63  ;;  %4349 = vmatpush3.msra.mxu0 %v5327_v42 }
0x1db8   :  { %4339 = vmatprep.subr.mxu1 %v4795_v20  ;;  %4350 = vmatprep.subr.mxu0 %v4795_v20 }
0x1db9   :  { %4351 = vmatpush3.msra.mxu0 %v5332_v44  ;;  %4352 = vmatprep.mubr.msk.f32.mxu0 %vm4796_vm0, %v4795_v20 }
0x1dba   :  { %4340 = vmatpush3.msra.mxu1 %v5361_v0  ;;  %4341 = vmatprep.mubr.msk.f32.mxu1 %vm4796_vm0, %v4795_v20 }
0x1dbb   :  { %4355 = vmatprep.subr.mxu1 %v4795_v20  ;;  %4366 = vmatprep.subr.mxu0 %v4795_v20 }
0x1e72   :  { %v2768_v33 = vpop.f32.mrf.mxu1  ;;  %v2838_v14 = vpop.f32.mrf.mxu0 }
0x1e73   :  { %v2839_v17 = vadd.f32 %v5478_v6, %v2838_v14 }
0x1e74   :  { %v4321_v3 = vpop.f32.mrf.mxu1  ;;  %v4332_v28 = vpop.f32.mrf.mxu0 }
0x1e75   :  { %v2842_v4 = vadd.f32 %v2839_v17, %v2694_v16 }
0x1e77   :  { %4614 = vtanh.f32 %v2842_v4  ;;  %v3809_v30 = vmul.f32 -1.442695, %v2842_v4 }
0x1e79   :  { %4616 = vpow2.f32 %v3809_v30 }
0x1e84   :  { %v4615_v29 = vpop.eup %4614 }
0x1e85   :  { %2852 = vrot.lane.b32.xlu0 %v4615_v29, %s4793_s23 }
0x1e86   :  { %v4617_v37 = vpop.eup %4616 }
0x1e87   :  { %v2846_v38 = vadd.f32 1.0, %v4617_v37 }
0x1e89   :  { %4618 = vrcp.f32 %v2846_v38 }
0x1e96   :  { %v4619_v1 = vpop.eup %4618 }
0x1e97   :  { %v2850_v51 = vmul.f32 %v4619_v1, %v5485_v41  ;;  %v2769_v41 = vadd.f32 %v5368_v49, %v2768_v33 }
0x1ef7   :  { %v2853_v43 = vpop.permute.xlu0 %2852 }
0x1ef8   :  { %v2855_v46 = vmul.f32 %v4619_v1, %v2853_v43 }
0x1efa   :  { %2857 = vrot.lane.b32.xlu1 %v2855_v46, %s4794_s24 }
0x1f6c   :  { %v2858_v15 = vpop.permute.xlu1 %2857 }
0x1f6d   :  { %v5551_v47 = vadd.f32 %v2858_v15, %v2850_v51 }
0x1f6f   :  { %4620 = vtanh.f32 %v5551_v47 }
0x1f7c   :  { %v4621_v2 = vpop.eup %4620 }
0x1f7d   :  { %2863 = vrot.lane.b32.xlu0 %v4621_v2, %s4793_s23 }
0x1fef   :  { %v2864_v18 = vpop.permute.xlu0 %2863 }
0x1ff0   :  { %v2866_v19 = vmul.f32 %v4619_v1, %v2864_v18 }
0x1ff2   :  { %2868 = vrot.lane.b32.xlu1 %v2866_v19, %s4794_s24 }
0x2064   :  { %v2869_v22 = vpop.permute.xlu1 %2868 }
0x2065   :  { %4342 = vmatmul.mubr.msk.f32.vlgmr.msra.gmra.mxu1 %vm171_vm1, %v2869_v22  ;;  %4353 = vmatmul.mubr.msk.f32.vlgmr.msra.gmra.mxu0 %vm171_vm1, %v2869_v22 }
0x2066   :  { %4356 = vmatpush3.msra.mxu1 %v5401_v31  ;;  %4367 = vmatpush3.msra.mxu0 %v5432_v52 }
0x2067   :  { %4357 = vmatprep.subr.mxu1 %v4795_v20  ;;  %4368 = vmatprep.subr.mxu0 %v4795_v20 }
0x2068   :  { %4358 = vmatpush3.msra.mxu1 %v5407_v32  ;;  %4369 = vmatpush3.msra.mxu0 %v5434_v55 }
0x2069   :  { %4359 = vmatprep.subr.mxu1 %v4795_v20  ;;  %4370 = vmatprep.subr.mxu0 %v4795_v20 }
0x206a   :  { %4360 = vmatpush3.msra.mxu1 %v5415_v35  ;;  %4371 = vmatpush3.msra.mxu0 %v5438_v50 }
0x206b   :  { %4361 = vmatprep.subr.mxu1 %v4795_v20  ;;  %4372 = vmatprep.subr.mxu0 %v4795_v20 }
0x206c   :  { %4362 = vmatpush3.msra.mxu1 %v5421_v36  ;;  %4363 = vmatprep.mubr.msk.f32.mxu1 %vm4796_vm0, %v4795_v20 }
0x206d   :  { %4373 = vmatpush3.msra.mxu0 %v5442_v57  ;;  %4374 = vmatprep.mubr.msk.f32.mxu0 %vm4796_vm0, %v4795_v20 }
0x206e   :  { %4377 = vmatprep.subr.mxu1 %v4795_v20  ;;  %4388 = vmatprep.subr.mxu0 %v4795_v20 }
0x2125   :  { %v2938_v24 = vpop.f32.mrf.mxu1  ;;  %v3041_v21 = vpop.f32.mrf.mxu0 }
0x2126   :  { %v2939_v26 = vadd.f32 %v2938_v24, %v2769_v41 }
0x2127   :  { %v4343_v23 = vpop.f32.mrf.mxu1  ;;  %v4354_v54 = vpop.f32.mrf.mxu0 }
0x2128   :  { %4622 = vtanh.f32 %v2939_v26  ;;  %v3811_v58 = vmul.f32 -1.442695, %v2939_v26 }
0x212a   :  { %4624 = vpow2.f32 %v3811_v58 }
0x2135   :  { %v4623_v59 = vpop.eup %4622 }
0x2136   :  { %2951 = vrot.lane.b32.xlu0 %v4623_v59, %s4793_s23 }
0x2137   :  { %v4625_v5 = vpop.eup %4624 }
0x2138   :  { %v2945_v7 = vadd.f32 1.0, %v4625_v5 }
0x213a   :  { %4626 = vrcp.f32 %v2945_v7 }
0x2147   :  { %v4627_v10 = vpop.eup %4626 }
0x2148   :  { %v2949_v33 = vmul.f32 %v4627_v10, %v5516_v8 }
0x21a8   :  { %v2952_v11 = vpop.permute.xlu0 %2951 }
0x21a9   :  { %v2954_v13 = vmul.f32 %v4627_v10, %v2952_v11 }
0x21ab   :  { %2956 = vrot.lane.b32.xlu1 %v2954_v13, %s4794_s24 }
0x221d   :  { %v2957_v14 = vpop.permute.xlu1 %2956 }
0x221e   :  { %v5582_v16 = vadd.f32 %v2957_v14, %v2949_v33 }
0x2220   :  { %4628 = vtanh.f32 %v5582_v16 }
0x222d   :  { %v4629_v17 = vpop.eup %4628 }
0x222e   :  { %2962 = vrot.lane.b32.xlu0 %v4629_v17, %s4793_s23 }
0x22a0   :  { %v2963_v3 = vpop.permute.xlu0 %2962 }
0x22a1   :  { %v5586_v28 = vmul.f32 %v4627_v10, %v2963_v3 }
0x22a3   :  { %3046 = vrot.lane.b32.xlu1 %v5586_v28, %s4794_s24 }
0x2315   :  { %v3047_v4 = vpop.permute.xlu1 %3046 }
0x2316   :  { %4364 = vmatmul.mubr.msk.f32.vlgmr.msra.gmra.mxu1 %vm171_vm1, %v3047_v4  ;;  %4375 = vmatmul.mubr.msk.f32.vlgmr.msra.gmra.mxu0 %vm171_vm1, %v3047_v4 }
0x2317   :  { %4378 = vmatpush3.msra.mxu1 %v5341_v45  ;;  %4389 = vmatpush3.msra.mxu0 %v5317_v39 }
0x2318   :  { %4379 = vmatprep.subr.mxu1 %v4795_v20  ;;  %4390 = vmatprep.subr.mxu0 %v4795_v20 }
0x2319   :  { %4380 = vmatpush3.msra.mxu1 %v5350_v62  ;;  %4391 = vmatpush3.msra.mxu0 %v5323_v40 }
0x231a   :  { %4381 = vmatprep.subr.mxu1 %v4795_v20  ;;  %4392 = vmatprep.subr.mxu0 %v4795_v20 }
0x231b   :  { %4382 = vmatpush3.msra.mxu1 %v5355_v63  ;;  %4393 = vmatpush3.msra.mxu0 %v5327_v42  ;;  %v3042_v42 = vadd.f32 %v5291_v25, %v3041_v21 }
0x231c   :  { %4383 = vmatprep.subr.mxu1 %v4795_v20  ;;  %4394 = vmatprep.subr.mxu0 %v4795_v20 }
0x231d   :  { %4395 = vmatpush3.msra.mxu0 %v5332_v44  ;;  %4396 = vmatprep.mubr.msk.f32.mxu0 %vm4796_vm0, %v4795_v20 }
0x231e   :  { %4384 = vmatpush3.msra.mxu1 %v5361_v0  ;;  %4385 = vmatprep.mubr.msk.f32.mxu1 %vm4796_vm0, %v4795_v20 }
0x231f   :  { %4399 = vmatprep.subr.mxu1 %v4795_v20  ;;  %4410 = vmatprep.subr.mxu0 %v4795_v20 }
0x23d6   :  { %v3116_v39 = vpop.f32.mrf.mxu1  ;;  %v3186_v40 = vpop.f32.mrf.mxu0 }
0x23d7   :  { %v3187_v8 = vadd.f32 %v5478_v6, %v3186_v40 }
0x23d8   :  { %v4365_v29 = vpop.f32.mrf.mxu1  ;;  %v4376_v44 = vpop.f32.mrf.mxu0 }
0x23d9   :  { %v3190_v30 = vadd.f32 %v3187_v8, %v3042_v42 }
0x23db   :  { %4630 = vtanh.f32 %v3190_v30  ;;  %v3815_v38 = vmul.f32 -1.442695, %v3190_v30 }
0x23dd   :  { %4632 = vpow2.f32 %v3815_v38  ;;  %v3762_v38 = vld [vmem:[%s5745_s7] ss:$0 sm:$0xff]  ;;  %s4805_s7 = smov 2  }
0x23e8   :  { %v4631_v37 = vpop.eup %4630 }
0x23e9   :  { %3200 = vrot.lane.b32.xlu0 %v4631_v37, %s4793_s23 }
0x23ea   :  { %v4633_v1 = vpop.eup %4632 }
0x23eb   :  { %v3194_v43 = vadd.f32 1.0, %v4633_v1 }
0x23ed   :  { %4634 = vrcp.f32 %v3194_v43 }
0x23fa   :  { %v4635_v46 = vpop.eup %4634 }
0x23fb   :  { %v3198_v2 = vmul.f32 %v4635_v46, %v5551_v47 }
0x245b   :  { %v3201_v51 = vpop.permute.xlu0 %3200 }
0x245c   :  { %v3203_v15 = vmul.f32 %v4635_v46, %v3201_v51 }
0x245e   :  { %3205 = vrot.lane.b32.xlu1 %v3203_v15, %s4794_s24 }
0x24d0   :  { %v3206_v18 = vpop.permute.xlu1 %3205 }
0x24d1   :  { %v5617_v19 = vadd.f32 %v3206_v18, %v3198_v2 }
0x24d3   :  { %4636 = vtanh.f32 %v5617_v19 }
0x24e0   :  { %v4637_v22 = vpop.eup %4636 }
0x24e1   :  { %3211 = vrot.lane.b32.xlu0 %v4637_v22, %s4793_s23 }
0x2553   :  { %v3212_v41 = vpop.permute.xlu0 %3211 }
0x2554   :  { %v3214_v24 = vmul.f32 %v4635_v46, %v3212_v41 }
0x2556   :  { %3216 = vrot.lane.b32.xlu1 %v3214_v24, %s4794_s24 }
0x25c8   :  { %v3217_v21 = vpop.permute.xlu1 %3216 }
0x25c9   :  { %4386 = vmatmul.mubr.msk.f32.vlgmr.msra.gmra.mxu1 %vm171_vm1, %v3217_v21  ;;  %4397 = vmatmul.mubr.msk.f32.vlgmr.msra.gmra.mxu0 %vm171_vm1, %v3217_v21 }
0x25ca   :  { %4400 = vmatpush3.msra.mxu1 %v5401_v31  ;;  %4411 = vmatpush3.msra.mxu0 %v5432_v52  ;;  %v3117_v31 = vadd.f32 %v5368_v49, %v3116_v39 }
0x25cb   :  { %4401 = vmatprep.subr.mxu1 %v4795_v20  ;;  %4412 = vmatprep.subr.mxu0 %v4795_v20 }
0x25cc   :  { %4402 = vmatpush3.msra.mxu1 %v5407_v32  ;;  %4413 = vmatpush3.msra.mxu0 %v5434_v55 }
0x25cd   :  { %4403 = vmatprep.subr.mxu1 %v4795_v20  ;;  %4414 = vmatprep.subr.mxu0 %v4795_v20 }
0x25ce   :  { %4404 = vmatpush3.msra.mxu1 %v5415_v35  ;;  %4415 = vmatpush3.msra.mxu0 %v5438_v50 }
0x25cf   :  { %4405 = vmatprep.subr.mxu1 %v4795_v20  ;;  %4416 = vmatprep.subr.mxu0 %v4795_v20 }
0x25d0   :  { %4406 = vmatpush3.msra.mxu1 %v5421_v36  ;;  %4407 = vmatprep.mubr.msk.f32.mxu1 %vm4796_vm0, %v4795_v20 }
0x25d1   :  { %4417 = vmatpush3.msra.mxu0 %v5442_v57  ;;  %4418 = vmatprep.mubr.msk.f32.mxu0 %vm4796_vm0, %v4795_v20 }
0x25d2   :  { %4421 = vmatprep.subr.mxu1 %v4795_v20 }
0x2689   :  { %v3286_v32 = vpop.f32.mrf.mxu1  ;;  %v3389_v35 = vpop.f32.mrf.mxu0 }
0x268a   :  { %v3287_v52 = vadd.f32 %v3286_v32, %v3117_v31  ;;  %v3390_v17 = vadd.f32 %v5291_v25, %v3389_v35 }
0x268b   :  { %v4387_v55 = vpop.f32.mrf.mxu1  ;;  %v4398_v50 = vpop.f32.mrf.mxu0 }
0x268c   :  { %4638 = vtanh.f32 %v3287_v52  ;;  %v3817_v36 = vmul.f32 -1.442695, %v3287_v52 }
0x268e   :  { %4640 = vpow2.f32 %v3817_v36 }
0x2699   :  { %v4639_v47 = vpop.eup %4638 }
0x269a   :  { %3299 = vrot.lane.b32.xlu0 %v4639_v47, %s4793_s23 }
0x269b   :  { %v4641_v26 = vpop.eup %4640 }
0x269c   :  { %v3293_v57 = vadd.f32 1.0, %v4641_v26 }
0x269e   :  { %4642 = vrcp.f32 %v3293_v57 }
0x26ab   :  { %v4643_v23 = vpop.eup %4642 }
0x26ac   :  { %v3297_v58 = vmul.f32 %v4643_v23, %v5582_v16 }
0x270c   :  { %v3300_v54 = vpop.permute.xlu0 %3299 }
0x270d   :  { %v3302_v59 = vmul.f32 %v4643_v23, %v3300_v54 }
0x270f   :  { %3304 = vrot.lane.b32.xlu1 %v3302_v59, %s4794_s24 }
0x2781   :  { %v3305_v5 = vpop.permute.xlu1 %3304 }
0x2782   :  { %v5647_v7 = vadd.f32 %v3305_v5, %v3297_v58 }
0x2784   :  { %4644 = vtanh.f32 %v5647_v7 }
0x2791   :  { %v4645_v10 = vpop.eup %4644 }
0x2792   :  { %3310 = vrot.lane.b32.xlu0 %v4645_v10, %s4793_s23 }
0x2804   :  { %v3311_v11 = vpop.permute.xlu0 %3310 }
0x2805   :  { %v5651_v13 = vmul.f32 %v4643_v23, %v3311_v11 }
0x2807   :  { %3394 = vrot.lane.b32.xlu1 %v5651_v13, %s4794_s24 }
0x2879   :  { %v3395_v33 = vpop.permute.xlu1 %3394 }
0x287a   :  { %4408 = vmatmul.mubr.msk.f32.vlgmr.msra.gmra.mxu1 %vm171_vm1, %v3395_v33  ;;  %4419 = vmatmul.mubr.msk.f32.vlgmr.msra.gmra.mxu0 %vm171_vm1, %v3395_v33 }
0x287b   :  { %4422 = vmatpush3.msra.mxu1 %v5341_v45  ;;  %4429 = vmatprep.mubr.msk.f32.mxu1 %vm4796_vm0, %v4795_v20 }
0x287c   :  { %4423 = vmatprep.subr.mxu1 %v4795_v20 }
0x287d   :  { %4424 = vmatpush3.msra.mxu1 %v5350_v62 }
0x287e   :  { %4425 = vmatprep.subr.mxu1 %v4795_v20 }
0x287f   :  { %4426 = vmatpush3.msra.mxu1 %v5355_v63 }
0x2880   :  { %4427 = vmatprep.subr.mxu1 %v4795_v20 }
0x2881   :  { %4428 = vmatpush3.msra.mxu1 %v5361_v0 }
0x293a   :  { %v3464_v14 = vpop.f32.mrf.mxu1  ;;  %v3534_v16 = vpop.f32.mrf.mxu0 }
0x293b   :  { %v3535_v45 = vadd.f32 %v5478_v6, %v3534_v16  ;;  %v3465_v43 = vadd.f32 %v5368_v49, %v3464_v14 }
0x293c   :  { %v4409_v3 = vpop.f32.mrf.mxu1  ;;  %v4420_v4 = vpop.f32.mrf.mxu0 }
0x293d   :  { %v3538_v39 = vadd.f32 %v3535_v45, %v3390_v17 }
0x293f   :  { %4646 = vtanh.f32 %v3538_v39  ;;  %v3821_v62 = vmul.f32 -1.442695, %v3538_v39 }
0x2941   :  { %4648 = vpow2.f32 %v3821_v62 }
0x294c   :  { %v4647_v40 = vpop.eup %4646 }
0x294d   :  { %3548 = vrot.lane.b32.xlu0 %v4647_v40, %s4793_s23 }
0x294e   :  { %v4649_v63 = vpop.eup %4648 }
0x294f   :  { %v3542_v42 = vadd.f32 1.0, %v4649_v63 }
0x2951   :  { %4650 = vrcp.f32 %v3542_v42 }
0x295e   :  { %v4651_v20 = vpop.eup %4650 }
0x295f   :  { %v3546_v25 = vmul.f32 %v4651_v20, %v5617_v19 }
0x29bf   :  { %v3549_v0 = vpop.permute.xlu0 %3548 }
0x29c0   :  { %v3551_v8 = vmul.f32 %v4651_v20, %v3549_v0 }
0x29c2   :  { %3553 = vrot.lane.b32.xlu1 %v3551_v8, %s4794_s24 }
0x2a34   :  { %v3554_v6 = vpop.permute.xlu1 %3553 }
0x2a35   :  { %v3556_v29 = vadd.f32 %v3554_v6, %v3546_v25  ;;  %v3763_v6 = vld [vmem:[#allocation2] ss:$0 sm:$0xff] }
0x2a37   :  { %4652 = vtanh.f32 %v3556_v29 }
0x2a44   :  { %v4653_v44 = vpop.eup %4652 }
0x2a45   :  { %3559 = vrot.lane.b32.xlu0 %v4653_v44, %s4793_s23 }
0x2ab7   :  { %v3560_v30 = vpop.permute.xlu0 %3559 }
0x2ab8   :  { %v3562_v37 = vmul.f32 %v4651_v20, %v3560_v30 }
0x2aba   :  { %3564 = vrot.lane.b32.xlu1 %v3562_v37, %s4794_s24 }
0x2abe   :  { %273 = vrot.lane.b32.xlu1 %v3762_v38, %s4804_s4 }
0x2b2c   :  { %v3565_v1 = vpop.permute.xlu1 %3564 }
0x2b2d   :  { %4430 = vmatmul.mubr.msk.f32.vlgmr.msra.gmra.mxu1 %vm171_vm1, %v3565_v1 }
0x2b30   :  { %v5678_v18 = vpop.permute.xlu1 %273 }
0x2b31   :  { %v276_v19 = vmul.f32 %v5678_v18, %v5018_v9  ;;  %v566_v22 = vmul.f32 %v5074_v60, %v5678_v18  ;;  %v849_v60 = vmul.f32 %v5130_v56, %v5678_v18  ;;  %v1132_v56 = vmul.f32 %v5186_v53, %v5678_v18 }
0x2b32   :  { %v1415_v54 = vmul.f32 %v5242_v48, %v5678_v18  ;;  %v1698_v53 = vmul.f32 %v5308_v34, %v5678_v18  ;;  %v1981_v48 = vmul.f32 %v5387_v27, %v5678_v18  ;;  %v2264_v14 = vmul.f32 %v5449_v61, %v5678_v18 }
0x2b33   :  { %v2618_v16 = vmul.f32 %v5520_v12, %v5678_v18  ;;  %v2966_v34 = vmul.f32 %v5586_v28, %v5678_v18  ;;  %v3314_v27 = vmul.f32 %v5651_v13, %v5678_v18 }
0x2bed   :  { %v3634_v46 = vpop.f32.mrf.mxu1 }
0x2bee   :  { %v3635_v51 = vadd.f32 %v3634_v46, %v3465_v43 }
0x2bef   :  { %v4431_v15 = vpop.f32.mrf.mxu1 }
0x2bf0   :  { %4654 = vtanh.f32 %v3635_v51  ;;  %v3823_v49 = vmul.f32 -1.442695, %v3635_v51 }
0x2bf2   :  { %4656 = vpow2.f32 %v3823_v49 }
0x2bfd   :  { %v4655_v2 = vpop.eup %4654 }
0x2bfe   :  { %3647 = vrot.lane.b32.xlu0 %v4655_v2, %s4793_s23 }
0x2bff   :  { %v4657_v41 = vpop.eup %4656 }
0x2c00   :  { %v3641_v24 = vadd.f32 1.0, %v4657_v41 }
0x2c02   :  { %278 = vrot.lane.b32.xlu0 %v276_v19, %s4794_s24  ;;  %4658 = vrcp.f32 %v3641_v24 }
0x2c06   :  { %568 = vrot.lane.b32.xlu0 %v566_v22, %s4794_s24 }
0x2c0f   :  { %v4659_v21 = vpop.eup %4658 }
0x2c10   :  { %v3645_v57 = vmul.f32 %v4659_v21, %v5647_v7 }
0x2c70   :  { %v3648_v31 = vpop.permute.xlu0 %3647 }
0x2c71   :  { %v3650_v32 = vmul.f32 %v4659_v21, %v3648_v31 }
0x2c73   :  { %3652 = vrot.lane.b32.xlu0 %v3650_v32, %s4794_s24 }
0x2c74   :  { %v279_v35 = vpop.permute.xlu0 %278 }
0x2c75   :  { %v282_v9 = vsel %vm281_vm2, %v279_v35, 0.0 }
0x2c76   :  { %283 = vadd.xlane.f32.xlu1 %v282_v9 }
0x2c78   :  { %v569_v52 = vpop.permute.xlu0 %568 }
0x2c79   :  { %v571_v55 = vsel %vm281_vm2, %v569_v52, 0.0 }
0x2c87   :  { %851 = vrot.lane.b32.xlu1 %v849_v60, %s4794_s24 }
0x2c92   :  { %572 = vadd.xlane.f32.xlu0 %v571_v55 }
0x2ce5   :  { %v3653_v26 = vpop.permute.xlu0 %3652 }
0x2ce6   :  { %v3655_v23 = vadd.f32 %v3653_v26, %v3645_v57 }
0x2ce8   :  { %4660 = vtanh.f32 %v3655_v23 }
0x2cf5   :  { %v4661_v59 = vpop.eup %4660 }
0x2cff   :  { %v5693_v50 = vpop.xlane.xlu1 %283 }
0x2d00   :  { %v291_v60 = vadd.f32 %v3763_v6, %v5693_v50 }
0x2d03   :  { %v852_v47 = vpop.permute.xlu1 %851 }
0x2d04   :  { %v854_v36 = vsel %vm281_vm2, %v852_v47, 0.0 }
0x2d05   :  { %855 = vadd.xlane.f32.xlu0 %v854_v36 }
0x2d1b   :  { %1134 = vrot.lane.b32.xlu0 %v1132_v56, %s4794_s24  ;;  %v573_v58 = vpop.xlane.xlu0 %572 }
0x2d1c   :  { %v574_v46 = vadd.f32 %v3763_v6, %v573_v58 }
0x2d1f   :  { %1417 = vrot.lane.b32.xlu0 %v1415_v54, %s4794_s24 }
0x2d23   :  { %3658 = vrot.lane.b32.xlu0 %v4661_v59, %s4793_s23 }
0x2d8e   :  { %v856_v5 = vpop.xlane.xlu0 %855 }
0x2d8f   :  { %v857_v29 = vadd.f32 %v3763_v6, %v856_v5 }
0x2d92   :  { %v1135_v10 = vpop.permute.xlu0 %1134 }
0x2d93   :  { %v1137_v7 = vsel %vm281_vm2, %v1135_v10, 0.0 }
0x2d94   :  { %1138 = vadd.xlane.f32.xlu1 %v1137_v7 }
0x2d96   :  { %v1418_v11 = vpop.permute.xlu0 %1417 }
0x2d97   :  { %v1420_v33 = vsel %vm281_vm2, %v1418_v11, 0.0 }
0x2d98   :  { %1421 = vadd.xlane.f32.xlu0 %v1420_v33 }
0x2d9a   :  { %v3659_v17 = vpop.permute.xlu0 %3658 }
0x2d9b   :  { %v3661_v62 = vmul.f32 %v4659_v21, %v3659_v17 }
0x2d9d   :  { %v3662_v42 = vmul.f32 %v3661_v62, %v5678_v18 }
0x2da5   :  { %1700 = vrot.lane.b32.xlu1 %v1698_v53, %s4794_s24 }
0x2dae   :  { %1983 = vrot.lane.b32.xlu0 %v1981_v48, %s4794_s24 }
0x2db2   :  { %2266 = vrot.lane.b32.xlu0 %v2264_v14, %s4794_s24 }
0x2db6   :  { %2620 = vrot.lane.b32.xlu0 %v2618_v16, %s4794_s24 }
0x2dba   :  { %2968 = vrot.lane.b32.xlu0 %v2966_v34, %s4794_s24 }
0x2dbe   :  { %3316 = vrot.lane.b32.xlu0 %v3314_v27, %s4794_s24 }
0x2e1d   :  { %v1139_v45 = vpop.xlane.xlu1 %1138 }
0x2e1e   :  { %v1140_v44 = vadd.f32 %v3763_v6, %v1139_v45 }
0x2e21   :  { %v1701_v61 = vpop.permute.xlu1 %1700  ;;  %v1422_v3 = vpop.xlane.xlu0 %1421 }
0x2e22   :  { %v1703_v4 = vsel %vm281_vm2, %v1701_v61, 0.0  ;;  %v1423_v15 = vadd.f32 %v3763_v6, %v1422_v3 }
0x2e23   :  { %1704 = vadd.xlane.f32.xlu1 %v1703_v4 }
0x2e25   :  { %v1984_v12 = vpop.permute.xlu0 %1983 }
0x2e26   :  { %v1986_v39 = vsel %vm281_vm2, %v1984_v12, 0.0 }
0x2e27   :  { %1987 = vadd.xlane.f32.xlu0 %v1986_v39 }
0x2e29   :  { %v2267_v40 = vpop.permute.xlu0 %2266 }
0x2e2a   :  { %v2269_v25 = vsel %vm281_vm2, %v2267_v40, 0.0 }
0x2e2d   :  { %v2621_v28 = vpop.permute.xlu0 %2620 }
0x2e2e   :  { %v2623_v63 = vsel %vm281_vm2, %v2621_v28, 0.0 }
0x2e2f   :  { %2624 = vadd.xlane.f32.xlu0 %v2623_v63 }
0x2e31   :  { %v2969_v13 = vpop.permute.xlu0 %2968 }
0x2e32   :  { %v2971_v20 = vsel %vm281_vm2, %v2969_v13, 0.0 }
0x2e33   :  { %2972 = vadd.xlane.f32.xlu0 %v2971_v20 }
0x2e34   :  { %3664 = vrot.lane.b32.xlu1 %v3662_v42, %s4794_s24 }
0x2e35   :  { %v3317_v0 = vpop.permute.xlu0 %3316 }
0x2e36   :  { %v3319_v8 = vsel %vm281_vm2, %v3317_v0, 0.0 }
0x2e37   :  { %3320 = vadd.xlane.f32.xlu0 %v3319_v8 }
0x2e58   :  { %2270 = vadd.xlane.f32.xlu1 %v2269_v25 }
0x2e69   :  { %3676 = vrot.lane.b32.xlu1 %v857_v29, %s4805_s7 }
0x2e6d   :  { %3680 = vrot.lane.b32.xlu1 %v1140_v44, %s4806_s15 }
0x2eac   :  { %v1705_v30 = vpop.xlane.xlu1 %1704 }
0x2ead   :  { %v1706_v37 = vadd.f32 %v3763_v6, %v1705_v30 }
0x2eaf   :  { %3688 = vrot.lane.b32.xlu1 %v1706_v37, %s4807_s16 }
0x2eb0   :  { %v3665_v38 = vpop.permute.xlu1 %3664  ;;  %v1988_v43 = vpop.xlane.xlu0 %1987 }
0x2eb1   :  { %v3667_v1 = vsel %vm281_vm2, %v3665_v38, 0.0  ;;  %v1989_v18 = vadd.f32 %v3763_v6, %v1988_v43 }
0x2eb2   :  { %3668 = vadd.xlane.f32.xlu0 %v3667_v1 }
0x2eb8   :  { %v2625_v51 = vpop.xlane.xlu0 %2624 }
0x2eb9   :  { %v2626_v19 = vadd.f32 %v3763_v6, %v2625_v51 }
0x2ebc   :  { %v2973_v2 = vpop.xlane.xlu0 %2972 }
0x2ebd   :  { %v2974_v21 = vadd.f32 %v3763_v6, %v2973_v2 }
0x2ec0   :  { %v3321_v22 = vpop.xlane.xlu0 %3320 }
0x2ec1   :  { %v3322_v49 = vadd.f32 %v3763_v6, %v3321_v22 }
0x2ec8   :  { %3672 = vrot.lane.b32.xlu0 %v574_v46, %s4808_s2 }
0x2ecc   :  { %3684 = vrot.lane.b32.xlu0 %v1423_v15, %s4809_s17 }
0x2ed0   :  { %3692 = vrot.lane.b32.xlu0 %v1989_v18, %s4810_s18 }
0x2ed4   :  { %3700 = vrot.lane.b32.xlu0 %v2626_v19, %s4789_s8  ;;  %s4815_s8 = smov [#allocation11]  }
0x2ed5   :  { %s3745_s9 = sshll.u32 %s4815_s8, 4  ;;  %s3746_s9 = int_to_ptr.vmem [resolvable:$true] %s3745_s9 }
0x2ed6   :  { %s4758_s22 = scalar_lea.vmem %s3746_s9, 32  ;;  %p4763_p7 = scmp.lt.s32.totalorder %s3746_s9, %s3746_s9 }
0x2ed7   :  { %p4759_p6 = scmp.ne.s32.totalorder %s3746_s9, %s4758_s22  ;;  %p4764_p8 = scmp.lt.s32.totalorder %s4758_s22, %s4758_s22 }
0x2ed8   :  { %3708 = vrot.lane.b32.xlu0 %v3322_v49, %s4811_s5 }
0x2ed9   :  { %p4765_p9 = por %p4764_p8, %p4763_p7 }
0x2edb   :  { %p4766_p10 = pnand %p4765_p9, %p4759_p6 }
0x2ee1   :  { %v2271_v41 = vpop.xlane.xlu1 %2270 }
0x2ee2   :  { %v2272_v24 = vadd.f32 %v3763_v6, %v2271_v41 }
0x2ee4   :  { %3696 = vrot.lane.b32.xlu1 %v2272_v24, %s4812_s19 }
0x2ee5   :  { %v3677_v35 = vpop.permute.xlu1 %3676 }
0x2ee8   :  { %3704 = vrot.lane.b32.xlu1 %v2974_v21, %s4813_s20 }
0x2ee9   :  { %v3681_v55 = vpop.permute.xlu1 %3680 }
0x2f21   :  { %v3689_v26 = vpop.permute.xlu1 %3688 }
0x2f3b   :  { %v3669_v31 = vpop.xlane.xlu0 %3668 }
0x2f3c   :  { %v3670_v32 = vadd.f32 %v3763_v6, %v3669_v31 }
0x2f3e   :  { %3712 = vrot.lane.b32.xlu1 %v3670_v32, %s4814_s21 }
0x2f3f   :  { %v3673_v9 = vpop.permute.xlu0 %3672 }
0x2f40   :  { %v3716_v52 = vsel %vm3715_vm3, %v291_v60, %v3673_v9 }
0x2f41   :  { %v3718_v36 = vsel %vm3717_vm4, %v3716_v52, %v3677_v35 }
0x2f42   :  { %v3720_v57 = vsel %vm3719_vm5, %v3718_v36, %v3681_v55 }
0x2f43   :  { %v3685_v47 = vpop.permute.xlu0 %3684 }
0x2f44   :  { %v3722_v56 = vsel %vm3721_vm6, %v3720_v57, %v3685_v47 }
0x2f45   :  { %v3724_v59 = vsel %vm3723_vm7, %v3722_v56, %v3689_v26 }
0x2f47   :  { %v3693_v23 = vpop.permute.xlu0 %3692 }
0x2f48   :  { %v3726_v58 = vsel %vm3725_vm8, %v3724_v59, %v3693_v23 }
0x2f4b   :  { %v3701_v5 = vpop.permute.xlu0 %3700 }
0x2f4f   :  { %v3709_v33 = vpop.permute.xlu0 %3708 }
0x2f56   :  { %v3697_v54 = vpop.permute.xlu1 %3696 }
0x2f57   :  { %v3728_v10 = vsel %vm3727_vm9, %v3726_v58, %v3697_v54 }
0x2f58   :  { %v3730_v7 = vsel %vm3729_vm10, %v3728_v10, %v3701_v5 }
0x2f5a   :  { %v3705_v50 = vpop.permute.xlu1 %3704 }
0x2f5b   :  { %v3732_v11 = vsel %vm3731_vm11, %v3730_v7, %v3705_v50 }
0x2f5c   :  { %v3734_v48 = vsel %vm3733_vm12, %v3732_v11, %v3709_v33 }
0x2fb0   :  { %v3713_v53 = vpop.permute.xlu1 %3712 }
0x2fb1   :  { %v3736_v14 = vsel %vm3735_vm13, %v3734_v48, %v3713_v53 }
0x2fb2   :  { %3738 = vst.msk [vmem:[#allocation11] sm:$0x3] %vm3737_vm14, %v3736_v14 }
0x2fb3   :  { %4769 = shalt.err (!%p4766_p10)
}
0x2fb4   :  { %3748 = dma.vmem_to_hbm [thread:$0]  %s3746_s9, 32, %s5749_s11, [#allocation5]  }
0x2fb5   :  { %4784 = dma.done.wait [#allocation5], 32  }
0x2fb6   :  { %4785 = vsyncadd [#allocation5], 4294967264 }
0x2fb7   :  { %3752 = vsyncpa [#allocation4], 1 }
0x2fb8   :  { %3753 = vsyncpa [#allocation7], 1 }
0x2fb9   :  { %3754 = vsyncpa [#allocation10], 1 }
0x2fba   :  { %3755 = vsyncpa [#allocation5], 1 }

</bundles_post_ra>
